<compile_context>
chip_gen: v7x
topology: tpu7x:2x2x1
jax: 0.10.0
libtpu: 0.0.40
codegen_flags: <defaults>
</compile_context>

<pallas_src>
import jax
import jax.numpy as jnp
import numpy as np
from jax.experimental import pallas as pl
from jax.experimental.pallas import tpu as pltpu

# Sizes implied by the hard-coded layers in the PyTorch module:
#   attn: Linear(300 + 150 + 256, 11), attn_combine: Linear(650, 650),
#   gru: GRU(input=650, hidden=256)  ->  tag embedding dim = 650 - 450 = 200
NI = 300          # args.ni  (char embedding dim)
NZ = 150          # args.nz  (latent dim)
NH = 256          # args.dec_nh == GRU hidden size
NTAGS = 11        # number of tag slots attended over
NTAG_EMB = 200    # tag embedding dim
GRU_IN = NI + NZ + NTAG_EMB          # 650
VOCAB = 32                           # small synthetic vocab (len(vocab.word2id))
VOCAB_PAD = ((VOCAB + 127) // 128) * 128   # lane-dense logits slab width (128)


def _decoder_seq_kernel(emb_ref, z_ref, h0_ref, tag_emb_ref, mask_ref,
                        w_attn_e_ref, w_attn_z_ref, w_attn_h_ref, b_attn_ref,
                        w_comb_e_ref, w_comb_z_ref, w_comb_a_ref, b_comb_ref,
                        w_ih_ref, b_ih_ref, w_hh_ref, b_hh_ref,
                        w_pred_ref, b_pred_ref,
                        logits_ref, h_out_ref, attnw_ref,
                        h_sc):
    t = pl.program_id(0)

    # P3 init: load the initial hidden state into the VMEM carry at step 0.
    @pl.when(t == 0)
    def _():
        h_sc[...] = h0_ref[...]

    h_prev = h_sc[...]                       # (B, NH) f32, resident across all T steps
    h_b = h_prev.astype(jnp.bfloat16)
    emb = emb_ref[0]                         # (B, NI) bf16, this step's token embedding
    z = z_ref[...]                           # (B, NZ) bf16

    # attention_scores = attn(cat(embedded, z, hidden)) -- concat folded into split matmuls
    scores = (jnp.dot(emb, w_attn_e_ref[...], preferred_element_type=jnp.float32)
              + jnp.dot(z, w_attn_z_ref[...], preferred_element_type=jnp.float32)
              + jnp.dot(h_b, w_attn_h_ref[...], preferred_element_type=jnp.float32)
              + b_attn_ref[...])                                         # (B, NTAGS) f32
    scores = jnp.where(mask_ref[0] != 0, -1000000000.0, scores)          # masked_fill

    # softmax over the tag axis (f32; exp + approx reciprocal go to the EUP)
    m = jnp.max(scores, axis=-1, keepdims=True)
    e = jnp.exp(scores - m)
    attn_w = e * pl.reciprocal(jnp.sum(e, axis=-1, keepdims=True), approx=True)

    # bmm(attn_weights, tag_embeddings): (B,NTAGS) x (B,NTAGS,NTAG_EMB) -> (B,NTAG_EMB)
    attn_applied = jnp.sum(attn_w[:, :, None] * tag_emb_ref[...].astype(jnp.float32), axis=1)

    # attn_combine(cat(embedded, z, attn_applied)) then ReLU -- concat folded in
    comb = (jnp.dot(emb, w_comb_e_ref[...], preferred_element_type=jnp.float32)
            + jnp.dot(z, w_comb_z_ref[...], preferred_element_type=jnp.float32)
            + jnp.dot(attn_applied.astype(jnp.bfloat16), w_comb_a_ref[...],
                      preferred_element_type=jnp.float32)
            + b_comb_ref[...])                                           # (B, GRU_IN)
    x = jnp.maximum(comb, 0.0).astype(jnp.bfloat16)

    # single GRU cell step, PyTorch gate order [r|z|n]; gate math kept in f32
    gi = jnp.dot(x, w_ih_ref[...], preferred_element_type=jnp.float32) + b_ih_ref[...]
    gh = jnp.dot(h_b, w_hh_ref[...], preferred_element_type=jnp.float32) + b_hh_ref[...]
    r = jax.nn.sigmoid(gi[:, 0:NH] + gh[:, 0:NH])
    zt = jax.nn.sigmoid(gi[:, NH:2 * NH] + gh[:, NH:2 * NH])
    n = jnp.tanh(gi[:, 2 * NH:3 * NH] + r * gh[:, 2 * NH:3 * NH])
    h_new = (1.0 - zt) * n + zt * h_prev                                 # (B, NH) f32

    # vocab projection into a lane-dense, 128-wide padded slab (unmasked stores)
    logits_ref[0] = (jnp.dot(h_new.astype(jnp.bfloat16), w_pred_ref[...],
                             preferred_element_type=jnp.float32) + b_pred_ref[...])
    attnw_ref[0] = attn_w
    h_sc[...] = h_new

    # P3 finalize: emit the final hidden state once.
    @pl.when(t == pl.num_programs(0) - 1)
    def _():
        h_out_ref[...] = h_new


def msved_decoder_forward(params, input_ids, z, hidden, tag_embeddings, tag_attention_masks):
    """JAX/Pallas equivalent of MSVED_Decoder.forward (eval mode), fused over T
    teacher-forced decode steps. T == 1 reproduces the module's forward exactly."""
    B, T = input_ids.shape

    # embedding gather + eval-mode dropout identity (plain-JAX glue)
    # TODO(synk): training-mode stochastic dropout (dec_dropout_in) not modeled.
    emb_t = params["char_embed"][input_ids.T]                       # (T, B, NI) bf16
    z2d = z.reshape(B, NZ).astype(jnp.bfloat16)                     # (B, NZ)
    h0 = hidden[0].astype(jnp.float32)                              # (B, NH)
    tag_emb = tag_embeddings.astype(jnp.bfloat16)                   # (B, NTAGS, NTAG_EMB)
    mask_t = jnp.transpose(jnp.broadcast_to(tag_attention_masks, (B, T, NTAGS)),
                           (1, 0, 2)).astype(jnp.int32)             # (T, B, NTAGS)

    weight_keys = ("w_attn_e", "w_attn_z", "w_attn_h", "b_attn",
                   "w_comb_e", "w_comb_z", "w_comb_a", "b_comb",
                   "w_ih", "b_ih", "w_hh", "b_hh",
                   "w_pred_p", "b_pred_p")
    weights = [params[k] for k in weight_keys]

    def _full2d(arr):   # whole-array block, constant index -> DMA'd once per sequence
        return pl.BlockSpec(arr.shape, lambda t: (0, 0))

    in_specs = ([pl.BlockSpec((1, B, NI), lambda t: (t, 0, 0)),
                 pl.BlockSpec((B, NZ), lambda t: (0, 0)),
                 pl.BlockSpec((B, NH), lambda t: (0, 0)),
                 pl.BlockSpec((B, NTAGS, NTAG_EMB), lambda t: (0, 0, 0)),
                 pl.BlockSpec((1, B, NTAGS), lambda t: (t, 0, 0))]
                + [_full2d(w) for w in weights])

    out_shape = (jax.ShapeDtypeStruct((T, B, VOCAB_PAD), jnp.float32),
                 jax.ShapeDtypeStruct((B, NH), jnp.float32),
                 jax.ShapeDtypeStruct((T, B, NTAGS), jnp.float32))
    out_specs = (pl.BlockSpec((1, B, VOCAB_PAD), lambda t: (t, 0, 0)),
                 pl.BlockSpec((B, NH), lambda t: (0, 0)),
                 pl.BlockSpec((1, B, NTAGS), lambda t: (t, 0, 0)))

    # advisory cost estimate (helps XLA schedule around the custom call)
    flops_per_step = 2 * B * (NTAGS * (NI + NZ + NH)
                              + GRU_IN * (NI + NZ + NTAG_EMB)
                              + 3 * NH * (GRU_IN + NH)
                              + VOCAB_PAD * NH)
    weight_bytes = sum(int(w.size) * w.dtype.itemsize for w in weights)
    act_bytes = sum(int(a.size) * a.dtype.itemsize
                    for a in (emb_t, z2d, h0, tag_emb, mask_t))
    out_bytes = 4 * (T * B * VOCAB_PAD + B * NH + T * B * NTAGS)
    cost = pl.CostEstimate(flops=T * flops_per_step,
                           transcendentals=T * B * (NTAGS + 3 * NH),
                           bytes_accessed=weight_bytes + act_bytes + out_bytes)

    logits_pad, h_last, attn_w_t = pl.pallas_call(
        _decoder_seq_kernel,
        grid=(T,),
        in_specs=in_specs,
        out_specs=out_specs,
        out_shape=out_shape,
        scratch_shapes=[pltpu.VMEM((B, NH), jnp.float32)],   # GRU hidden carry
        compiler_params=pltpu.CompilerParams(
            dimension_semantics=("arbitrary",),              # T carries the hidden dep
            vmem_limit_bytes=32 * 1024 * 1024),
        cost_estimate=cost,
    )(emb_t, z2d, h0, tag_emb, mask_t, *weights)

    logits = jnp.transpose(logits_pad, (1, 0, 2))[:, :, :VOCAB]   # (B, T, VOCAB)
    attn_w = jnp.transpose(attn_w_t, (1, 0, 2))                   # (B, T, NTAGS)
    return logits, h_last[None], attn_w                           # hidden: (1, B, NH)


def init_params(key, vocab_size=VOCAB):
    ks = jax.random.split(key, 15)

    def u(k, shape, s=0.08, dtype=jnp.bfloat16):
        return jax.random.uniform(k, shape, jnp.float32, -s, s).astype(dtype)

    w_pred = u(ks[11], (NH, vocab_size))
    b_pred = u(ks[12], (1, vocab_size), dtype=jnp.float32)
    return {
        # bf16 master copies for everything feeding the MXU (halves HBM traffic);
        # biases stay f32 (added after the f32-accumulated matmuls).
        "char_embed": u(ks[0], (vocab_size, NI), 0.1),
        "w_attn_e": u(ks[1], (NI, NTAGS)),          # attn weight, char-embed part (transposed)
        "w_attn_z": u(ks[2], (NZ, NTAGS)),          # attn weight, z part
        "w_attn_h": u(ks[3], (NH, NTAGS)),          # attn weight, hidden part
        "b_attn":   u(ks[4], (1, NTAGS), dtype=jnp.float32),
        "w_comb_e": u(ks[5], (NI, GRU_IN)),
        "w_comb_z": u(ks[6], (NZ, GRU_IN)),
        "w_comb_a": u(ks[7], (NTAG_EMB, GRU_IN)),
        "b_comb":   u(ks[8], (1, GRU_IN), dtype=jnp.float32),
        "w_ih":     u(ks[9], (GRU_IN, 3 * NH)),     # GRU weight_ih^T, gate order [r|z|n]
        "b_ih":     u(ks[10], (1, 3 * NH), dtype=jnp.float32),
        "w_hh":     u(ks[13], (NH, 3 * NH)),        # GRU weight_hh^T
        "b_hh":     u(ks[14], (1, 3 * NH), dtype=jnp.float32),
        # vocab projection padded to a 128-lane slab for lane-dense stores
        "w_pred_p": jnp.pad(w_pred, ((0, 0), (0, VOCAB_PAD - vocab_size))),
        "b_pred_p": jnp.pad(b_pred, ((0, 0), (0, VOCAB_PAD - vocab_size))),
    }


def reference_forward(params, input_ids, z, hidden, tag_embeddings, tag_attention_masks):
    """Pure-JAX f32 reference mirroring the PyTorch forward, looped over T steps."""
    B, T = input_ids.shape
    f = lambda k: params[k].astype(jnp.float32)
    w_attn = jnp.concatenate([f("w_attn_e"), f("w_attn_z"), f("w_attn_h")], axis=0)
    w_comb = jnp.concatenate([f("w_comb_e"), f("w_comb_z"), f("w_comb_a")], axis=0)
    w_pred = f("w_pred_p")[:, :VOCAB]
    b_pred = f("b_pred_p")[:, :VOCAB]
    emb_all = f("char_embed")[input_ids]                            # (B, T, NI)
    z_f = z.astype(jnp.bfloat16).astype(jnp.float32)                # same input rounding as kernel
    te = tag_embeddings.astype(jnp.bfloat16).astype(jnp.float32)
    mask = jnp.broadcast_to(tag_attention_masks, (B, T, NTAGS))
    h = hidden.astype(jnp.float32)
    logits_steps, attn_steps = [], []
    for t in range(T):
        ez = jnp.concatenate([emb_all[:, t:t + 1, :],
                              jnp.broadcast_to(z_f, (B, 1, NZ))], axis=-1)        # (B,1,450)
        to_attend = jnp.concatenate([ez, jnp.transpose(h, (1, 0, 2))], axis=2)    # (B,1,706)
        scores = to_attend @ w_attn + f("b_attn")
        scores = jnp.where(mask[:, t:t + 1, :], -1000000000.0, scores)
        aw = jax.nn.softmax(scores, axis=2)
        applied = jnp.einsum("btk,bkd->btd", aw, te)
        out = jax.nn.relu(jnp.concatenate([ez, applied], axis=2) @ w_comb + f("b_comb"))
        x, h0 = out[:, 0, :], h[0]
        gi = x @ f("w_ih") + f("b_ih")
        gh = h0 @ f("w_hh") + f("b_hh")
        r = jax.nn.sigmoid(gi[:, :NH] + gh[:, :NH])
        zt = jax.nn.sigmoid(gi[:, NH:2 * NH] + gh[:, NH:2 * NH])
        n = jnp.tanh(gi[:, 2 * NH:] + r * gh[:, 2 * NH:])
        h_new = (1.0 - zt) * n + zt * h0
        h = h_new[None]
        logits_steps.append(h_new @ w_pred + b_pred)
        attn_steps.append(aw[:, 0, :])
    return jnp.stack(logits_steps, axis=1), h, jnp.stack(attn_steps, axis=1)


if __name__ == "__main__":
    key = jax.random.PRNGKey(0)
    kp, ki, kz, kh, kt, km = jax.random.split(key, 6)
    params = init_params(kp)

    B, T = 4, 8
    input_ids = jax.random.randint(ki, (B, T), 0, VOCAB)
    z = 0.1 * jax.random.normal(kz, (B, 1, NZ), jnp.float32)
    hidden = 0.1 * jax.random.normal(kh, (1, B, NH), jnp.float32)
    tag_embeddings = 0.1 * jax.random.normal(kt, (B, NTAGS, NTAG_EMB), jnp.float32)
    tag_attention_masks = jax.random.uniform(km, (B, T, NTAGS)) < 0.3

    fwd = jax.jit(msved_decoder_forward)
    logits, h_new, attn_w = fwd(params, input_ids, z, hidden,
                                tag_embeddings, tag_attention_masks)
    jax.block_until_ready((logits, h_new, attn_w))

    rl, rh, rw = reference_forward(params, input_ids, z, hidden,
                                   tag_embeddings, tag_attention_masks)

    assert logits.shape == (B, T, VOCAB)
    assert h_new.shape == (1, B, NH)
    assert attn_w.shape == (B, T, NTAGS)
    np.testing.assert_allclose(np.asarray(attn_w), np.asarray(rw), atol=2e-2, rtol=2e-2)
    np.testing.assert_allclose(np.asarray(h_new), np.asarray(rh), atol=2e-2, rtol=2e-2)
    np.testing.assert_allclose(np.asarray(logits), np.asarray(rl), atol=2e-2, rtol=2e-2)

    print("KERNEL_OK")
</pallas_src>

<mosaic_0001>
module attributes {stable_mosaic.version = 11 : i64} {
  func.func @_decoder_seq_kernel(%arg0: i32, %arg1: memref<1x4x300xbf16, #tpu.memory_space<vmem>>, %arg2: memref<4x150xbf16, #tpu.memory_space<vmem>>, %arg3: memref<4x256xf32, #tpu.memory_space<vmem>>, %arg4: memref<4x11x200xbf16, #tpu.memory_space<vmem>>, %arg5: memref<1x4x11xi32, #tpu.memory_space<vmem>>, %arg6: memref<300x11xbf16, #tpu.memory_space<vmem>>, %arg7: memref<150x11xbf16, #tpu.memory_space<vmem>>, %arg8: memref<256x11xbf16, #tpu.memory_space<vmem>>, %arg9: memref<1x11xf32, #tpu.memory_space<vmem>>, %arg10: memref<300x650xbf16, #tpu.memory_space<vmem>>, %arg11: memref<150x650xbf16, #tpu.memory_space<vmem>>, %arg12: memref<200x650xbf16, #tpu.memory_space<vmem>>, %arg13: memref<1x650xf32, #tpu.memory_space<vmem>>, %arg14: memref<650x768xbf16, #tpu.memory_space<vmem>>, %arg15: memref<1x768xf32, #tpu.memory_space<vmem>>, %arg16: memref<256x768xbf16, #tpu.memory_space<vmem>>, %arg17: memref<1x768xf32, #tpu.memory_space<vmem>>, %arg18: memref<256x128xbf16, #tpu.memory_space<vmem>>, %arg19: memref<1x128xf32, #tpu.memory_space<vmem>>, %arg20: memref<1x4x128xf32, #tpu.memory_space<vmem>>, %arg21: memref<4x256xf32, #tpu.memory_space<vmem>>, %arg22: memref<1x4x11xf32, #tpu.memory_space<vmem>>, %arg23: memref<4x256xf32, #tpu.memory_space<vmem>>) attributes {dimension_semantics = [#tpu.dimension_semantics<arbitrary>], iteration_bounds = array<i64: 8>, scalar_prefetch = 0 : i64, scratch_operands = 1 : i64, tpu.core_type = #tpu.core_type<tc>, window_params = [{transform_indices = @transform_0, window_bounds = array<i64: 1, 4, 300>}, {pipeline_mode = #tpu.pipeline_mode<synchronous>, transform_indices = @transform_1, window_bounds = array<i64: 4, 150>}, {pipeline_mode = #tpu.pipeline_mode<synchronous>, transform_indices = @transform_2, window_bounds = array<i64: 4, 256>}, {pipeline_mode = #tpu.pipeline_mode<synchronous>, transform_indices = @transform_3, window_bounds = array<i64: 4, 11, 200>}, {transform_indices = @transform_4, window_bounds = array<i64: 1, 4, 11>}, {pipeline_mode = #tpu.pipeline_mode<synchronous>, transform_indices = @transform_5, window_bounds = array<i64: 300, 11>}, {pipeline_mode = #tpu.pipeline_mode<synchronous>, transform_indices = @transform_6, window_bounds = array<i64: 150, 11>}, {pipeline_mode = #tpu.pipeline_mode<synchronous>, transform_indices = @transform_7, window_bounds = array<i64: 256, 11>}, {pipeline_mode = #tpu.pipeline_mode<synchronous>, transform_indices = @transform_8, window_bounds = array<i64: 1, 11>}, {pipeline_mode = #tpu.pipeline_mode<synchronous>, transform_indices = @transform_9, window_bounds = array<i64: 300, 650>}, {pipeline_mode = #tpu.pipeline_mode<synchronous>, transform_indices = @transform_10, window_bounds = array<i64: 150, 650>}, {pipeline_mode = #tpu.pipeline_mode<synchronous>, transform_indices = @transform_11, window_bounds = array<i64: 200, 650>}, {pipeline_mode = #tpu.pipeline_mode<synchronous>, transform_indices = @transform_12, window_bounds = array<i64: 1, 650>}, {pipeline_mode = #tpu.pipeline_mode<synchronous>, transform_indices = @transform_13, window_bounds = array<i64: 650, 768>}, {pipeline_mode = #tpu.pipeline_mode<synchronous>, transform_indices = @transform_14, window_bounds = array<i64: 1, 768>}, {pipeline_mode = #tpu.pipeline_mode<synchronous>, transform_indices = @transform_15, window_bounds = array<i64: 256, 768>}, {pipeline_mode = #tpu.pipeline_mode<synchronous>, transform_indices = @transform_16, window_bounds = array<i64: 1, 768>}, {pipeline_mode = #tpu.pipeline_mode<synchronous>, transform_indices = @transform_17, window_bounds = array<i64: 256, 128>}, {pipeline_mode = #tpu.pipeline_mode<synchronous>, transform_indices = @transform_18, window_bounds = array<i64: 1, 128>}, {transform_indices = @transform_19, window_bounds = array<i64: 1, 4, 128>}, {pipeline_mode = #tpu.pipeline_mode<synchronous>, transform_indices = @transform_20, window_bounds = array<i64: 4, 256>}, {transform_indices = @transform_21, window_bounds = array<i64: 1, 4, 11>}]} {
    %c0_i32 = arith.constant 0 : i32
    %0 = arith.cmpi eq, %arg0, %c0_i32 : i32
    %1 = arith.extui %0 : i1 to i32
    %c0_i32_0 = arith.constant 0 : i32
    %2 = arith.cmpi ne, %1, %c0_i32_0 : i32
    scf.if %2 {
      %c0_67 = arith.constant 0 : index
      %c0_68 = arith.constant 0 : index
      %108 = vector.load %arg3[%c0_67, %c0_68] : memref<4x256xf32, #tpu.memory_space<vmem>>, vector<4x256xf32>
      %c0_69 = arith.constant 0 : index
      %c0_70 = arith.constant 0 : index
      %109 = vector.load %arg23[%c0_69, %c0_70] : memref<4x256xf32, #tpu.memory_space<vmem>>, vector<4x256xf32>
      tpu.vector_store %arg23[%c0_69, %c0_70], %108 {strides = array<i32>} : memref<4x256xf32, #tpu.memory_space<vmem>>, vector<4x256xf32>,
    } else {
    }
    %c0 = arith.constant 0 : index
    %c0_1 = arith.constant 0 : index
    %3 = vector.load %arg23[%c0, %c0_1] : memref<4x256xf32, #tpu.memory_space<vmem>>, vector<4x256xf32>
    %4 = arith.truncf %3 : vector<4x256xf32> to vector<4x256xbf16>
    %c0_2 = arith.constant 0 : index
    %c0_3 = arith.constant 0 : index
    %c0_4 = arith.constant 0 : index
    %5 = vector.load %arg1[%c0_2, %c0_3, %c0_4] : memref<1x4x300xbf16, #tpu.memory_space<vmem>>, vector<1x4x300xbf16>
    %6 = vector.shape_cast %5 : vector<1x4x300xbf16> to vector<4x300xbf16>
    %c0_5 = arith.constant 0 : index
    %c0_6 = arith.constant 0 : index
    %7 = vector.load %arg2[%c0_5, %c0_6] : memref<4x150xbf16, #tpu.memory_space<vmem>>, vector<4x150xbf16>
    %c0_7 = arith.constant 0 : index
    %c0_8 = arith.constant 0 : index
    %8 = vector.load %arg6[%c0_7, %c0_8] : memref<300x11xbf16, #tpu.memory_space<vmem>>, vector<300x11xbf16>
    %cst = arith.constant dense<0.000000e+00> : vector<4x11xf32>
    %9 = tpu.matmul %6, %8, %cst {dimension_numbers = #tpu.dot_dimension_numbers<[1], [0], [0], [1], [0, 0, 1, 1], [], []>} : vector<4x300xbf16>, vector<300x11xbf16>, vector<4x11xf32> -> vector<4x11xf32>
    %c0_9 = arith.constant 0 : index
    %c0_10 = arith.constant 0 : index
    %10 = vector.load %arg7[%c0_9, %c0_10] : memref<150x11xbf16, #tpu.memory_space<vmem>>, vector<150x11xbf16>
    %cst_11 = arith.constant dense<0.000000e+00> : vector<4x11xf32>
    %11 = tpu.matmul %7, %10, %cst_11 {dimension_numbers = #tpu.dot_dimension_numbers<[1], [0], [0], [1], [0, 0, 1, 1], [], []>} : vector<4x150xbf16>, vector<150x11xbf16>, vector<4x11xf32> -> vector<4x11xf32>
    %12 = arith.addf %9, %11 : vector<4x11xf32>
    %c0_12 = arith.constant 0 : index
    %c0_13 = arith.constant 0 : index
    %13 = vector.load %arg8[%c0_12, %c0_13] : memref<256x11xbf16, #tpu.memory_space<vmem>>, vector<256x11xbf16>
    %cst_14 = arith.constant dense<0.000000e+00> : vector<4x11xf32>
    %14 = tpu.matmul %4, %13, %cst_14 {dimension_numbers = #tpu.dot_dimension_numbers<[1], [0], [0], [1], [0, 0, 1, 1], [], []>} : vector<4x256xbf16>, vector<256x11xbf16>, vector<4x11xf32> -> vector<4x11xf32>
    %15 = arith.addf %12, %14 : vector<4x11xf32>
    %c0_15 = arith.constant 0 : index
    %c0_16 = arith.constant 0 : index
    %16 = vector.load %arg9[%c0_15, %c0_16] : memref<1x11xf32, #tpu.memory_space<vmem>>, vector<1x11xf32>
    %17 = vector.broadcast %16 : vector<1x11xf32> to vector<4x11xf32>
    %18 = arith.addf %15, %17 : vector<4x11xf32>
    %c0_17 = arith.constant 0 : index
    %c0_18 = arith.constant 0 : index
    %c0_19 = arith.constant 0 : index
    %19 = vector.load %arg5[%c0_17, %c0_18, %c0_19] : memref<1x4x11xi32, #tpu.memory_space<vmem>>, vector<1x4x11xi32>
    %20 = vector.shape_cast %19 : vector<1x4x11xi32> to vector<4x11xi32>
    %c0_i32_20 = arith.constant 0 : i32
    %21 = vector.broadcast %c0_i32_20 : i32 to vector<4x11xi32>
    %22 = arith.cmpi ne, %20, %21 : vector<4x11xi32>
    %cst_21 = arith.constant -1.000000e+09 : f32
    %23 = vector.broadcast %cst_21 : f32 to vector<4x11xf32>
    %24 = arith.select %22, %23, %18 : vector<4x11xi1>, vector<4x11xf32>
    %cst_22 = arith.constant dense<0xFF800000> : vector<4xf32>
    %25 = vector.multi_reduction <maximumf>, %24, %cst_22 [1] : vector<4x11xf32> to vector<4xf32>
    %26 = vector.shape_cast %25 : vector<4xf32> to vector<4x1xf32>
    %27 = vector.broadcast %26 : vector<4x1xf32> to vector<4x11xf32>
    %28 = arith.subf %24, %27 : vector<4x11xf32>
    %29 = math.exp %28 : vector<4x11xf32>
    %cst_23 = arith.constant dense<0.000000e+00> : vector<4xf32>
    %30 = vector.multi_reduction <add>, %29, %cst_23 [1] : vector<4x11xf32> to vector<4xf32>
    %31 = vector.shape_cast %30 : vector<4xf32> to vector<4x1xf32>
    %32 = tpu.reciprocal %31 {approx = true} : vector<4x1xf32> -> vector<4x1xf32>
    %33 = vector.broadcast %32 : vector<4x1xf32> to vector<4x11xf32>
    %34 = arith.mulf %29, %33 : vector<4x11xf32>
    %35 = vector.shape_cast %34 : vector<4x11xf32> to vector<4x11x1xf32>
    %c0_24 = arith.constant 0 : index
    %c0_25 = arith.constant 0 : index
    %c0_26 = arith.constant 0 : index
    %36 = vector.load %arg4[%c0_24, %c0_25, %c0_26] : memref<4x11x200xbf16, #tpu.memory_space<vmem>>, vector<4x11x200xbf16>
    %37 = arith.extf %36 : vector<4x11x200xbf16> to vector<4x11x200xf32>
    %38 = vector.broadcast %35 : vector<4x11x1xf32> to vector<4x11x200xf32>
    %39 = arith.mulf %38, %37 : vector<4x11x200xf32>
    %cst_27 = arith.constant dense<0.000000e+00> : vector<4x200xf32>
    %40 = vector.multi_reduction <add>, %39, %cst_27 [1] : vector<4x11x200xf32> to vector<4x200xf32>
    %c0_28 = arith.constant 0 : index
    %c0_29 = arith.constant 0 : index
    %41 = vector.load %arg10[%c0_28, %c0_29] : memref<300x650xbf16, #tpu.memory_space<vmem>>, vector<300x650xbf16>
    %cst_30 = arith.constant dense<0.000000e+00> : vector<4x650xf32>
    %42 = tpu.matmul %6, %41, %cst_30 {dimension_numbers = #tpu.dot_dimension_numbers<[1], [0], [0], [1], [0, 0, 1, 1], [], []>} : vector<4x300xbf16>, vector<300x650xbf16>, vector<4x650xf32> -> vector<4x650xf32>
    %c0_31 = arith.constant 0 : index
    %c0_32 = arith.constant 0 : index
    %43 = vector.load %arg11[%c0_31, %c0_32] : memref<150x650xbf16, #tpu.memory_space<vmem>>, vector<150x650xbf16>
    %cst_33 = arith.constant dense<0.000000e+00> : vector<4x650xf32>
    %44 = tpu.matmul %7, %43, %cst_33 {dimension_numbers = #tpu.dot_dimension_numbers<[1], [0], [0], [1], [0, 0, 1, 1], [], []>} : vector<4x150xbf16>, vector<150x650xbf16>, vector<4x650xf32> -> vector<4x650xf32>
    %45 = arith.addf %42, %44 : vector<4x650xf32>
    %46 = arith.truncf %40 : vector<4x200xf32> to vector<4x200xbf16>
    %c0_34 = arith.constant 0 : index
    %c0_35 = arith.constant 0 : index
    %47 = vector.load %arg12[%c0_34, %c0_35] : memref<200x650xbf16, #tpu.memory_space<vmem>>, vector<200x650xbf16>
    %cst_36 = arith.constant dense<0.000000e+00> : vector<4x650xf32>
    %48 = tpu.matmul %46, %47, %cst_36 {dimension_numbers = #tpu.dot_dimension_numbers<[1], [0], [0], [1], [0, 0, 1, 1], [], []>} : vector<4x200xbf16>, vector<200x650xbf16>, vector<4x650xf32> -> vector<4x650xf32>
    %49 = arith.addf %45, %48 : vector<4x650xf32>
    %c0_37 = arith.constant 0 : index
    %c0_38 = arith.constant 0 : index
    %50 = vector.load %arg13[%c0_37, %c0_38] : memref<1x650xf32, #tpu.memory_space<vmem>>, vector<1x650xf32>
    %51 = vector.broadcast %50 : vector<1x650xf32> to vector<4x650xf32>
    %52 = arith.addf %49, %51 : vector<4x650xf32>
    %cst_39 = arith.constant 0.000000e+00 : f32
    %53 = vector.broadcast %cst_39 : f32 to vector<4x650xf32>
    %54 = arith.maximumf %52, %53 : vector<4x650xf32>
    %55 = arith.truncf %54 : vector<4x650xf32> to vector<4x650xbf16>
    %c0_40 = arith.constant 0 : index
    %c0_41 = arith.constant 0 : index
    %56 = vector.load %arg14[%c0_40, %c0_41] : memref<650x768xbf16, #tpu.memory_space<vmem>>, vector<650x768xbf16>
    %cst_42 = arith.constant dense<0.000000e+00> : vector<4x768xf32>
    %57 = tpu.matmul %55, %56, %cst_42 {dimension_numbers = #tpu.dot_dimension_numbers<[1], [0], [0], [1], [0, 0, 1, 1], [], []>} : vector<4x650xbf16>, vector<650x768xbf16>, vector<4x768xf32> -> vector<4x768xf32>
    %c0_43 = arith.constant 0 : index
    %c0_44 = arith.constant 0 : index
    %58 = vector.load %arg15[%c0_43, %c0_44] : memref<1x768xf32, #tpu.memory_space<vmem>>, vector<1x768xf32>
    %59 = vector.broadcast %58 : vector<1x768xf32> to vector<4x768xf32>
    %60 = arith.addf %57, %59 : vector<4x768xf32>
    %c0_45 = arith.constant 0 : index
    %c0_46 = arith.constant 0 : index
    %61 = vector.load %arg16[%c0_45, %c0_46] : memref<256x768xbf16, #tpu.memory_space<vmem>>, vector<256x768xbf16>
    %cst_47 = arith.constant dense<0.000000e+00> : vector<4x768xf32>
    %62 = tpu.matmul %4, %61, %cst_47 {dimension_numbers = #tpu.dot_dimension_numbers<[1], [0], [0], [1], [0, 0, 1, 1], [], []>} : vector<4x256xbf16>, vector<256x768xbf16>, vector<4x768xf32> -> vector<4x768xf32>
    %c0_48 = arith.constant 0 : index
    %c0_49 = arith.constant 0 : index
    %63 = vector.load %arg17[%c0_48, %c0_49] : memref<1x768xf32, #tpu.memory_space<vmem>>, vector<1x768xf32>
    %64 = vector.broadcast %63 : vector<1x768xf32> to vector<4x768xf32>
    %65 = arith.addf %62, %64 : vector<4x768xf32>
    %66 = vector.extract_strided_slice %60 {offsets = [0, 0], sizes = [4, 256], strides = [1, 1]} : vector<4x768xf32> to vector<4x256xf32>
    %67 = vector.extract_strided_slice %65 {offsets = [0, 0], sizes = [4, 256], strides = [1, 1]} : vector<4x768xf32> to vector<4x256xf32>
    %68 = arith.addf %66, %67 : vector<4x256xf32>
    %69 = arith.negf %68 : vector<4x256xf32>
    %70 = math.exp %69 : vector<4x256xf32>
    %cst_50 = arith.constant 1.000000e+00 : f32
    %71 = vector.broadcast %cst_50 : f32 to vector<4x256xf32>
    %72 = arith.addf %71, %70 : vector<4x256xf32>
    %73 = arith.divf %71, %72 : vector<4x256xf32>
    %74 = vector.extract_strided_slice %60 {offsets = [0, 256], sizes = [4, 256], strides = [1, 1]} : vector<4x768xf32> to vector<4x256xf32>
    %75 = vector.extract_strided_slice %65 {offsets = [0, 256], sizes = [4, 256], strides = [1, 1]} : vector<4x768xf32> to vector<4x256xf32>
    %76 = arith.addf %74, %75 : vector<4x256xf32>
    %77 = arith.negf %76 : vector<4x256xf32>
    %78 = math.exp %77 : vector<4x256xf32>
    %cst_51 = arith.constant 1.000000e+00 : f32
    %79 = vector.broadcast %cst_51 : f32 to vector<4x256xf32>
    %80 = arith.addf %79, %78 : vector<4x256xf32>
    %81 = arith.divf %79, %80 : vector<4x256xf32>
    %82 = vector.extract_strided_slice %60 {offsets = [0, 512], sizes = [4, 256], strides = [1, 1]} : vector<4x768xf32> to vector<4x256xf32>
    %83 = vector.extract_strided_slice %65 {offsets = [0, 512], sizes = [4, 256], strides = [1, 1]} : vector<4x768xf32> to vector<4x256xf32>
    %84 = arith.mulf %73, %83 : vector<4x256xf32>
    %85 = arith.addf %82, %84 : vector<4x256xf32>
    %86 = math.tanh %85 : vector<4x256xf32>
    %cst_52 = arith.constant 1.000000e+00 : f32
    %87 = vector.broadcast %cst_52 : f32 to vector<4x256xf32>
    %88 = arith.subf %87, %81 : vector<4x256xf32>
    %89 = arith.mulf %88, %86 : vector<4x256xf32>
    %90 = arith.mulf %81, %3 : vector<4x256xf32>
    %91 = arith.addf %89, %90 : vector<4x256xf32>
    %92 = arith.truncf %91 : vector<4x256xf32> to vector<4x256xbf16>
    %c0_53 = arith.constant 0 : index
    %c0_54 = arith.constant 0 : index
    %93 = vector.load %arg18[%c0_53, %c0_54] : memref<256x128xbf16, #tpu.memory_space<vmem>>, vector<256x128xbf16>
    %cst_55 = arith.constant dense<0.000000e+00> : vector<4x128xf32>
    %94 = tpu.matmul %92, %93, %cst_55 {dimension_numbers = #tpu.dot_dimension_numbers<[1], [0], [0], [1], [0, 0, 1, 1], [], []>} : vector<4x256xbf16>, vector<256x128xbf16>, vector<4x128xf32> -> vector<4x128xf32>
    %c0_56 = arith.constant 0 : index
    %c0_57 = arith.constant 0 : index
    %95 = vector.load %arg19[%c0_56, %c0_57] : memref<1x128xf32, #tpu.memory_space<vmem>>, vector<1x128xf32>
    %96 = vector.broadcast %95 : vector<1x128xf32> to vector<4x128xf32>
    %97 = arith.addf %94, %96 : vector<4x128xf32>
    %c0_58 = arith.constant 0 : index
    %c0_59 = arith.constant 0 : index
    %c0_60 = arith.constant 0 : index
    %98 = vector.load %arg20[%c0_58, %c0_59, %c0_60] : memref<1x4x128xf32, #tpu.memory_space<vmem>>, vector<1x4x128xf32>
    %99 = vector.shape_cast %98 : vector<1x4x128xf32> to vector<4x128xf32>
    %100 = vector.shape_cast %97 : vector<4x128xf32> to vector<1x4x128xf32>
    tpu.vector_store %arg20[%c0_58, %c0_59, %c0_60], %100 {strides = array<i32>} : memref<1x4x128xf32, #tpu.memory_space<vmem>>, vector<1x4x128xf32>,
    %c0_61 = arith.constant 0 : index
    %c0_62 = arith.constant 0 : index
    %c0_63 = arith.constant 0 : index
    %101 = vector.load %arg22[%c0_61, %c0_62, %c0_63] : memref<1x4x11xf32, #tpu.memory_space<vmem>>, vector<1x4x11xf32>
    %102 = vector.shape_cast %101 : vector<1x4x11xf32> to vector<4x11xf32>
    %103 = vector.shape_cast %34 : vector<4x11xf32> to vector<1x4x11xf32>
    tpu.vector_store %arg22[%c0_61, %c0_62, %c0_63], %103 {strides = array<i32>} : memref<1x4x11xf32, #tpu.memory_space<vmem>>, vector<1x4x11xf32>,
    %c0_64 = arith.constant 0 : index
    %c0_65 = arith.constant 0 : index
    %104 = vector.load %arg23[%c0_64, %c0_65] : memref<4x256xf32, #tpu.memory_space<vmem>>, vector<4x256xf32>
    tpu.vector_store %arg23[%c0_64, %c0_65], %91 {strides = array<i32>} : memref<4x256xf32, #tpu.memory_space<vmem>>, vector<4x256xf32>,
    %c7_i32 = arith.constant 7 : i32
    %105 = arith.cmpi eq, %arg0, %c7_i32 : i32
    %106 = arith.extui %105 : i1 to i32
    %c0_i32_66 = arith.constant 0 : i32
    %107 = arith.cmpi ne, %106, %c0_i32_66 : i32
    scf.if %107 {
      %c0_67 = arith.constant 0 : index
      %c0_68 = arith.constant 0 : index
      %108 = vector.load %arg21[%c0_67, %c0_68] : memref<4x256xf32, #tpu.memory_space<vmem>>, vector<4x256xf32>
      tpu.vector_store %arg21[%c0_67, %c0_68], %91 {strides = array<i32>} : memref<4x256xf32, #tpu.memory_space<vmem>>, vector<4x256xf32>,
    } else {
    }
    return
  }
  func.func @transform_0(%arg0: i32) -> (i32, i32, i32) {
    %c0_i32 = arith.constant 0 : i32
    %c0_i32_0 = arith.constant 0 : i32
    %c0_i32_1 = arith.constant 0 : i32
    return %arg0, %c0_i32, %c0_i32_0 : i32, i32, i32
  }
  func.func @transform_1(%arg0: i32) -> (i32, i32) {
    %c0_i32 = arith.constant 0 : i32
    %c0_i32_0 = arith.constant 0 : i32
    %c0_i32_1 = arith.constant 0 : i32
    return %c0_i32, %c0_i32_0 : i32, i32
  }
  func.func @transform_2(%arg0: i32) -> (i32, i32) {
    %c0_i32 = arith.constant 0 : i32
    %c0_i32_0 = arith.constant 0 : i32
    %c0_i32_1 = arith.constant 0 : i32
    return %c0_i32, %c0_i32_0 : i32, i32
  }
  func.func @transform_3(%arg0: i32) -> (i32, i32, i32) {
    %c0_i32 = arith.constant 0 : i32
    %c0_i32_0 = arith.constant 0 : i32
    %c0_i32_1 = arith.constant 0 : i32
    %c0_i32_2 = arith.constant 0 : i32
    return %c0_i32, %c0_i32_0, %c0_i32_1 : i32, i32, i32
  }
  func.func @transform_4(%arg0: i32) -> (i32, i32, i32) {
    %c0_i32 = arith.constant 0 : i32
    %c0_i32_0 = arith.constant 0 : i32
    %c0_i32_1 = arith.constant 0 : i32
    return %arg0, %c0_i32, %c0_i32_0 : i32, i32, i32
  }
  func.func @transform_5(%arg0: i32) -> (i32, i32) {
    %c0_i32 = arith.constant 0 : i32
    %c0_i32_0 = arith.constant 0 : i32
    %c0_i32_1 = arith.constant 0 : i32
    return %c0_i32, %c0_i32_0 : i32, i32
  }
  func.func @transform_6(%arg0: i32) -> (i32, i32) {
    %c0_i32 = arith.constant 0 : i32
    %c0_i32_0 = arith.constant 0 : i32
    %c0_i32_1 = arith.constant 0 : i32
    return %c0_i32, %c0_i32_0 : i32, i32
  }
  func.func @transform_7(%arg0: i32) -> (i32, i32) {
    %c0_i32 = arith.constant 0 : i32
    %c0_i32_0 = arith.constant 0 : i32
    %c0_i32_1 = arith.constant 0 : i32
    return %c0_i32, %c0_i32_0 : i32, i32
  }
  func.func @transform_8(%arg0: i32) -> (i32, i32) {
    %c0_i32 = arith.constant 0 : i32
    %c0_i32_0 = arith.constant 0 : i32
    %c0_i32_1 = arith.constant 0 : i32
    return %c0_i32, %c0_i32_0 : i32, i32
  }
  func.func @transform_9(%arg0: i32) -> (i32, i32) {
    %c0_i32 = arith.constant 0 : i32
    %c0_i32_0 = arith.constant 0 : i32
    %c0_i32_1 = arith.constant 0 : i32
    return %c0_i32, %c0_i32_0 : i32, i32
  }
  func.func @transform_10(%arg0: i32) -> (i32, i32) {
    %c0_i32 = arith.constant 0 : i32
    %c0_i32_0 = arith.constant 0 : i32
    %c0_i32_1 = arith.constant 0 : i32
    return %c0_i32, %c0_i32_0 : i32, i32
  }
  func.func @transform_11(%arg0: i32) -> (i32, i32) {
    %c0_i32 = arith.constant 0 : i32
    %c0_i32_0 = arith.constant 0 : i32
    %c0_i32_1 = arith.constant 0 : i32
    return %c0_i32, %c0_i32_0 : i32, i32
  }
  func.func @transform_12(%arg0: i32) -> (i32, i32) {
    %c0_i32 = arith.constant 0 : i32
    %c0_i32_0 = arith.constant 0 : i32
    %c0_i32_1 = arith.constant 0 : i32
    return %c0_i32, %c0_i32_0 : i32, i32
  }
  func.func @transform_13(%arg0: i32) -> (i32, i32) {
    %c0_i32 = arith.constant 0 : i32
    %c0_i32_0 = arith.constant 0 : i32
    %c0_i32_1 = arith.constant 0 : i32
    return %c0_i32, %c0_i32_0 : i32, i32
  }
  func.func @transform_14(%arg0: i32) -> (i32, i32) {
    %c0_i32 = arith.constant 0 : i32
    %c0_i32_0 = arith.constant 0 : i32
    %c0_i32_1 = arith.constant 0 : i32
    return %c0_i32, %c0_i32_0 : i32, i32
  }
  func.func @transform_15(%arg0: i32) -> (i32, i32) {
    %c0_i32 = arith.constant 0 : i32
    %c0_i32_0 = arith.constant 0 : i32
    %c0_i32_1 = arith.constant 0 : i32
    return %c0_i32, %c0_i32_0 : i32, i32
  }
  func.func @transform_16(%arg0: i32) -> (i32, i32) {
    %c0_i32 = arith.constant 0 : i32
    %c0_i32_0 = arith.constant 0 : i32
    %c0_i32_1 = arith.constant 0 : i32
    return %c0_i32, %c0_i32_0 : i32, i32
  }
  func.func @transform_17(%arg0: i32) -> (i32, i32) {
    %c0_i32 = arith.constant 0 : i32
    %c0_i32_0 = arith.constant 0 : i32
    %c0_i32_1 = arith.constant 0 : i32
    return %c0_i32, %c0_i32_0 : i32, i32
  }
  func.func @transform_18(%arg0: i32) -> (i32, i32) {
    %c0_i32 = arith.constant 0 : i32
    %c0_i32_0 = arith.constant 0 : i32
    %c0_i32_1 = arith.constant 0 : i32
    return %c0_i32, %c0_i32_0 : i32, i32
  }
  func.func @transform_19(%arg0: i32) -> (i32, i32, i32) {
    %c0_i32 = arith.constant 0 : i32
    %c0_i32_0 = arith.constant 0 : i32
    %c0_i32_1 = arith.constant 0 : i32
    return %arg0, %c0_i32, %c0_i32_0 : i32, i32, i32
  }
  func.func @transform_20(%arg0: i32) -> (i32, i32) {
    %c0_i32 = arith.constant 0 : i32
    %c0_i32_0 = arith.constant 0 : i32
    %c0_i32_1 = arith.constant 0 : i32
    return %c0_i32, %c0_i32_0 : i32, i32
  }
  func.func @transform_21(%arg0: i32) -> (i32, i32, i32) {
    %c0_i32 = arith.constant 0 : i32
    %c0_i32_0 = arith.constant 0 : i32
    %c0_i32_1 = arith.constant 0 : i32
    return %arg0, %c0_i32, %c0_i32_0 : i32, i32, i32
  }
}

</mosaic_0001>

<bundles_post_ra>
// kernel: msved_decoder_forward.1
= control target key start
LH: loop header
LB: loop body
LE: loop exit
PB: predicated region body
PF: predicated region fallthrough
CT: control target
= control target key end

     0   :  { %s10173_s0 = inlined_call_operand.vmem [shape: bf16[8,4,300], index: 0, kind: input, shape index: {}]   ;;  %s10174_s1 = inlined_call_operand.vmem [shape: bf16[4,150], index: 1, kind: input, shape index: {}]   ;;  %s10175_s2 = inlined_call_operand.vmem [shape: f32[4,256], index: 2, kind: input, shape index: {}]   ;;  %s10176_s3 = inlined_call_operand.vmem [shape: bf16[4,11,200], index: 3, kind: input, shape index: {}]   ;;  %s10177_s4 = inlined_call_operand.vmem [shape: s32[8,4,11], index: 4, kind: input, shape index: {}]   ;;  %s10178_s5 = inlined_call_operand.vmem [shape: bf16[300,11], index: 5, kind: input, shape index: {}]   ;;  %s10179_s6 = inlined_call_operand.vmem [shape: bf16[150,11], index: 6, kind: input, shape index: {}]   ;;  %s10180_s7 = inlined_call_operand.vmem [shape: bf16[256,11], index: 7, kind: input, shape index: {}]   ;;  %s10181_s8 = inlined_call_operand.vmem [shape: f32[1,11], index: 8, kind: input, shape index: {}]   ;;  %s10182_s9 = inlined_call_operand.vmem [shape: bf16[300,650], index: 9, kind: input, shape index: {}]   ;;  %s10183_s10 = inlined_call_operand.vmem [shape: bf16[150,650], index: 10, kind: input, shape index: {}]   ;;  %s10184_s11 = inlined_call_operand.hbm [shape: bf16[200,650], index: 11, kind: input, shape index: {}]   ;;  %s10185_s12 = inlined_call_operand.hbm [shape: f32[1,650], index: 12, kind: input, shape index: {}]   ;;  %s10186_s13 = inlined_call_operand.hbm [shape: bf16[650,768], index: 13, kind: input, shape index: {}]   ;;  %s10187_s14 = inlined_call_operand.hbm [shape: f32[1,768], index: 14, kind: input, shape index: {}]   ;;  %s10188_s15 = inlined_call_operand.hbm [shape: bf16[256,768], index: 15, kind: input, shape index: {}]   ;;  %s10189_s16 = inlined_call_operand.hbm [shape: f32[1,768], index: 16, kind: input, shape index: {}]   ;;  %s10190_s17 = inlined_call_operand.hbm [shape: bf16[256,128], index: 17, kind: input, shape index: {}]   ;;  %s10191_s18 = inlined_call_operand.vmem [shape: f32[1,128], index: 18, kind: input, shape index: {}]   ;;  %s10192_s19 = inlined_call_operand.vmem [shape: f32[8,4,128], index: 19, kind: output, shape index: {0}]   ;;  %s10193_s20 = inlined_call_operand.hbm [shape: f32[4,256], index: 20, kind: output, shape index: {1}]   ;;  %s10194_s21 = inlined_call_operand.vmem [shape: f32[8,4,11], index: 21, kind: output, shape index: {2}]  }
   0x1   :  { %10202 = sst [smem:[#allocation22_spill]] %s10173_s0 }
   0x2   :  { %10203 = sst [smem:[#allocation23_spill]] %s10174_s1 }
   0x3   :  { %10204 = sst [smem:[#allocation24_spill]] %s10175_s2 }
   0x4   :  { %10205 = sst [smem:[#allocation25_spill]] %s10176_s3 }
   0x5   :  { %10206 = sst [smem:[#allocation26_spill]] %s10177_s4 }
   0x6   :  { %10207 = sst [smem:[#allocation27_spill]] %s10178_s5 }
   0x7   :  { %10208 = sst [smem:[#allocation28_spill]] %s10185_s12 }
   0x8   :  { %10209 = sst [smem:[#allocation29_spill]] %s10187_s14 }
   0x9   :  { %10210 = sst [smem:[#allocation30_spill]] %s10189_s16 }
   0xa   :  { %10211 = sst [smem:[#allocation31_spill]] %s10191_s18 }
   0xb   :  { %10212 = sst [smem:[#allocation32_spill]] %s10193_s20 }
   0xc   :  { %27 = vsyncpa [#allocation4], 0 }
   0xd   :  { %28 = vsyncpa [#allocation7], 0 }
   0xe   :  { %29 = vsyncpa [#allocation10], 0 }
   0xf   :  { %30 = vsyncpa [#allocation13], 0 }
  0x10   :  { %31 = vsyncpa [#allocation5], 0  ;;  %s8961_s2 = smov 0  }
  0x11 LB: > { %10213 = sst [smem:[#allocation21_spill]] %s8833_s2  ;;  %s8835_s25 = smov [#allocation6]   ;;  %s8833_s2 = sphi %s8961_s2, %s37_s2  }
  0x12   : > { %s577_s26 = sshll.u32 %s8835_s25, 4  ;;  %s8967_s27 = sadd.s32 4294967295, %s8833_s2   ;;  %s8973_s26 = int_to_ptr.vmem [resolvable:$true] %s577_s26 }
  0x13   : > { %p6689_p0 = scmp.ge.s32.totalorder %s8833_s2, 1  ;;  %p524_p1 = scmp.lt.s32.totalorder %s8833_s2, 9 }
  0x14   : > { %p10200_p3 = scmp.eq.s32.totalorder %s8967_s27, 0  ;;  %s8836_s28 = smov [#allocation9]  }
  0x15   : > { %p8975_p4 = pnand %p6689_p0, %p524_p1  ;;  %s601_s29 = sshll.u32 %s8836_s28, 4  ;;  %s8981_s29 = int_to_ptr.vmem [resolvable:$true] %s601_s29 }
  0x16   : > { %s8837_s0 = smov [#allocation12]   ;;  %s8838_s5 = smov [#allocation3]  }
  0x17   : > { %s10214_s3 = scalar_select %p8975_p4, 1, 0 }
  0x18   : > { %p7549_p5 = pneg %p8975_p4  ;;  %s625_s4 = sshll.u32 %s8837_s0, 4  ;;  %s8989_s4 = int_to_ptr.vmem [resolvable:$true] %s625_s4 }
  0x19   : > { %s563_s22 = sshll.u32 %s8838_s5, 4  ;;  %s10216_s12 = sld [smem:[#allocation28_spill]]  ;;  %s8991_s22 = int_to_ptr.vmem [resolvable:$true] %s563_s22 }
  0x1a   : > { %p8985_p6 = pnand %p10200_p3, %p7549_p5 }
  0x1c   : > { %p9001_p8 = pneg %p8985_p6 }
  0x1f   : > { %s8585_s24 = scalar_lea.hbm %s10216_s12, 96 }
  0x20   : > { %p8586_p7 = scmp.ne.s32.totalorder %s10216_s12, %s8585_s24  ;;  %p8592_p11 = scmp.lt.u32.totalorder %s8585_s24, %s10216_s12 }
  0x22   : > { %p8588_p9 = pnand %p9001_p8, %p8586_p7 }
  0x24   : > { %p8589_p10 = pneg %p8588_p9 }
  0x26   : > { %p8594_p12 = pnand %p8592_p11, %p8589_p10 }
  0x28   : > { %8597 = shalt.err (!%p8594_p12)
}
  0x29   : > { %s8598_s23 = scalar_lea.vmem %s8973_s26, 96  ;;  %p8606_p5 = scmp.lt.s32.totalorder %s8973_s26, %s8973_s26 }
  0x2a   : > { %p8599_p13 = scmp.ne.s32.totalorder %s8973_s26, %s8598_s23  ;;  %p8607_p2 = scmp.lt.s32.totalorder %s8598_s23, %s8598_s23 }
  0x2c   : > { %p8601_p0 = pnand %p8599_p13, %p9001_p8  ;;  %p8608_p7 = por %p8607_p2, %p8606_p5 }
  0x2e   : > { %p8602_p1 = pneg %p8601_p0 }
  0x30   : > { %p8609_p9 = pnand %p8608_p7, %p8602_p1 }
  0x32   : > { %8612 = shalt.err (!%p8609_p9)
}
  0x33   : > { %7555 = dma.hbm_to_vmem [thread:$0]  (!%p8985_p6), %s10216_s12, 96, %s8973_s26, [#allocation7]  }
  0x34   : > { %s10218_s14 = sld [smem:[#allocation29_spill]] }
  0x3a   : > { %s8613_s28 = scalar_lea.hbm %s10218_s14, 96 }
  0x3b   : > { %p8614_p10 = scmp.ne.s32.totalorder %s10218_s14, %s8613_s28  ;;  %p8620_p12 = scmp.lt.u32.totalorder %s8613_s28, %s10218_s14 }
  0x3d   : > { %p8616_p2 = pnand %p8614_p10, %p9001_p8 }
  0x3f   : > { %p8617_p11 = pneg %p8616_p2 }
  0x41   : > { %p8622_p13 = pnand %p8620_p12, %p8617_p11 }
  0x43   : > { %8625 = shalt.err (!%p8622_p13)
}
  0x44   : > { %s8626_s26 = scalar_lea.vmem %s8981_s29, 96  ;;  %p8634_p7 = scmp.lt.s32.totalorder %s8981_s29, %s8981_s29 }
  0x45   : > { %p8627_p0 = scmp.ne.s32.totalorder %s8981_s29, %s8626_s26  ;;  %p8635_p9 = scmp.lt.s32.totalorder %s8626_s26, %s8626_s26 }
  0x47   : > { %p8629_p1 = pnand %p8627_p0, %p9001_p8  ;;  %p8636_p10 = por %p8635_p9, %p8634_p7 }
  0x49   : > { %p8630_p5 = pneg %p8629_p1 }
  0x4b   : > { %p8637_p2 = pnand %p8636_p10, %p8630_p5 }
  0x4d   : > { %8640 = shalt.err (!%p8637_p2)
}
  0x4e   : > { %7561 = dma.hbm_to_vmem [thread:$0]  (!%p8985_p6), %s10218_s14, 96, %s8981_s29, [#allocation10]  }
  0x4f   : > { %s10219_s16 = sld [smem:[#allocation30_spill]] }
  0x55   : > { %s8641_s24 = scalar_lea.hbm %s10219_s16, 96 }
  0x56   : > { %p8642_p11 = scmp.ne.s32.totalorder %s10219_s16, %s8641_s24  ;;  %p8648_p0 = scmp.lt.u32.totalorder %s8641_s24, %s10219_s16 }
  0x58   : > { %p8644_p12 = pnand %p8642_p11, %p9001_p8 }
  0x5a   : > { %p8645_p13 = pneg %p8644_p12 }
  0x5c   : > { %p8650_p1 = pnand %p8648_p0, %p8645_p13 }
  0x5e   : > { %8653 = shalt.err (!%p8650_p1)
}
  0x5f   : > { %s8654_s29 = scalar_lea.vmem %s8989_s4, 96  ;;  %p8662_p10 = scmp.lt.s32.totalorder %s8989_s4, %s8989_s4 }
  0x60   : > { %p8655_p5 = scmp.ne.s32.totalorder %s8989_s4, %s8654_s29  ;;  %p8663_p2 = scmp.lt.s32.totalorder %s8654_s29, %s8654_s29 }
  0x62   : > { %p8657_p7 = pnand %p8655_p5, %p9001_p8  ;;  %p8664_p11 = por %p8663_p2, %p8662_p10 }
  0x64   : > { %p8658_p9 = pneg %p8657_p7 }
  0x66   : > { %p8665_p12 = pnand %p8664_p11, %p8658_p9 }
  0x68   : > { %8668 = shalt.err (!%p8665_p12)
}
  0x69   : > { %7567 = dma.hbm_to_vmem [thread:$0]  (!%p8985_p6), %s10219_s16, 96, %s8989_s4, [#allocation13]  }
  0x6a   : > { %s8669_s1 = scalar_lea.hbm %s10184_s11, 9600 }
  0x6b   : > { %p8670_p13 = scmp.ne.s32.totalorder %s10184_s11, %s8669_s1  ;;  %p8676_p5 = scmp.lt.u32.totalorder %s8669_s1, %s10184_s11 }
  0x6d   : > { %p8672_p0 = pnand %p8670_p13, %p9001_p8 }
  0x6f   : > { %p8673_p1 = pneg %p8672_p0 }
  0x71   : > { %p8678_p7 = pnand %p8676_p5, %p8673_p1 }
  0x73   : > { %8681 = shalt.err (!%p8678_p7)
}
  0x74   : > { %s8682_s4 = scalar_lea.vmem %s8991_s22, 9600  ;;  %p8690_p11 = scmp.lt.s32.totalorder %s8991_s22, %s8991_s22 }
  0x75   : > { %p8683_p9 = scmp.ne.s32.totalorder %s8991_s22, %s8682_s4  ;;  %p8691_p12 = scmp.lt.s32.totalorder %s8682_s4, %s8682_s4 }
  0x77   : > { %p8685_p10 = pnand %p8683_p9, %p9001_p8  ;;  %p8692_p13 = por %p8691_p12, %p8690_p11 }
  0x79   : > { %p8686_p2 = pneg %p8685_p10 }
  0x7b   : > { %p8693_p0 = pnand %p8692_p13, %p8686_p2 }
  0x7d   : > { %8696 = shalt.err (!%p8693_p0)
}
  0x7e   : > { %s8839_s23 = smov 384   ;;  %s8840_s29 = smov 24  }
  0x7f   : > { %7552 = dma.hbm_to_vmem [thread:$0]  (!%p8985_p6), %s10184_s11, 9600, %s8991_s22, [#allocation4], %s8839_s23, %s8839_s23, %s8840_s29  }
  0x80   : > { %s8841_s20 = smov [#allocation8]   ;;  %s8842_s1 = smov [#allocation11]  }
  0x81   : > { %s587_s2 = sshll.u32 %s8841_s20, 4  ;;  %s611_s24 = sshll.u32 %s8842_s1, 4  ;;  %s588_s2 = int_to_ptr.vmem [resolvable:$true] %s587_s2  ;;  %s612_s24 = int_to_ptr.vmem [resolvable:$true] %s611_s24 }
  0x82   : > { %s8697_s5 = scalar_lea.hbm %s10186_s13, 31488 }
  0x83   : > { %p8698_p1 = scmp.ne.s32.totalorder %s10186_s13, %s8697_s5  ;;  %p8704_p9 = scmp.lt.u32.totalorder %s8697_s5, %s10186_s13 }
  0x85   : > { %p8700_p5 = pnand %p8698_p1, %p9001_p8 }
  0x87   : > { %p8701_p7 = pneg %p8700_p5 }
  0x89   : > { %p8706_p10 = pnand %p8704_p9, %p8701_p7 }
  0x8b   : > { %8709 = shalt.err (!%p8706_p10)
}
  0x8c   : > { %s8710_s22 = scalar_lea.vmem %s588_s2, 31488  ;;  %p8718_p13 = scmp.lt.s32.totalorder %s588_s2, %s588_s2 }
  0x8d   : > { %p8711_p2 = scmp.ne.s32.totalorder %s588_s2, %s8710_s22  ;;  %p8719_p0 = scmp.lt.s32.totalorder %s8710_s22, %s8710_s22 }
  0x8f   : > { %p8713_p11 = pnand %p8711_p2, %p9001_p8  ;;  %p8720_p3 = por %p8719_p0, %p8718_p13 }
  0x91   : > { %p8714_p12 = pneg %p8713_p11 }
  0x93   : > { %p8721_p4 = pnand %p8720_p3, %p8714_p12 }
  0x95   : > { %8724 = shalt.err (!%p8721_p4)
}
  0x96   : > { %7558 = dma.hbm_to_vmem [thread:$0]  (!%p8985_p6), %s10186_s13, 31488, %s588_s2, [#allocation7], %s8839_s23, %s8839_s23, %s8840_s29  }
  0x97   : > { %s8725_s18 = scalar_lea.hbm %s10188_s15, 12288 }
  0x98   : > { %p8726_p3 = scmp.ne.s32.totalorder %s10188_s15, %s8725_s18  ;;  %p8732_p5 = scmp.lt.u32.totalorder %s8725_s18, %s10188_s15 }
  0x9a   : > { %p8728_p4 = pnand %p8726_p3, %p9001_p8 }
  0x9c   : > { %p8729_p1 = pneg %p8728_p4 }
  0x9e   : > { %p8734_p7 = pnand %p8732_p5, %p8729_p1 }
  0xa0   : > { %8737 = shalt.err (!%p8734_p7)
}
  0xa1   : > { %s8738_s5 = scalar_lea.vmem %s612_s24, 12288  ;;  %p8746_p11 = scmp.lt.s32.totalorder %s612_s24, %s612_s24 }
  0xa2   : > { %p8739_p9 = scmp.ne.s32.totalorder %s612_s24, %s8738_s5  ;;  %p8747_p12 = scmp.lt.s32.totalorder %s8738_s5, %s8738_s5 }
  0xa4   : > { %p8741_p10 = pnand %p8739_p9, %p9001_p8  ;;  %p8748_p13 = por %p8747_p12, %p8746_p11 }
  0xa6   : > { %p8742_p2 = pneg %p8741_p10 }
  0xa8   : > { %p8749_p0 = pnand %p8748_p13, %p8742_p2 }
  0xaa   : > { %8752 = shalt.err (!%p8749_p0)
}
  0xab   : > { %7564 = dma.hbm_to_vmem [thread:$0]  (!%p8985_p6), %s10188_s15, 12288, %s612_s24, [#allocation10], %s8839_s23, %s8839_s23, %s8840_s29  }
  0xac   : > { %s8843_s22 = smov [#allocation14]   ;;  %s8753_s26 = scalar_lea.hbm %s10190_s17, 2048 }
  0xad   : > { %s635_s12 = sshll.u32 %s8843_s22, 4  ;;  %p8754_p3 = scmp.ne.s32.totalorder %s10190_s17, %s8753_s26  ;;  %s636_s12 = int_to_ptr.vmem [resolvable:$true] %s635_s12 }
  0xae   : > { %p8760_p5 = scmp.lt.u32.totalorder %s8753_s26, %s10190_s17 }
  0xaf   : > { %p8756_p4 = pnand %p8754_p3, %p9001_p8 }
  0xb1   : > { %p8757_p1 = pneg %p8756_p4 }
  0xb3   : > { %p8762_p7 = pnand %p8760_p5, %p8757_p1 }
  0xb5   : > { %8765 = shalt.err (!%p8762_p7)
}
  0xb6   : > { %s8766_s23 = scalar_lea.vmem %s636_s12, 2048  ;;  %p8774_p11 = scmp.lt.s32.totalorder %s636_s12, %s636_s12 }
  0xb7   : > { %p8767_p9 = scmp.ne.s32.totalorder %s636_s12, %s8766_s23  ;;  %p8775_p12 = scmp.lt.s32.totalorder %s8766_s23, %s8766_s23 }
  0xb9   : > { %p8769_p10 = pnand %p8767_p9, %p9001_p8  ;;  %p8776_p13 = por %p8775_p12, %p8774_p11 }
  0xbb   : > { %p8770_p2 = pneg %p8769_p10 }
  0xbd   : > { %p8777_p0 = pnand %p8776_p13, %p8770_p2 }
  0xbf   : > { %8780 = shalt.err (!%p8777_p0)
}
  0xc0   : > { %s8844_s29 = smov 64   ;;  %s8845_s24 = smov 4  }
  0xc1   : > { %7570 = dma.hbm_to_vmem [thread:$0]  (!%p8985_p6), %s10190_s17, 2048, %s636_s12, [#allocation13], %s8844_s29, %s8844_s29, %s8845_s24  }
  0xc2   : > { %p10220_p3 = scmp.ne.s32.totalorder %s10214_s3, 0 }
  0xc3   : > { %p10221_p4 = scmp.eq.s32.totalorder (!%p10220_p3), %s8967_s27, 0 }
  0xc4   : > { %669 = sbr.rel (%p10220_p3) target bundleno = 2001 (0x7d1), region = 96 }
  0xcb   : > { %8812 = dma.done.wait (%p10221_p4), [#allocation4], 9600   ;;  %p10222_p8 = pmov %p10221_p4 }
  0xcc   : > { %p10223_p1 = pmov %p10221_p4 }
  0xcd   : > { %8814 = vsyncadd (%p10222_p8), [#allocation4], 4294957696 }
  0xce   : > { %8816 = dma.done.wait (%p10223_p1), [#allocation7], 31584   ;;  %p10224_p5 = pmov %p10223_p1 }
  0xcf   : > { %p10225_p7 = pmov %p10223_p1 }
  0xd0   : > { %8818 = vsyncadd (%p10224_p5), [#allocation7], 4294935712 }
  0xd1   : > { %8820 = dma.done.wait (%p10225_p7), [#allocation10], 12384   ;;  %p10226_p6 = pmov %p10223_p1 }
  0xd2   : > { %p10227_p9 = pmov %p10223_p1 }
  0xd3   : > { %8822 = vsyncadd (%p10226_p6), [#allocation10], 4294954912 }
  0xd4   : > { %8824 = dma.done.wait (%p10227_p9), [#allocation13], 2144   ;;  %p10228_p10 = pmov %p10223_p1 }
  0xd5   : > { %p760_p2 = scmp.lt.s32.totalorder %s8967_s27, 7  ;;  %s10229_s22 = sld [smem:[#allocation26_spill]] }
  0xd6   : > { %8826 = vsyncadd (%p10228_p10), [#allocation13], 4294965152  ;;  %s10230_s1 = sld [smem:[#allocation22_spill]]  ;;  %p10231_p11 = scmp.ne.s32.totalorder %s8967_s27, 0 }
  0xd7   : > { %s761_s3 = scalar_select %p760_p2, %s8967_s27, 7 }
  0xd8   : > { %781 = sbr.rel (%p10231_p11) target bundleno = 227 (0xe3), region = 128 }
  0xd9   : > { %s7516_s30 = smul.u32 6, %s761_s3  ;;  %s9174_s0 = sshll.u32 %s761_s3, 2 }
  0xda   : > { %s772_s26 = scalar_lea.vmem %s10192_s19, %s9174_s0  ;;  %s776_s24 = scalar_lea.vmem %s10194_s21, %s9174_s0 }
  0xdb   : > { %s768_s12 = scalar_lea.vmem %s10229_s22, %s9174_s0  ;;  %s10232_s3 = sld [smem:[#allocation24_spill]] (!%p10231_p11) }
  0xdc   : > { %s9187_s25 = scalar_lea.vmem %s10230_s1, %s7516_s30 }
  0xe1   : > { %v782_v0 = vld [vmem:[%s10232_s3] sm:$0xff] }
  0xe2   : > { %783 = vst [vmem:[#allocation2] sm:$0xff] %v782_v0 }
  0xe3 PF: > { %v7611_v1 = vld [vmem:[%s10179_s6] sm:$0xff]   ;;  %v8846_v2 = vmov 0   ;;  %s10233_s14 = sld [smem:[#allocation27_spill]]  ;;  %v7614_v5 = vld [vmem:[%s10179_s6 + $0x8] sm:$0xff]   ;;  %v7617_v8 = vld [vmem:[%s10179_s6 + $0x10] sm:$0xff]   ;;  %v969_v22 = vlaneseq  ;;  %vm916_vm0 = vcmask 179200  }
  0xe4   : > { %924 = vmatprep.subr.bf16.mxu0 %v8846_v2  ;;  %v7620_v11 = vld [vmem:[%s10179_s6 + $0x18] sm:$0xff]   ;;  %v7623_v15 = vld [vmem:[%s10179_s6 + $0x20] sm:$0xff]   ;;  %v7626_v18 = vld [vmem:[%s10179_s6 + $0x28] sm:$0xff]   ;;  %v8847_v26 = vmov 1983009808   ;;  %s10234_s5 = sld [smem:[#allocation23_spill]] }
  0xe5   : > { %925 = vmatpush1.bf16.msra.mxu0 %v7611_v1  ;;  %v7629_v21 = vld [vmem:[%s10179_s6 + $0x30] sm:$0xff]   ;;  %v7632_v25 = vld [vmem:[%s10179_s6 + $0x38] sm:$0xff]   ;;  %v967_v27 = vunpack.c.l.s4 %v8847_v26  ;;  %v9274_v28 = vshrl.u32 %v969_v22, 7  ;;  %v790_v32 = vld [vmem:[%s9187_s25] sm:$0x3f]  ;;  %vm920_vm1 = vcmask 1042432  }
  0xe6   : > { %926 = vmatprep.subr.bf16.mxu0 %v8846_v2  ;;  %v7637_v33 = vld [vmem:[%s10179_s6 + $0x48] ss:$0 sps:$4 sm:$0x77]   ;;  %v7635_v35 = vld [vmem:[%s10179_s6 + $0x40] sm:$0xff]   ;;  %v8848_v38 = vmov 0.0   ;;  %vm1100_vm2 = vcmask 1045504   ;;  %v965_v47 = vcombine.high %v790_v32, %v790_v32 }
  0xe7   : > { %v968_v30 = vunpack.c.0.s8 %v967_v27  ;;  %v922_v41 = vsel %vm920_vm1, %v7637_v33, 0  ;;  %v7639_v42 = vld [vmem:[%s10180_s7 + $0x40] sm:$0xff]   ;;  %v7642_v46 = vld [vmem:[%s10180_s7 + $0x48] sm:$0xff]   ;;  %vm8849_vm3 = vmmov 0   ;;  %v7645_v50 = vld [vmem:[%s10180_s7 + $0x50] sm:$0xff]   ;;  %vm1096_vm4 = vcmask 359424  }
  0xe8   : > { %v7640_v44 = vld [vmem:[%s10180_s7] sm:$0xff]   ;;  %v7644_v48 = vld [vmem:[%s10180_s7 + $0x8] sm:$0xff]   ;;  %v7646_v51 = vld [vmem:[%s10180_s7 + $0x10] sm:$0xff]   ;;  %vm1364_vm6 = vcmask 84992   ;;  %vm3444_vm7 = vcmask 1043456   ;;  %s10236_s22 = sld [smem:[#allocation25_spill]] }
  0xe9   : > { %v7612_v3 = vld [vmem:[%s10233_s14 + $0x40] sm:$0xff]   ;;  %v7615_v6 = vld [vmem:[%s10233_s14 + $0x48] sm:$0xff]   ;;  %927 = vmatpush1.bf16.msra.mxu0 %v7614_v5  ;;  %v7618_v9 = vld [vmem:[%s10233_s14 + $0x50] sm:$0xff]   ;;  %v971_v36 = vsub.s32 %v968_v30, %v9274_v28  ;;  %vm1470_vm8 = vcmask 583680   ;;  %vm1468_vm9 = vcmask 588800   ;;  %vm3054_vm10 = vcmask 1041409  }
  0xea   : > { %v7613_v4 = vld [vmem:[%s10233_s14] sm:$0xff]   ;;  %7404 = vmatprep.subr.bf16.mxu1 %v7612_v3  ;;  %v7616_v7 = vld [vmem:[%s10233_s14 + $0x8] sm:$0xff]   ;;  %928 = vmatprep.subr.bf16.mxu0 %v8846_v2  ;;  %v7619_v10 = vld [vmem:[%s10233_s14 + $0x10] sm:$0xff]   ;;  %vm3056_vm11 = vcmask 1042434   ;;  %vm3058_vm12 = vcmask 1043459   ;;  %vm5144_vm13 = vcmask 80896  }
  0xeb   : > { %7405 = vmatpush3.bf16.msra.mxu1 %v7613_v4  ;;  %v7621_v12 = vld [vmem:[%s10233_s14 + $0x58] sm:$0xff]   ;;  %v7624_v14 = vld [vmem:[%s10233_s14 + $0x60] sm:$0xff]   ;;  %v7627_v17 = vld [vmem:[%s10233_s14 + $0x68] sm:$0xff]   ;;  %v9296_v37 = vrot.slane %v790_v32, %v971_v36  ;;  %v9334_v52 = vrot.slane %v965_v47, %v971_v36  ;;  %vm5148_vm14 = vcmask 1044480   ;;  %s10237_s20 = sld [smem:[#allocation31_spill]]  ;;  %p7399_p12 = scmp.ne.s32.totalorder %s8967_s27, 7 }
  0xec   : > { %7406 = vmatprep.subr.bf16.mxu1 %v7615_v6  ;;  %v7622_v13 = vld [vmem:[%s10233_s14 + $0x18] sm:$0xff]   ;;  %v7625_v16 = vld [vmem:[%s10233_s14 + $0x20] sm:$0xff]   ;;  %v7628_v19 = vld [vmem:[%s10233_s14 + $0x28] sm:$0xff]  }
  0xed   : > { %929 = vmatpush1.bf16.msra.mxu0 %v7617_v8  ;;  %v7630_v20 = vld [vmem:[%s10233_s14 + $0x70] sm:$0xff]   ;;  %v7633_v24 = vld [vmem:[%s10233_s14 + $0x78] sm:$0xff]   ;;  %v6711_v31 = vld.sshfl [vmem:[%s10234_s5] sm:$0x33 pattern:$0x76325410]  ;;  %v9300_v39 = vcombine.high %v9296_v37, %v9296_v37 }
  0xee   : > { %930 = vmatprep.subr.bf16.mxu0 %v8846_v2  ;;  %v7631_v23 = vld [vmem:[%s10233_s14 + $0x30] sm:$0xff]   ;;  %v7634_v29 = vld [vmem:[%s10233_s14 + $0x38] sm:$0xff]   ;;  %v9287_v34 = vcombine.high %v6711_v31, %v6711_v31  ;;  %v7636_v40 = vld [vmem:[%s10233_s14 + $0x80] sm:$0xff]  }
  0xef   : > { %7407 = vmatpush3.bf16.msra.mxu1 %v7616_v7  ;;  %1136 = vmatprep.mubr.bf16.mxu1 %v9300_v39  ;;  %v7638_v43 = vld [vmem:[%s10233_s14 + $0x88] sm:$0xff]   ;;  %v7641_v45 = vld [vmem:[%s10233_s14 + $0x90] sm:$0x3f]   ;;  %v7647_v53 = vld [vmem:[%s10180_s7 + $0x58] sm:$0xff]  }
  0xf0   : > { %7408 = vmatprep.subr.bf16.mxu1 %v7618_v9  ;;  %6722 = vmatprep.mubr.msk.bf16.mxu0 %vm916_vm0, %v9287_v34  ;;  %v1102_v49 = vsel %vm1100_vm2, %v7641_v45, 0  ;;  %v784_v54 = vld [vmem:[#allocation2] sm:$0xff]  ;;  %v7648_v56 = vld [vmem:[%s10180_s7 + $0x18] sm:$0xff]   ;;  %v7651_v60 = vld [vmem:[%s10180_s7 + $0x68] sm:$0xff]  }
  0xf1   : > { %931 = vmatpush1.bf16.msra.mxu0 %v7620_v11  ;;  %v9339_v55 = vcombine.high %v784_v54, %v784_v54  ;;  %v7649_v57 = vld [vmem:[%s10180_s7 + $0x60] sm:$0xff]   ;;  %v7652_v61 = vld [vmem:[%s10180_s7 + $0x28] sm:$0xff]   ;;  %v7653_v62 = vld [vmem:[%s10180_s7 + $0x70] sm:$0xff]   ;;  %v9377_v3 = vpack.c.bf16 %v784_v54, %v784_v54 }
  0xf2   : > { %932 = vmatprep.subr.bf16.mxu0 %v8846_v2  ;;  %v7650_v59 = vld [vmem:[%s10180_s7 + $0x20] sm:$0xff]   ;;  %v7654_v63 = vld [vmem:[%s10180_s7 + $0x30] sm:$0xff]   ;;  %v7655_v0 = vld [vmem:[%s10180_s7 + $0x78] sm:$0xff]  }
  0xf3   : > { %7409 = vmatpush3.bf16.msra.mxu1 %v7619_v10  ;;  %v9351_v58 = vpack.c.bf16 %v9339_v55, %v9339_v55  ;;  %v7656_v1 = vld [vmem:[%s10180_s7 + $0x38] sm:$0xff]   ;;  %v7660_v32 = vld [vmem:[%s10183_s10 + $0xc] ss:$24 sps:$4 sm:$0xff]  }
  0xf4   : > { %7410 = vmatprep.subr.bf16.mxu1 %v7621_v12  ;;  %v7663_v33 = vld [vmem:[%s10183_s10 + $0x3c] ss:$24 sps:$4 sm:$0xff]   ;;  %v7661_v36 = vld [vmem:[%s10183_s10 + $0x38] ss:$24 sps:$4 sm:$0xff]  }
  0xf5   : > { %933 = vmatpush1.bf16.msra.mxu0 %v7623_v15  ;;  %v7669_v45 = vld [vmem:[%s10183_s10 + $0x9c] ss:$24 sps:$4 sm:$0xff]   ;;  %v7667_v47 = vld [vmem:[%s10183_s10 + $0x98] ss:$24 sps:$4 sm:$0xff]  }
  0xf6   : > { %934 = vmatprep.subr.bf16.mxu0 %v8846_v2  ;;  %v7681_v54 = vld [vmem:[%s10183_s10 + $0xfc] ss:$24 sps:$4 sm:$0xff]  }
  0xf7   : > { %7411 = vmatpush3.bf16.msra.mxu1 %v7622_v13 }
  0xf8   : > { %7412 = vmatprep.subr.bf16.mxu1 %v7624_v14 }
  0xf9   : > { %935 = vmatpush1.bf16.msra.mxu0 %v7626_v18 }
  0xfa   : > { %936 = vmatprep.subr.bf16.mxu0 %v8846_v2 }
  0xfb   : > { %7413 = vmatpush3.bf16.msra.mxu1 %v7625_v16 }
  0xfc   : > { %7414 = vmatprep.subr.bf16.mxu1 %v7627_v17 }
  0xfd   : > { %937 = vmatpush1.bf16.msra.mxu0 %v7629_v21 }
  0xfe   : > { %938 = vmatprep.subr.bf16.mxu0 %v8846_v2 }
  0xff   : > { %7415 = vmatpush3.bf16.msra.mxu1 %v7628_v19 }
 0x100   : > { %7416 = vmatprep.subr.bf16.mxu1 %v7630_v20 }
 0x101   : > { %939 = vmatpush1.bf16.msra.mxu0 %v7632_v25  ;;  %v6759_v25 = vld [vmem:[%s10181_s8] ss:$0 sm:$0xff] }
 0x102   : > { %940 = vmatprep.subr.bf16.mxu0 %v8846_v2 }
 0x103   : > { %7417 = vmatpush3.bf16.msra.mxu1 %v7631_v23  ;;  %v1361_v23 = vld [vmem:[%s768_s12] sm:$0xf] }
 0x104   : > { %7418 = vmatprep.subr.bf16.mxu1 %v7633_v24  ;;  %vm1362_vm5 = vcmp.ne.s32.totalorder %v1361_v23, 0  ;;  %v9527_v23 = vld.sshfl [vmem:[%s10234_s5] sm:$0x33 pattern:$0x76325410] }
 0x105   : > { %941 = vmatpush1.bf16.msra.mxu0 %v7635_v35  ;;  %v7670_v35 = vld [vmem:[%s10183_s10] ss:$24 sps:$4 sm:$0xff]  }
 0x106   : > { %942 = vmatprep.subr.bf16.mxu0 %v8846_v2 }
 0x107   : > { %7419 = vmatpush3.bf16.msra.mxu1 %v7634_v29 }
 0x108   : > { %7474 = vmatprep.subr.bf16.mxu1 %v8848_v38 }
 0x109   : > { %943 = vmatpush1.bf16.msra.mxu0 %v922_v41  ;;  %v7678_v41 = vld [vmem:[%s10183_s10 + $0x34] ss:$24 sps:$4 sm:$0xff]  }
 0x10a   : > { %1137 = vmatmul.mubr.bf16.vlgmr.msra.gmra.mrb[0].mxu1 %v9296_v37  ;;  %7430 = vmatprep.subr.bf16.mxu0 %v7639_v42  ;;  %v7676_v42 = vld [vmem:[%s10183_s10 + $0x30] ss:$24 sps:$4 sm:$0xff]  }
 0x10b   : > { %7475 = vmatpush3.bf16.msra.mxu1 %v7636_v40  ;;  %7480 = vmatprep.mubr.msk.bf16.mxu1 %vm8849_vm3, %v8848_v38  ;;  %v7666_v40 = vld [vmem:[%s10183_s10 + $0x6c] ss:$24 sps:$4 sm:$0xff]  }
 0x10c   : > { %7476 = vmatprep.subr.bf16.mxu1 %v8848_v38  ;;  %957 = vmatmul.mubr.bf16.vlgmr.msra.gmra.mrb[0].mxu0 %v6711_v31  ;;  %v7658_v31 = vld [vmem:[%s10183_s10 + $0x8] ss:$24 sps:$4 sm:$0xff]  }
 0x10d   : > { %7431 = vmatpush3.bf16.msra.mxu0 %v7640_v44  ;;  %1344 = vmatprep.mubr.bf16.mxu0 %v9351_v58  ;;  %v7684_v44 = vld [vmem:[%s10183_s10 + $0x64] ss:$24 sps:$4 sm:$0xff]  }
 0x10e   : > { %7432 = vmatprep.subr.bf16.mxu0 %v7642_v46  ;;  %v7682_v46 = vld [vmem:[%s10183_s10 + $0x60] ss:$24 sps:$4 sm:$0xff]  }
 0x10f   : > { %7477 = vmatpush3.bf16.msra.mxu1 %v7638_v43  ;;  %v7664_v43 = vld [vmem:[%s10183_s10 + $0x68] ss:$24 sps:$4 sm:$0xff]  }
 0x110   : > { %7478 = vmatprep.subr.bf16.mxu1 %v8848_v38  ;;  %v7672_v38 = vld [vmem:[%s10183_s10 + $0x4] ss:$24 sps:$4 sm:$0xff]  }
 0x111   : > { %7433 = vmatpush3.bf16.msra.mxu0 %v7644_v48  ;;  %v7690_v48 = vld [vmem:[%s10183_s10 + $0x94] ss:$24 sps:$4 sm:$0xff]  }
 0x112   : > { %7434 = vmatprep.subr.bf16.mxu0 %v7645_v50  ;;  %v7688_v50 = vld [vmem:[%s10183_s10 + $0x90] ss:$24 sps:$4 sm:$0xff]  }
 0x113   : > { %7479 = vmatpush3.bf16.msra.mxu1 %v1102_v49  ;;  %v7675_v49 = vld [vmem:[%s10183_s10 + $0xcc] ss:$24 sps:$4 sm:$0xff]  }
 0x114   : > { %2004 = vmatprep.subr.bf16.mxu1 %v7672_v38  ;;  %v7733_v38 = vld [vmem:[%s10182_s9 + $0xc4] ss:$24 sps:$4 sm:$0xff]  }
 0x115   : > { %7435 = vmatpush3.bf16.msra.mxu0 %v7646_v51  ;;  %v7673_v51 = vld [vmem:[%s10183_s10 + $0xc8] ss:$24 sps:$4 sm:$0xff]  }
 0x116   : > { %7481 = vmatmul.mubr.msk.bf16.vlgmr.msra.gmra.mrb[4].mxu1 %vm1096_vm4, %v9334_v52  ;;  %7436 = vmatprep.subr.bf16.mxu0 %v7647_v53  ;;  %v7696_v53 = vld [vmem:[%s10183_s10 + $0xc4] ss:$24 sps:$4 sm:$0xff]  }
 0x117   : > { %6821 = vmatprep.mubr.msk.bf16.mxu1 %vm916_vm0, %v9287_v34  ;;  %2005 = vmatpush1.bf16.msra.mxu1 %v7670_v35  ;;  %v7725_v35 = vld [vmem:[%s10182_s9 + $0x90] ss:$24 sps:$4 sm:$0xff]  }
 0x118   : > { %2006 = vmatprep.subr.bf16.mxu1 %v7678_v41  ;;  %v7731_v41 = vld [vmem:[%s10182_s9 + $0xc0] ss:$24 sps:$4 sm:$0xff]  }
 0x119   : > { %7437 = vmatpush3.bf16.msra.mxu0 %v7648_v56  ;;  %v7694_v56 = vld [vmem:[%s10183_s10 + $0xc0] ss:$24 sps:$4 sm:$0xff]  }
 0x11a   : > { %7438 = vmatprep.subr.bf16.mxu0 %v7649_v57  ;;  %v7679_v57 = vld [vmem:[%s10183_s10 + $0xf8] ss:$24 sps:$4 sm:$0xff]  }
 0x11b   : > { %2007 = vmatpush1.bf16.msra.mxu1 %v7676_v42  ;;  %v7754_v42 = vld [vmem:[%s10183_s10 + $0xd4] ss:$24 sps:$4 sm:$0xff]  }
 0x11c   : > { %2008 = vmatprep.subr.bf16.mxu1 %v7684_v44  ;;  %v7752_v44 = vld [vmem:[%s10183_s10 + $0xd0] ss:$24 sps:$4 sm:$0xff]  }
 0x11d   : > { %7439 = vmatpush3.bf16.msra.mxu0 %v7650_v59  ;;  %v7702_v59 = vld [vmem:[%s10183_s10 + $0xf4] ss:$24 sps:$4 sm:$0xff]  }
 0x11e   : > { %7440 = vmatprep.subr.bf16.mxu0 %v7651_v60  ;;  %v7687_v60 = vld [vmem:[%s10183_s10 + $0x12c] ss:$24 sps:$4 sm:$0xff]  }
 0x11f   : > { %2009 = vmatpush1.bf16.msra.mxu1 %v7682_v46  ;;  %v7760_v46 = vld [vmem:[%s10183_s10 + $0x104] ss:$24 sps:$4 sm:$0xff]  }
 0x120   : > { %2010 = vmatprep.subr.bf16.mxu1 %v7690_v48  ;;  %v7758_v48 = vld [vmem:[%s10183_s10 + $0x100] ss:$24 sps:$4 sm:$0xff]  }
 0x121   : > { %7441 = vmatpush3.bf16.msra.mxu0 %v7652_v61  ;;  %v7700_v61 = vld [vmem:[%s10183_s10 + $0xf0] ss:$24 sps:$4 sm:$0xff]  }
 0x122   : > { %7442 = vmatprep.subr.bf16.mxu0 %v7653_v62  ;;  %v7685_v62 = vld [vmem:[%s10183_s10 + $0x128] ss:$24 sps:$4 sm:$0xff]  }
 0x123   : > { %2011 = vmatpush1.bf16.msra.mxu1 %v7688_v50  ;;  %v7766_v50 = vld [vmem:[%s10183_s10 + $0x134] ss:$24 sps:$4 sm:$0xff]  }
 0x124   : > { %2012 = vmatprep.subr.bf16.mxu1 %v7696_v53  ;;  %v7764_v53 = vld [vmem:[%s10183_s10 + $0x130] ss:$24 sps:$4 sm:$0xff]  }
 0x125   : > { %7443 = vmatpush3.bf16.msra.mxu0 %v7654_v63  ;;  %v7707_v63 = vld [vmem:[%s10183_s10 + $0x124] ss:$24 sps:$4 sm:$0xff]  }
 0x126   : > { %7444 = vmatprep.subr.bf16.mxu0 %v7655_v0  ;;  %v7693_v0 = vld [vmem:[%s10183_s10 + $0x15c] ss:$24 sps:$4 sm:$0xff]  }
 0x127   : > { %2013 = vmatpush1.bf16.msra.mxu1 %v7694_v56  ;;  %v7772_v56 = vld [vmem:[%s10183_s10 + $0x164] ss:$24 sps:$4 sm:$0xff]  }
 0x128   : > { %2014 = vmatprep.subr.bf16.mxu1 %v7702_v59  ;;  %v7770_v59 = vld [vmem:[%s10183_s10 + $0x160] ss:$24 sps:$4 sm:$0xff]  }
 0x129   : > { %7445 = vmatpush3.bf16.msra.mxu0 %v7656_v1  ;;  %v7705_v1 = vld [vmem:[%s10183_s10 + $0x120] ss:$24 sps:$4 sm:$0xff]  }
 0x12a   : > { %2045 = vmatprep.subr.bf16.mxu0 %v7660_v32  ;;  %v7742_v32 = vld [vmem:[%s10183_s10 + $0x74] ss:$24 sps:$4 sm:$0xff]  }
 0x12b   : > { %2015 = vmatpush1.bf16.msra.mxu1 %v7700_v61  ;;  %v7778_v61 = vld [vmem:[%s10183_s10 + $0x194] ss:$24 sps:$4 sm:$0xff]  }
 0x12c   : > { %1345 = vmatmul.mubr.bf16.vlgmr.msra.gmra.mrb[4].mxu0 %v9377_v3  ;;  %2016 = vmatprep.subr.bf16.mxu1 %v7707_v63  ;;  %v1700_v63 = vld [vmem:[%s10183_s10 + $0x1c0] sm:$0x77] }
 0x12d   : > { %6823 = vmatprep.mubr.msk.bf16.mxu0 %vm916_vm0, %v9287_v34  ;;  %2046 = vmatpush1.bf16.msra.mxu0 %v7658_v31  ;;  %v7720_v31 = vld [vmem:[%s10182_s9 + $0x60] ss:$24 sps:$4 sm:$0xff]  }
 0x12e   : > { %2047 = vmatprep.subr.bf16.mxu0 %v7663_v33  ;;  %v7727_v33 = vld [vmem:[%s10182_s9 + $0x94] ss:$24 sps:$4 sm:$0xff]  }
 0x12f   : > { %2017 = vmatpush1.bf16.msra.mxu1 %v7705_v1  ;;  %v7761_v1 = vld [vmem:[%s10182_s9 + $0x1b0] ss:$24 sps:$4 sm:$0xff]  }
 0x131   : > { %2048 = vmatpush1.bf16.msra.mxu0 %v7661_v36  ;;  %v7748_v36 = vld [vmem:[%s10183_s10 + $0xa4] ss:$24 sps:$4 sm:$0xff]  }
 0x132   : > { %2049 = vmatprep.subr.bf16.mxu0 %v7666_v40  ;;  %v7746_v40 = vld [vmem:[%s10183_s10 + $0xa0] ss:$24 sps:$4 sm:$0xff]  }
 0x135   : > { %2050 = vmatpush1.bf16.msra.mxu0 %v7664_v43  ;;  %v7739_v43 = vld [vmem:[%s10182_s9 + $0xf4] ss:$24 sps:$4 sm:$0xff]  }
 0x136   : > { %2051 = vmatprep.subr.bf16.mxu0 %v7669_v45  ;;  %v7737_v45 = vld [vmem:[%s10182_s9 + $0xf0] ss:$24 sps:$4 sm:$0xff]  }
 0x139   : > { %2052 = vmatpush1.bf16.msra.mxu0 %v7667_v47  ;;  %v7745_v47 = vld [vmem:[%s10182_s9 + $0x124] ss:$24 sps:$4 sm:$0xff]  }
 0x13a   : > { %2053 = vmatprep.subr.bf16.mxu0 %v7675_v49  ;;  %v7743_v49 = vld [vmem:[%s10182_s9 + $0x120] ss:$24 sps:$4 sm:$0xff]  }
 0x13d   : > { %2054 = vmatpush1.bf16.msra.mxu0 %v7673_v51  ;;  %v7751_v51 = vld [vmem:[%s10182_s9 + $0x154] ss:$24 sps:$4 sm:$0xff]  }
 0x13e   : > { %2055 = vmatprep.subr.bf16.mxu0 %v7681_v54  ;;  %v7749_v54 = vld [vmem:[%s10182_s9 + $0x150] ss:$24 sps:$4 sm:$0xff]  }
 0x141   : > { %2056 = vmatpush1.bf16.msra.mxu0 %v7679_v57  ;;  %v7757_v57 = vld [vmem:[%s10182_s9 + $0x184] ss:$24 sps:$4 sm:$0xff]  }
 0x142   : > { %2057 = vmatprep.subr.bf16.mxu0 %v7687_v60  ;;  %v7755_v60 = vld [vmem:[%s10182_s9 + $0x180] ss:$24 sps:$4 sm:$0xff]  }
 0x145   : > { %2058 = vmatpush1.bf16.msra.mxu0 %v7685_v62  ;;  %v7763_v62 = vld [vmem:[%s10182_s9 + $0x1b4] ss:$24 sps:$4 sm:$0xff]  }
 0x146   : > { %2059 = vmatprep.subr.bf16.mxu0 %v7693_v0  ;;  %v7776_v0 = vld [vmem:[%s10183_s10 + $0x190] ss:$24 sps:$4 sm:$0xff]  }
 0x1dd   : > { %v7420_v4 = vpop.f32.mrb[0].mxu1 }
 0x1de   : > { %v7421_v5 = vpop.f32.mrb[1].mxu1 }
 0x1df   : > { %v7422_v6 = vadd.f32 %v7421_v5, %v7420_v4  ;;  %v7423_v7 = vpop.f32.mrb[2].mxu1  ;;  %v958_v9 = vpop.f32.mrb[0].mxu0  ;;  %v7691_v4 = vld [vmem:[%s10183_s10 + $0x158] ss:$24 sps:$4 sm:$0xff]   ;;  %v7713_v5 = vld [vmem:[%s10183_s10 + $0x154] ss:$24 sps:$4 sm:$0xff]  }
 0x1e0   : > { %v7424_v8 = vpop.f32.mrb[3].mxu1  ;;  %v960_v11 = vpop.f32.mrb[1].mxu0  ;;  %v1699_v7 = vld [vmem:[%s10183_s10 + $0x1b8] sm:$0x77]  ;;  %2060 = vmatpush1.bf16.msra.mxu0 %v7691_v4  ;;  %2018 = vmatprep.subr.bf16.mxu1 %v7713_v5  ;;  %v6819_v4 = vcombine.high %v1700_v63, %v1700_v63  ;;  %v6818_v5 = vcombine.low %v1700_v63, %v1700_v63  ;;  %v7832_v63 = vld [vmem:[%s10182_s9 + $0x70] ss:$24 sps:$4 sm:$0xff]  }
 0x1e1   : > { %v1139_v10 = vadd.f32 %v7422_v6, %v958_v9  ;;  %v961_v12 = vpop.f32.mrb[2].mxu0  ;;  %v7699_v6 = vld [vmem:[%s10183_s10 + $0x18c] ss:$24 sps:$4 sm:$0xff]   ;;  %v7711_v8 = vld [vmem:[%s10183_s10 + $0x150] ss:$24 sps:$4 sm:$0xff]   ;;  %v6817_v11 = vcombine.high %v1699_v7, %v1699_v7 }
 0x1e2   : > { %v962_v13 = vpop.f32.mrb[3].mxu0  ;;  %v7697_v9 = vld [vmem:[%s10183_s10 + $0x188] ss:$24 sps:$4 sm:$0xff]   ;;  %2061 = vmatprep.subr.bf16.mxu0 %v7699_v6  ;;  %v6816_v12 = vcombine.low %v1699_v7, %v1699_v7  ;;  %2019 = vmatpush1.bf16.msra.mxu1 %v7711_v8  ;;  %v7769_v6 = vld [vmem:[%s10182_s9 + $0x1e4] ss:$24 sps:$4 sm:$0xff]   ;;  %v1999_v8 = vsel %vm920_vm1, %v6818_v5, 0 }
 0x1e3   : > { %v1698_v13 = vld [vmem:[%s10183_s10 + $0x1b0] sm:$0x77]  ;;  %v7767_v7 = vld [vmem:[%s10182_s9 + $0x1e0] ss:$24 sps:$4 sm:$0xff]  }
 0x1e4   : > { %2062 = vmatpush1.bf16.msra.mxu0 %v7697_v9  ;;  %v7789_v9 = vld [vmem:[%s10182_s9 + $0x304] ss:$24 sps:$4 sm:$0xff]  }
 0x1e5   : > { %6822 = vmatprep.subr.msk.bf16.mxu0 %vm920_vm1, %v6817_v11  ;;  %v7787_v11 = vld [vmem:[%s10182_s9 + $0x300] ss:$24 sps:$4 sm:$0xff]  }
 0x1e9   : > { %v1178_v14 = vpop.f32.mrb[4].mxu1 }
 0x1ea   : > { %v1179_v15 = vadd.f32 %v1178_v14, %v1139_v10  ;;  %v7482_v16 = vpop.f32.mrb[5].mxu1  ;;  %v7719_v10 = vld [vmem:[%s10183_s10 + $0x184] ss:$24 sps:$4 sm:$0xff]   ;;  %v7717_v14 = vld [vmem:[%s10183_s10 + $0x180] ss:$24 sps:$4 sm:$0xff]  }
 0x1eb   : > { %v1181_v17 = vpop.f32.mrb[6].mxu1  ;;  %2020 = vmatprep.subr.bf16.mxu1 %v7719_v10  ;;  %v6814_v16 = vcombine.low %v1698_v13, %v1698_v13  ;;  %v7775_v10 = vld [vmem:[%s10182_s9 + $0x214] ss:$24 sps:$4 sm:$0xff]  }
 0x1ec   : > { %v7483_v18 = vpop.f32.mrb[7].mxu1  ;;  %v1993_v17 = vsel %vm920_vm1, %v6816_v12, 0  ;;  %2021 = vmatpush1.bf16.msra.mxu1 %v7717_v14  ;;  %v7773_v12 = vld [vmem:[%s10182_s9 + $0x210] ss:$24 sps:$4 sm:$0xff]   ;;  %v7781_v14 = vld [vmem:[%s10182_s9 + $0x244] ss:$24 sps:$4 sm:$0xff]  }
 0x1ed   : > { %v7710_v18 = vld [vmem:[%s10182_s9 + $0x4] ss:$24 sps:$4 sm:$0xff]   ;;  %2064 = vmatpush1.bf16.msra.mxu0 %v1993_v17 }
 0x1ee   : > { %2709 = vmatprep.subr.bf16.mxu0 %v7710_v18  ;;  %v7799_v17 = vld [vmem:[%s10182_s9 + $0x364] ss:$24 sps:$4 sm:$0x3f]   ;;  %v7801_v18 = vld [vmem:[%s10182_s9 + $0x360] ss:$24 sps:$4 sm:$0x3f]  }
 0x1f0   : > { %2078 = vmatmul.mubr.bf16.vlgmr.msra.gmra.mrb[8].mxu0 %v9527_v23 }
 0x1f1   : > { %2741 = vmatprep.mubr.bf16.mxu0 %v9300_v39 }
 0x1ff   : > { %v7446_v19 = vpop.f32.mrb[4].mxu0 }
 0x200   : > { %v7447_v20 = vpop.f32.mrb[5].mxu0 }
 0x201   : > { %v7448_v21 = vadd.f32 %v7447_v20, %v7446_v19  ;;  %v7449_v22 = vpop.f32.mrb[6].mxu0  ;;  %v7708_v19 = vld [vmem:[%s10182_s9] ss:$24 sps:$4 sm:$0xff]   ;;  %v1987_v20 = vsel %vm920_vm1, %v6814_v16, 0  ;;  %v7793_v16 = vld [vmem:[%s10182_s9 + $0x330] ss:$24 sps:$4 sm:$0xff]  }
 0x202   : > { %v7450_v24 = vpop.f32.mrb[7].mxu0  ;;  %v7716_v22 = vld [vmem:[%s10182_s9 + $0x34] ss:$24 sps:$4 sm:$0xff]   ;;  %2710 = vmatpush1.bf16.msra.mxu0 %v7708_v19 }
 0x203   : > { %v1352_v26 = vadd.f32 %v7448_v21, %v1179_v15  ;;  %v6815_v15 = vcombine.high %v1698_v13, %v1698_v13  ;;  %v7730_v21 = vld [vmem:[%s10183_s10 + $0x14] ss:$24 sps:$4 sm:$0xff]   ;;  %v7728_v24 = vld [vmem:[%s10183_s10 + $0x10] ss:$24 sps:$4 sm:$0xff]   ;;  %2711 = vmatprep.subr.bf16.mxu0 %v7716_v22 }
 0x204   : > { %v7795_v13 = vld [vmem:[%s10182_s9 + $0x334] ss:$24 sps:$4 sm:$0xff]  }
 0x205   : > { %v1360_v27 = vadd.f32 %v6759_v25, %v1352_v26  ;;  %6820 = vmatprep.subr.msk.bf16.mxu1 %vm920_vm1, %v6815_v15  ;;  %v7714_v25 = vld [vmem:[%s10182_s9 + $0x30] ss:$24 sps:$4 sm:$0xff]   ;;  %v7736_v26 = vld [vmem:[%s10183_s10 + $0x44] ss:$24 sps:$4 sm:$0xff]   ;;  %v7779_v15 = vld [vmem:[%s10182_s9 + $0x240] ss:$24 sps:$4 sm:$0xff]  }
 0x206   : > { %2023 = vmatpush1.bf16.msra.mxu1 %v1987_v20  ;;  %2712 = vmatpush1.bf16.msra.mxu0 %v7714_v25  ;;  %v7786_v19 = vld [vmem:[%s10182_s9 + $0x274] ss:$24 sps:$4 sm:$0xff]   ;;  %v7784_v20 = vld [vmem:[%s10182_s9 + $0x270] ss:$24 sps:$4 sm:$0xff]   ;;  %v7790_v25 = vld [vmem:[%s10182_s9 + $0x2a0] ss:$24 sps:$4 sm:$0xff]  }
 0x207   : > { %v9390_v29 = vsel %vm1362_vm5, -1e+09, %v1360_v27  ;;  %2086 = vmatprep.subr.bf16.mxu1 %v7730_v21  ;;  %v7722_v27 = vld [vmem:[%s10182_s9 + $0x64] ss:$24 sps:$4 sm:$0xff]   ;;  %v2692_v21 = vsel %vm1100_vm2, %v7801_v18, 0 }
 0x208   : > { %v1365_v30 = vsel %vm1364_vm6, %v9390_v29, -inf  ;;  %2713 = vmatprep.subr.bf16.mxu0 %v7722_v27  ;;  %v7807_v22 = vld [vmem:[%s10182_s9 + $0xc] ss:$24 sps:$4 sm:$0xff]   ;;  %v7865_v18 = vld [vmem:[%s10182_s9 + $0x1e8] ss:$24 sps:$4 sm:$0xff]  }
 0x209   : > { %1366 = vmax.xlane.f32.xlu0 %v1365_v30  ;;  %2037 = vmatmul.mubr.bf16.vlgmr.msra.gmra.mrb[8].mxu1 %v9527_v23  ;;  %v7734_v30 = vld [vmem:[%s10183_s10 + $0x40] ss:$24 sps:$4 sm:$0xff]   ;;  %v7798_v27 = vld [vmem:[%s10182_s9 + $0x2d4] ss:$24 sps:$4 sm:$0xff]  }
 0x20a   : > { %2087 = vmatpush1.bf16.msra.mxu1 %v7728_v24  ;;  %6825 = vmatprep.mubr.msk.bf16.mxu1 %vm916_vm0, %v9287_v34  ;;  %v7740_v34 = vld [vmem:[%s10183_s10 + $0x70] ss:$24 sps:$4 sm:$0xff]  }
 0x20b   : > { %2088 = vmatprep.subr.bf16.mxu1 %v7736_v26  ;;  %2714 = vmatpush1.bf16.msra.mxu0 %v7720_v31  ;;  %v7805_v24 = vld [vmem:[%s10182_s9 + $0x8] ss:$24 sps:$4 sm:$0xff]   ;;  %v7813_v26 = vld [vmem:[%s10182_s9 + $0x3c] ss:$24 sps:$4 sm:$0xff]  }
 0x20c   : > { %2715 = vmatprep.subr.bf16.mxu0 %v7727_v33  ;;  %v7796_v31 = vld [vmem:[%s10182_s9 + $0x2d0] ss:$24 sps:$4 sm:$0xff]   ;;  %v7804_v33 = vld [vmem:[%s10182_s9 + $0x30c] ss:$24 sps:$4 sm:$0xff]  }
 0x20e   : > { %2089 = vmatpush1.bf16.msra.mxu1 %v7734_v30  ;;  %v7811_v30 = vld [vmem:[%s10182_s9 + $0x38] ss:$24 sps:$4 sm:$0xff]  }
 0x20f   : > { %2090 = vmatprep.subr.bf16.mxu1 %v7742_v32  ;;  %2716 = vmatpush1.bf16.msra.mxu0 %v7725_v35  ;;  %v7819_v32 = vld [vmem:[%s10182_s9 + $0x6c] ss:$24 sps:$4 sm:$0xff]   ;;  %v7802_v35 = vld [vmem:[%s10182_s9 + $0x308] ss:$24 sps:$4 sm:$0xff]  }
 0x210   : > { %2717 = vmatprep.subr.bf16.mxu0 %v7733_v38  ;;  %v7825_v38 = vld [vmem:[%s10182_s9 + $0x9c] ss:$24 sps:$4 sm:$0xff]  }
 0x212   : > { %2091 = vmatpush1.bf16.msra.mxu1 %v7740_v34  ;;  %v7817_v34 = vld [vmem:[%s10182_s9 + $0x68] ss:$24 sps:$4 sm:$0xff]  }
 0x213   : > { %2092 = vmatprep.subr.bf16.mxu1 %v7748_v36  ;;  %2718 = vmatpush1.bf16.msra.mxu0 %v7731_v41  ;;  %v7810_v36 = vld [vmem:[%s10182_s9 + $0x33c] ss:$24 sps:$4 sm:$0xff]   ;;  %v7808_v41 = vld [vmem:[%s10182_s9 + $0x338] ss:$24 sps:$4 sm:$0xff]  }
 0x214   : > { %2719 = vmatprep.subr.bf16.mxu0 %v7739_v43  ;;  %v7814_v43 = vld [vmem:[%s10182_s9 + $0x36c] ss:$24 sps:$4 sm:$0x3f]  }
 0x216   : > { %2093 = vmatpush1.bf16.msra.mxu1 %v7746_v40  ;;  %v7823_v40 = vld [vmem:[%s10182_s9 + $0x98] ss:$24 sps:$4 sm:$0xff]  }
 0x217   : > { %2094 = vmatprep.subr.bf16.mxu1 %v7754_v42  ;;  %2720 = vmatpush1.bf16.msra.mxu0 %v7737_v45  ;;  %v7831_v42 = vld [vmem:[%s10182_s9 + $0xcc] ss:$24 sps:$4 sm:$0xff]   ;;  %v7829_v45 = vld [vmem:[%s10182_s9 + $0xc8] ss:$24 sps:$4 sm:$0xff]  }
 0x218   : > { %2721 = vmatprep.subr.bf16.mxu0 %v7745_v47  ;;  %v7837_v47 = vld [vmem:[%s10182_s9 + $0xfc] ss:$24 sps:$4 sm:$0xff]  }
 0x21a   : > { %2095 = vmatpush1.bf16.msra.mxu1 %v7752_v44  ;;  %v7816_v44 = vld [vmem:[%s10182_s9 + $0x368] ss:$24 sps:$4 sm:$0x3f]  }
 0x21b   : > { %2096 = vmatprep.subr.bf16.mxu1 %v7760_v46  ;;  %2722 = vmatpush1.bf16.msra.mxu0 %v7743_v49  ;;  %v2698_v49 = vsel %vm1100_vm2, %v7816_v44, 0  ;;  %v7898_v44 = vld [vmem:[%s10182_s9 + $0x280] ss:$24 sps:$4 sm:$0xff]  }
 0x21c   : > { %2723 = vmatprep.subr.bf16.mxu0 %v7751_v51 }
 0x21e   : > { %2097 = vmatpush1.bf16.msra.mxu1 %v7758_v48 }
 0x21f   : > { %2098 = vmatprep.subr.bf16.mxu1 %v7766_v50  ;;  %2724 = vmatpush1.bf16.msra.mxu0 %v7749_v54  ;;  %v7822_v50 = vld [vmem:[%s10182_s9 + $0x14] ss:$24 sps:$4 sm:$0xff]   ;;  %v7820_v54 = vld [vmem:[%s10182_s9 + $0x10] ss:$24 sps:$4 sm:$0xff]  }
 0x220   : > { %2725 = vmatprep.subr.bf16.mxu0 %v7757_v57  ;;  %v7841_v57 = vld [vmem:[%s10182_s9 + $0x128] ss:$24 sps:$4 sm:$0xff]  }
 0x222   : > { %2099 = vmatpush1.bf16.msra.mxu1 %v7764_v53  ;;  %v7835_v53 = vld [vmem:[%s10182_s9 + $0xf8] ss:$24 sps:$4 sm:$0xff]  }
 0x223   : > { %2100 = vmatprep.subr.bf16.mxu1 %v7772_v56  ;;  %2726 = vmatpush1.bf16.msra.mxu0 %v7755_v60  ;;  %v7828_v56 = vld [vmem:[%s10182_s9 + $0x44] ss:$24 sps:$4 sm:$0xff]  }
 0x224   : > { %2727 = vmatprep.subr.bf16.mxu0 %v7763_v62  ;;  %v7849_v60 = vld [vmem:[%s10182_s9 + $0x15c] ss:$24 sps:$4 sm:$0xff]   ;;  %v7847_v62 = vld [vmem:[%s10182_s9 + $0x158] ss:$24 sps:$4 sm:$0xff]  }
 0x226   : > { %2101 = vmatpush1.bf16.msra.mxu1 %v7770_v59  ;;  %v7826_v59 = vld [vmem:[%s10182_s9 + $0x40] ss:$24 sps:$4 sm:$0xff]  }
 0x227   : > { %2102 = vmatprep.subr.bf16.mxu1 %v7778_v61  ;;  %2728 = vmatpush1.bf16.msra.mxu0 %v7761_v1  ;;  %v7834_v61 = vld [vmem:[%s10182_s9 + $0x74] ss:$24 sps:$4 sm:$0xff]  }
 0x228   : > { %2729 = vmatprep.subr.bf16.mxu0 %v7769_v6  ;;  %v7838_v6 = vld [vmem:[%s10182_s9 + $0xa0] ss:$24 sps:$4 sm:$0xff]  }
 0x22a   : > { %2103 = vmatpush1.bf16.msra.mxu1 %v7776_v0  ;;  %v7855_v0 = vld [vmem:[%s10182_s9 + $0x18c] ss:$24 sps:$4 sm:$0xff]  }
 0x22b   : > { %6824 = vmatprep.subr.msk.bf16.mxu1 %vm920_vm1, %v6819_v4  ;;  %2730 = vmatpush1.bf16.msra.mxu0 %v7767_v7  ;;  %v7853_v4 = vld [vmem:[%s10182_s9 + $0x188] ss:$24 sps:$4 sm:$0xff]   ;;  %v7846_v7 = vld [vmem:[%s10182_s9 + $0xd4] ss:$24 sps:$4 sm:$0xff]  }
 0x22c   : > { %2731 = vmatprep.subr.bf16.mxu0 %v7775_v10  ;;  %v7850_v10 = vld [vmem:[%s10182_s9 + $0x100] ss:$24 sps:$4 sm:$0xff]  }
 0x22e   : > { %2105 = vmatpush1.bf16.msra.mxu1 %v1999_v8  ;;  %v7844_v8 = vld [vmem:[%s10182_s9 + $0xd0] ss:$24 sps:$4 sm:$0xff]  }
 0x22f   : > { %2750 = vmatprep.subr.bf16.mxu1 %v7789_v9  ;;  %2732 = vmatpush1.bf16.msra.mxu0 %v7773_v12  ;;  %v7852_v9 = vld [vmem:[%s10182_s9 + $0x104] ss:$24 sps:$4 sm:$0xff]   ;;  %v7856_v12 = vld [vmem:[%s10182_s9 + $0x130] ss:$24 sps:$4 sm:$0xff]  }
 0x230   : > { %2733 = vmatprep.subr.bf16.mxu0 %v7781_v14  ;;  %v7859_v14 = vld [vmem:[%s10182_s9 + $0x1b8] ss:$24 sps:$4 sm:$0xff]  }
 0x231   : > { %2119 = vmatmul.mubr.bf16.vlgmr.msra.gmra.mrb[12].mxu1 %v9527_v23  ;;  %v7792_v23 = vld [vmem:[%s10182_s9 + $0x2a4] ss:$24 sps:$4 sm:$0xff]  }
 0x232   : > { %2751 = vmatpush1.bf16.msra.mxu1 %v7787_v11  ;;  %2782 = vmatprep.mubr.bf16.mxu1 %v8846_v2  ;;  %v7858_v11 = vld [vmem:[%s10182_s9 + $0x134] ss:$24 sps:$4 sm:$0xff]  }
 0x233   : > { %2752 = vmatprep.subr.bf16.mxu1 %v7795_v13  ;;  %2734 = vmatpush1.bf16.msra.mxu0 %v7779_v15  ;;  %v7861_v13 = vld [vmem:[%s10182_s9 + $0x1bc] ss:$24 sps:$4 sm:$0xff]  }
 0x234   : > { %2735 = vmatprep.subr.bf16.mxu0 %v7786_v19  ;;  %v7864_v15 = vld [vmem:[%s10182_s9 + $0x164] ss:$24 sps:$4 sm:$0xff]   ;;  %v7870_v19 = vld [vmem:[%s10182_s9 + $0x194] ss:$24 sps:$4 sm:$0xff]  }
 0x236   : > { %2753 = vmatpush1.bf16.msra.mxu1 %v7793_v16  ;;  %v7862_v16 = vld [vmem:[%s10182_s9 + $0x160] ss:$24 sps:$4 sm:$0xff]  }
 0x237   : > { %6940 = vmatprep.subr.msk.bf16.mxu1 %vm1100_vm2, %v7799_v17  ;;  %2736 = vmatpush1.bf16.msra.mxu0 %v7784_v20  ;;  %v7867_v17 = vld [vmem:[%s10182_s9 + $0x1ec] ss:$24 sps:$4 sm:$0xff]   ;;  %v7868_v20 = vld [vmem:[%s10182_s9 + $0x190] ss:$24 sps:$4 sm:$0xff]  }
 0x238   : > { %2737 = vmatprep.subr.bf16.mxu0 %v7792_v23  ;;  %v7876_v23 = vld [vmem:[%s10182_s9 + $0x1c4] ss:$24 sps:$4 sm:$0xff]  }
 0x23a   : > { %2755 = vmatpush1.bf16.msra.mxu1 %v2692_v21  ;;  %v7873_v21 = vld [vmem:[%s10182_s9 + $0x21c] ss:$24 sps:$4 sm:$0xff]  }
 0x23b   : > { %2791 = vmatprep.subr.bf16.mxu1 %v7807_v22  ;;  %2738 = vmatpush1.bf16.msra.mxu0 %v7790_v25  ;;  %v7871_v22 = vld [vmem:[%s10182_s9 + $0x218] ss:$24 sps:$4 sm:$0xff]   ;;  %v7877_v25 = vld [vmem:[%s10182_s9 + $0x248] ss:$24 sps:$4 sm:$0xff]  }
 0x23c   : > { %2739 = vmatprep.subr.bf16.mxu0 %v7798_v27  ;;  %v7882_v27 = vld [vmem:[%s10182_s9 + $0x1f4] ss:$24 sps:$4 sm:$0xff]  }
 0x23d   : > { %6941 = vmatmul.mubr.msk.bf16.vlgmr.msra.gmra.mrb[16].mxu1 %vm1096_vm4, %v9334_v52 }
 0x23e   : > { %2792 = vmatpush1.bf16.msra.mxu1 %v7805_v24  ;;  %2823 = vmatprep.mubr.bf16.mxu1 %v9300_v39  ;;  %v7874_v24 = vld [vmem:[%s10182_s9 + $0x1c0] ss:$24 sps:$4 sm:$0xff]  }
 0x23f   : > { %2793 = vmatprep.subr.bf16.mxu1 %v7813_v26  ;;  %2740 = vmatpush1.bf16.msra.mxu0 %v7796_v31  ;;  %v7879_v26 = vld [vmem:[%s10182_s9 + $0x24c] ss:$24 sps:$4 sm:$0xff]   ;;  %v7885_v31 = vld [vmem:[%s10182_s9 + $0x27c] ss:$24 sps:$4 sm:$0xff]  }
 0x240   : > { %2832 = vmatprep.subr.bf16.mxu0 %v7804_v33  ;;  %v7883_v33 = vld [vmem:[%s10182_s9 + $0x278] ss:$24 sps:$4 sm:$0xff]  }
 0x242   : > { %2794 = vmatpush1.bf16.msra.mxu1 %v7811_v30  ;;  %2742 = vmatmul.mubr.bf16.vlgmr.msra.gmra.mrb[12].mxu0 %v9296_v37  ;;  %v7880_v30 = vld [vmem:[%s10182_s9 + $0x1f0] ss:$24 sps:$4 sm:$0xff]  }
 0x243   : > { %2795 = vmatprep.subr.bf16.mxu1 %v7819_v32  ;;  %2833 = vmatpush1.bf16.msra.mxu0 %v7802_v35  ;;  %v7888_v32 = vld [vmem:[%s10182_s9 + $0x224] ss:$24 sps:$4 sm:$0xff]  }
 0x244   : > { %2864 = vmatprep.mubr.bf16.mxu0 %v8846_v2  ;;  %2834 = vmatprep.subr.bf16.mxu0 %v7810_v36  ;;  %v7891_v35 = vld [vmem:[%s10182_s9 + $0x2ac] ss:$24 sps:$4 sm:$0xff]  }
 0x245   : > { %v7894_v36 = vld [vmem:[%s10182_s9 + $0x254] ss:$24 sps:$4 sm:$0xff]  }
 0x246   : > { %2796 = vmatpush1.bf16.msra.mxu1 %v7817_v34  ;;  %v7886_v34 = vld [vmem:[%s10182_s9 + $0x220] ss:$24 sps:$4 sm:$0xff]  }
 0x247   : > { %2797 = vmatprep.subr.bf16.mxu1 %v7825_v38  ;;  %2835 = vmatpush1.bf16.msra.mxu0 %v7808_v41  ;;  %v7889_v38 = vld [vmem:[%s10182_s9 + $0x2a8] ss:$24 sps:$4 sm:$0xff]   ;;  %v7897_v41 = vld [vmem:[%s10182_s9 + $0x2dc] ss:$24 sps:$4 sm:$0xff]  }
 0x248   : > { %6942 = vmatprep.subr.msk.bf16.mxu0 %vm1100_vm2, %v7814_v43  ;;  %v7895_v43 = vld [vmem:[%s10182_s9 + $0x2d8] ss:$24 sps:$4 sm:$0xff]  }
 0x24a   : > { %2798 = vmatpush1.bf16.msra.mxu1 %v7823_v40  ;;  %v7892_v40 = vld [vmem:[%s10182_s9 + $0x250] ss:$24 sps:$4 sm:$0xff]  }
 0x24b   : > { %2799 = vmatprep.subr.bf16.mxu1 %v7831_v42  ;;  %2837 = vmatpush1.bf16.msra.mxu0 %v2698_v49  ;;  %v7900_v42 = vld [vmem:[%s10182_s9 + $0x284] ss:$24 sps:$4 sm:$0xff]  }
 0x24c   : > { %2873 = vmatprep.subr.bf16.mxu0 %v7822_v50  ;;  %v7909_v49 = vld [vmem:[%s10182_s9 + $0x344] ss:$24 sps:$4 sm:$0xff]  }
 0x24d   : > { %v7912_v50 = vld [vmem:[%s10182_s9 + $0x2e4] ss:$24 sps:$4 sm:$0xff]  }
 0x24e   : > { %2800 = vmatpush1.bf16.msra.mxu1 %v7829_v45  ;;  %6943 = vmatmul.mubr.msk.bf16.vlgmr.msra.gmra.mrb[16].mxu0 %vm1096_vm4, %v9334_v52  ;;  %v7903_v45 = vld [vmem:[%s10182_s9 + $0x314] ss:$24 sps:$4 sm:$0xff]  }
 0x24f   : > { %2801 = vmatprep.subr.bf16.mxu1 %v7837_v47  ;;  %2874 = vmatpush1.bf16.msra.mxu0 %v7820_v54  ;;  %v7901_v47 = vld [vmem:[%s10182_s9 + $0x310] ss:$24 sps:$4 sm:$0xff]   ;;  %v7913_v54 = vld [vmem:[%s10182_s9 + $0x374] ss:$24 sps:$4 sm:$0x3f]  }
 0x250   : > { %2875 = vmatprep.subr.bf16.mxu0 %v7828_v56  ;;  %2905 = vmatprep.mubr.bf16.mxu0 %v9300_v39  ;;  %v7840_v39 = vld [vmem:[%s10182_s9 + $0xa4] ss:$24 sps:$4 sm:$0xff]  }
 0x251   : > { %v7918_v56 = vld [vmem:[#allocation3 + $0x4] ss:$24 sps:$4 sm:$0xff]  }
 0x252   : > { %2802 = vmatpush1.bf16.msra.mxu1 %v7835_v53  ;;  %v7910_v53 = vld [vmem:[%s10182_s9 + $0x2e0] ss:$24 sps:$4 sm:$0xff]  }
 0x253   : > { %2876 = vmatpush1.bf16.msra.mxu0 %v7826_v59  ;;  %v7921_v59 = vld [vmem:[#allocation3 + $0xc] ss:$24 sps:$4 sm:$0xff]  }
 0x254   : > { %2877 = vmatprep.subr.bf16.mxu0 %v7834_v61 }
 0x257   : > { %2878 = vmatpush1.bf16.msra.mxu0 %v7832_v63  ;;  %v7922_v63 = vld [vmem:[#allocation3 + $0x30] ss:$24 sps:$4 sm:$0xff]  }
 0x258   : > { %2879 = vmatprep.subr.bf16.mxu0 %v7840_v39  ;;  %v7927_v39 = vld [vmem:[#allocation3 + $0x3c] ss:$24 sps:$4 sm:$0xff]  }
 0x25b   : > { %2880 = vmatpush1.bf16.msra.mxu0 %v7838_v6  ;;  %v9950_v6 = vsub.s32 1, %v9274_v28 }
 0x25c   : > { %2881 = vmatprep.subr.bf16.mxu0 %v7846_v7  ;;  %v7931_v7 = vld [vmem:[#allocation3 + $0x68] ss:$24 sps:$4 sm:$0xff]  }
 0x25f   : > { %2882 = vmatpush1.bf16.msra.mxu0 %v7844_v8 }
 0x260   : > { %2883 = vmatprep.subr.bf16.mxu0 %v7852_v9 }
 0x263   : > { %2884 = vmatpush1.bf16.msra.mxu0 %v7850_v10  ;;  %v7936_v10 = vld [vmem:[#allocation3 + $0x94] ss:$24 sps:$4 sm:$0xff]  }
 0x264   : > { %2885 = vmatprep.subr.bf16.mxu0 %v7858_v11  ;;  %v7934_v11 = vld [vmem:[#allocation3 + $0x90] ss:$24 sps:$4 sm:$0xff]  }
 0x267   : > { %2886 = vmatpush1.bf16.msra.mxu0 %v7856_v12  ;;  %v7939_v12 = vld [vmem:[#allocation3 + $0x9c] ss:$24 sps:$4 sm:$0xff]  }
 0x268   : > { %2887 = vmatprep.subr.bf16.mxu0 %v7864_v15  ;;  %v7937_v15 = vld [vmem:[#allocation3 + $0x98] ss:$24 sps:$4 sm:$0xff]  }
 0x26b   : > { %2888 = vmatpush1.bf16.msra.mxu0 %v7862_v16  ;;  %v7940_v16 = vld [vmem:[#allocation3 + $0xc0] ss:$24 sps:$4 sm:$0xff]  }
 0x26c   : > { %2889 = vmatprep.subr.bf16.mxu0 %v7870_v19  ;;  %v7948_v19 = vld [vmem:[#allocation3 + $0xf4] ss:$24 sps:$4 sm:$0xff]  }
 0x26f   : > { %2890 = vmatpush1.bf16.msra.mxu0 %v7868_v20  ;;  %v7946_v20 = vld [vmem:[#allocation3 + $0xf0] ss:$24 sps:$4 sm:$0xff]  }
 0x270   : > { %2891 = vmatprep.subr.bf16.mxu0 %v7876_v23  ;;  %v7949_v23 = vld [vmem:[#allocation3 + $0xf8] ss:$24 sps:$4 sm:$0xff]  }
 0x273   : > { %2892 = vmatpush1.bf16.msra.mxu0 %v7874_v24  ;;  %v7954_v24 = vld [vmem:[#allocation3 + $0x124] ss:$24 sps:$4 sm:$0xff]  }
 0x274   : > { %2893 = vmatprep.subr.bf16.mxu0 %v7882_v27 }
 0x277   : > { %2894 = vmatpush1.bf16.msra.mxu0 %v7880_v30  ;;  %v7955_v30 = vld [vmem:[#allocation3 + $0x128] ss:$24 sps:$4 sm:$0xff]  }
 0x278   : > { %2895 = vmatprep.subr.bf16.mxu0 %v7888_v32  ;;  %v7958_v32 = vld [vmem:[#allocation3 + $0x150] ss:$24 sps:$4 sm:$0xff]  }
 0x27b   : > { %2896 = vmatpush1.bf16.msra.mxu0 %v7886_v34  ;;  %v9969_v34 = vsub.s32 3, %v9274_v28 }
 0x27c   : > { %2897 = vmatprep.subr.bf16.mxu0 %v7894_v36  ;;  %v7966_v36 = vld [vmem:[#allocation3 + $0x184] ss:$24 sps:$4 sm:$0xff]  }
 0x27f   : > { %2898 = vmatpush1.bf16.msra.mxu0 %v7892_v40  ;;  %v7969_v40 = vld [vmem:[#allocation3 + $0x18c] ss:$24 sps:$4 sm:$0xff]  }
 0x280   : > { %2899 = vmatprep.subr.bf16.mxu0 %v7900_v42  ;;  %v7967_v42 = vld [vmem:[#allocation3 + $0x188] ss:$24 sps:$4 sm:$0xff]  }
 0x283   : > { %2900 = vmatpush1.bf16.msra.mxu0 %v7898_v44  ;;  %v7970_v44 = vld [vmem:[#allocation3 + $0x1b0] ss:$24 sps:$4 sm:$0xff]  }
 0x296   : > { %v1367_v46 = vpop.xlane.xlu0 %1366 }
 0x297   : > { %v1368_v48 = vsub.f32 %v9390_v29, %v1367_v46  ;;  %v7843_v29 = vld [vmem:[%s10182_s9 + $0x12c] ss:$24 sps:$4 sm:$0xff]  }
 0x298   : > { %2803 = vmatprep.subr.bf16.mxu1 %v7843_v29  ;;  %v7906_v46 = vld [vmem:[%s10182_s9 + $0x2b4] ss:$24 sps:$4 sm:$0xff]   ;;  %v7915_v29 = vld [vmem:[%s10182_s9 + $0x370] ss:$24 sps:$4 sm:$0x3f]  }
 0x299   : > { %v1369_v51 = vmul.f32 1.442695, %v1368_v48  ;;  %2804 = vmatpush1.bf16.msra.mxu1 %v7841_v57  ;;  %v7904_v48 = vld [vmem:[%s10182_s9 + $0x2b0] ss:$24 sps:$4 sm:$0xff]   ;;  %2901 = vmatprep.subr.bf16.mxu0 %v7906_v46  ;;  %v7973_v46 = vld [vmem:[#allocation3 + $0x1b8] ss:$24 sps:$4 sm:$0xff]  }
 0x29a   : > { %2805 = vmatprep.subr.bf16.mxu1 %v7849_v60  ;;  %2902 = vmatpush1.bf16.msra.mxu0 %v7904_v48  ;;  %v7919_v57 = vld [vmem:[#allocation3 + $0x8] ss:$24 sps:$4 sm:$0xff]  }
 0x29b   : > { %8559 = vpow2.f32 %v1369_v51  ;;  %v7907_v51 = vld [vmem:[%s10182_s9 + $0x340] ss:$24 sps:$4 sm:$0xff]   ;;  %2903 = vmatprep.subr.bf16.mxu0 %v7912_v50  ;;  %v7979_v50 = vld [vmem:[#allocation3 + $0x1e8] ss:$24 sps:$4 sm:$0xff]  }
 0x29c   : > { %v7916_v60 = vld [vmem:[#allocation3] ss:$24 sps:$4 sm:$0xff]  }
 0x29d   : > { %2806 = vmatpush1.bf16.msra.mxu1 %v7847_v62  ;;  %v7924_v62 = vld [vmem:[#allocation3 + $0x34] ss:$24 sps:$4 sm:$0xff]   ;;  %v7976_v48 = vld [vmem:[#allocation3 + $0x1e0] ss:$24 sps:$4 sm:$0xff]  }
 0x29e   : > { %2807 = vmatprep.subr.bf16.mxu1 %v7855_v0  ;;  %2904 = vmatpush1.bf16.msra.mxu0 %v7910_v53  ;;  %v7925_v0 = vld [vmem:[#allocation3 + $0x38] ss:$24 sps:$4 sm:$0xff]  }
 0x29f   : > { %3504 = vmatprep.subr.bf16.mxu0 %v7921_v59  ;;  %v7982_v53 = vld [vmem:[#allocation3 + $0x210] ss:$24 sps:$4 sm:$0xff]  }
 0x2a1   : > { %2808 = vmatpush1.bf16.msra.mxu1 %v7853_v4  ;;  %2906 = vmatmul.mubr.bf16.vlgmr.msra.gmra.mrb[20].mxu0 %v9296_v37  ;;  %v7930_v4 = vld [vmem:[#allocation3 + $0x64] ss:$24 sps:$4 sm:$0xff]  }
 0x2a2   : > { %2809 = vmatprep.subr.bf16.mxu1 %v7861_v13  ;;  %3505 = vmatpush1.bf16.msra.mxu0 %v7919_v57 }
 0x2a3   : > { %3506 = vmatprep.subr.bf16.mxu0 %v7927_v39 }
 0x2a5   : > { %v9800_v1 = vpop.eup %8559  ;;  %2810 = vmatpush1.bf16.msra.mxu1 %v7859_v14 }
 0x2a6   : > { %v1371_v5 = vsel %vm1364_vm6, %v9800_v1, 0.0  ;;  %2811 = vmatprep.subr.bf16.mxu1 %v7867_v17  ;;  %3507 = vmatpush1.bf16.msra.mxu0 %v7925_v0  ;;  %v7945_v17 = vld [vmem:[#allocation3 + $0xcc] ss:$24 sps:$4 sm:$0xff]  }
 0x2a7   : > { %1372 = vadd.xlane.f32.xlu0 %v1371_v5  ;;  %v7933_v5 = vld [vmem:[#allocation3 + $0x6c] ss:$24 sps:$4 sm:$0xff]  }
 0x2a8   : > { %3508 = vmatprep.subr.bf16.mxu0 %v7933_v5  ;;  %v7994_v0 = vld [vmem:[#allocation3 + $0x14] ss:$24 sps:$4 sm:$0xff]  }
 0x2a9   : > { %2812 = vmatpush1.bf16.msra.mxu1 %v7865_v18  ;;  %v7943_v18 = vld [vmem:[#allocation3 + $0xc8] ss:$24 sps:$4 sm:$0xff]  }
 0x2aa   : > { %2813 = vmatprep.subr.bf16.mxu1 %v7873_v21  ;;  %3509 = vmatpush1.bf16.msra.mxu0 %v7931_v7  ;;  %v7951_v21 = vld [vmem:[#allocation3 + $0xfc] ss:$24 sps:$4 sm:$0xff]  }
 0x2ab   : > { %3510 = vmatprep.subr.bf16.mxu0 %v7939_v12 }
 0x2ad   : > { %2814 = vmatpush1.bf16.msra.mxu1 %v7871_v22  ;;  %v9965_v22 = vsub.s32 2, %v9274_v28 }
 0x2ae   : > { %2815 = vmatprep.subr.bf16.mxu1 %v7879_v26  ;;  %3511 = vmatpush1.bf16.msra.mxu0 %v7937_v15  ;;  %v7957_v26 = vld [vmem:[#allocation3 + $0x12c] ss:$24 sps:$4 sm:$0xff]  }
 0x2af   : > { %3512 = vmatprep.subr.bf16.mxu0 %v7945_v17 }
 0x2b1   : > { %2816 = vmatpush1.bf16.msra.mxu1 %v7877_v25  ;;  %v7952_v25 = vld [vmem:[#allocation3 + $0x120] ss:$24 sps:$4 sm:$0xff]  }
 0x2b2   : > { %2817 = vmatprep.subr.bf16.mxu1 %v7885_v31  ;;  %3513 = vmatpush1.bf16.msra.mxu0 %v7943_v18  ;;  %v7960_v31 = vld [vmem:[#allocation3 + $0x154] ss:$24 sps:$4 sm:$0xff]  }
 0x2b3   : > { %3514 = vmatprep.subr.bf16.mxu0 %v7951_v21 }
 0x2b5   : > { %2818 = vmatpush1.bf16.msra.mxu1 %v7883_v33  ;;  %v7963_v33 = vld [vmem:[#allocation3 + $0x15c] ss:$24 sps:$4 sm:$0xff]  }
 0x2b6   : > { %2819 = vmatprep.subr.bf16.mxu1 %v7891_v35  ;;  %3515 = vmatpush1.bf16.msra.mxu0 %v7949_v23  ;;  %v7961_v35 = vld [vmem:[#allocation3 + $0x158] ss:$24 sps:$4 sm:$0xff]  }
 0x2b7   : > { %3516 = vmatprep.subr.bf16.mxu0 %v7957_v26 }
 0x2b9   : > { %2820 = vmatpush1.bf16.msra.mxu1 %v7889_v38  ;;  %v7964_v38 = vld [vmem:[#allocation3 + $0x180] ss:$24 sps:$4 sm:$0xff]  }
 0x2ba   : > { %2821 = vmatprep.subr.bf16.mxu1 %v7897_v41  ;;  %3517 = vmatpush1.bf16.msra.mxu0 %v7955_v30  ;;  %v8032_v30 = vld [vmem:[#allocation8 + $0x4] ss:$24 sps:$4 sm:$0xff]  }
 0x2bb   : > { %3518 = vmatprep.subr.bf16.mxu0 %v7963_v33 }
 0x2bd   : > { %2822 = vmatpush1.bf16.msra.mxu1 %v7895_v43  ;;  %v7972_v43 = vld [vmem:[#allocation3 + $0x1b4] ss:$24 sps:$4 sm:$0xff]  }
 0x2be   : > { %2914 = vmatprep.subr.bf16.mxu1 %v7903_v45  ;;  %3519 = vmatpush1.bf16.msra.mxu0 %v7961_v35  ;;  %v7975_v45 = vld [vmem:[#allocation3 + $0x1bc] ss:$24 sps:$4 sm:$0xff]  }
 0x2bf   : > { %3520 = vmatprep.subr.bf16.mxu0 %v7969_v40 }
 0x2c0   : > { %2824 = vmatmul.mubr.bf16.vlgmr.msra.gmra.mrb[20].mxu1 %v9296_v37  ;;  %v7928_v37 = vld [vmem:[#allocation3 + $0x60] ss:$24 sps:$4 sm:$0xff]  }
 0x2c1   : > { %2915 = vmatpush1.bf16.msra.mxu1 %v7901_v47  ;;  %2946 = vmatprep.mubr.bf16.mxu1 %v8846_v2  ;;  %v2704_v2 = vsel %vm1100_vm2, %v7915_v29, 0  ;;  %v7978_v47 = vld [vmem:[#allocation3 + $0x1e4] ss:$24 sps:$4 sm:$0xff]   ;;  %v7985_v29 = vld [vmem:[#allocation3 + $0x218] ss:$24 sps:$4 sm:$0xff]  }
 0x2c2   : > { %2916 = vmatprep.subr.bf16.mxu1 %v7909_v49  ;;  %3521 = vmatpush1.bf16.msra.mxu0 %v7967_v42  ;;  %v7981_v49 = vld [vmem:[#allocation3 + $0x1ec] ss:$24 sps:$4 sm:$0xff]  }
 0x2c3   : > { %3522 = vmatprep.subr.bf16.mxu0 %v7975_v45 }
 0x2c5   : > { %2917 = vmatpush1.bf16.msra.mxu1 %v7907_v51  ;;  %v7984_v51 = vld [vmem:[#allocation3 + $0x214] ss:$24 sps:$4 sm:$0xff]  }
 0x2c6   : > { %6944 = vmatprep.subr.msk.bf16.mxu1 %vm1100_vm2, %v7913_v54  ;;  %3523 = vmatpush1.bf16.msra.mxu0 %v7973_v46  ;;  %v7987_v54 = vld [vmem:[#allocation3 + $0x21c] ss:$24 sps:$4 sm:$0xff]  }
 0x2c7   : > { %3524 = vmatprep.subr.bf16.mxu0 %v7981_v49  ;;  %v1420_v46 = vld [vmem:[%s10236_s22] sm:$0xff] }
 0x2c9   : > { %2919 = vmatpush1.bf16.msra.mxu1 %v2704_v2  ;;  %v3035_v2 = vld [vmem:[#allocation3 + $0x240] sm:$0xff] }
 0x2ca   : > { %3463 = vmatprep.subr.bf16.mxu1 %v7918_v56  ;;  %3525 = vmatpush1.bf16.msra.mxu0 %v7979_v50  ;;  %v3036_v56 = vld [vmem:[#allocation3 + $0x248] sm:$0xff]  ;;  %v7019_v57 = vcombine.high %v3035_v2, %v3035_v2  ;;  %v7018_v59 = vcombine.low %v3035_v2, %v3035_v2 }
 0x2cb   : > { %3526 = vmatprep.subr.bf16.mxu0 %v7987_v54 }
 0x2cc   : > { %6945 = vmatmul.mubr.msk.bf16.vlgmr.msra.gmra.mrb[24].mxu1 %vm1096_vm4, %v9334_v52  ;;  %v9953_v52 = vsub.s32 0, %v9274_v28 }
 0x2cd   : > { %3464 = vmatpush1.bf16.msra.mxu1 %v7916_v60  ;;  %v7021_v60 = vcombine.high %v3036_v56, %v3036_v56 }
 0x2ce   : > { %3465 = vmatprep.subr.bf16.mxu1 %v7924_v62  ;;  %3527 = vmatpush1.bf16.msra.mxu0 %v7985_v29  ;;  %v3446_v62 = vsel %vm3444_vm7, %v7018_v59, 0  ;;  %v1422_v29 = vld [vmem:[%s10236_s22 + $0x10] sm:$0xff] }
 0x2cf   : > { %7026 = vmatprep.subr.msk.bf16.mxu0 %vm3444_vm7, %v7021_v60 }
 0x2d1   : > { %3466 = vmatpush1.bf16.msra.mxu1 %v7922_v63 }
 0x2d2   : > { %3467 = vmatprep.subr.bf16.mxu1 %v7930_v4  ;;  %v2079_v4 = vpop.f32.mrb[8].mxu0 }
 0x2d3   : > { %v2081_v5 = vpop.f32.mrb[9].mxu0 }
 0x2d5   : > { %3468 = vmatpush1.bf16.msra.mxu1 %v7928_v37 }
 0x2d6   : > { %3469 = vmatprep.subr.bf16.mxu1 %v7936_v10 }
 0x2d9   : > { %3470 = vmatpush1.bf16.msra.mxu1 %v7934_v11 }
 0x2dc   : > { %v2038_v39 = vpop.f32.mrb[8].mxu1 }
 0x2dd   : > { %v2040_v37 = vpop.f32.mrb[9].mxu1 }
 0x2de   : > { %v2042_v7 = vpop.f32.mrb[10].mxu1 }
 0x334   : > { %v1373_v61 = vpop.xlane.xlu0 %1372 }
 0x335   : > { %8561 = vrcp.f32 %v1373_v61  ;;  %v7020_v61 = vcombine.low %v3036_v56, %v3036_v56 }
 0x337   : > { %v3452_v63 = vsel %vm3444_vm7, %v7020_v61, 0  ;;  %v1423_v61 = vld [vmem:[%s10236_s22 + $0x18] sm:$0x33] }
 0x338   : > { %3529 = vmatpush1.bf16.msra.mxu0 %v3452_v63 }
 0x339   : > { %5167 = vmatprep.subr.bf16.mxu0 %v8032_v30 }
 0x33f   : > { %v8562_v8 = vpop.eup %8561 }
 0x340   : > { %v1375_v9 = vmul.f32 %v8562_v8, %v9800_v1  ;;  %v7942_v1 = vld [vmem:[#allocation3 + $0xc4] ss:$24 sps:$4 sm:$0xff]   ;;  %v2083_v8 = vpop.f32.mrb[10].mxu0 }
 0x341   : > { %3471 = vmatprep.subr.bf16.mxu1 %v7942_v1  ;;  %v2084_v10 = vpop.f32.mrb[11].mxu0 }
 0x342   : > { %6487 = vst.msk [vmem:[%s776_s24] sm:$0xf] %vm1364_vm6, %v1375_v9  ;;  %v1390_v13 = vrot.slane %v1375_v9, %v9950_v6  ;;  %v1379_v14 = vrot.slane %v1375_v9, %v9953_v52  ;;  %3472 = vmatpush1.bf16.msra.mxu1 %v7940_v16  ;;  %v1401_v27 = vrot.slane %v1375_v9, %v9965_v22  ;;  %v2743_v12 = vpop.f32.mrb[12].mxu0  ;;  %v1435_v10 = vunpack.c.h.bf16 %v1423_v61 }
 0x343   : > { %3473 = vmatprep.subr.bf16.mxu1 %v7948_v19  ;;  %v1412_v41 = vrot.slane %v1375_v9, %v9969_v34  ;;  %v2043_v9 = vpop.f32.mrb[11].mxu1  ;;  %v2745_v15 = vpop.f32.mrb[13].mxu0 }
 0x344   : > { %1392 = vbcast.lane.b32.xlu0 %v1390_v13, 256  ;;  %1381 = vbcast.lane.b32.xlu1 %v1379_v14, 256  ;;  %v2120_v11 = vpop.f32.mrb[12].mxu1  ;;  %v2746_v16 = vadd.f32 %v2745_v15, %v2040_v37  ;;  %v2747_v17 = vpop.f32.mrb[14].mxu0 }
 0x345   : > { %v2748_v19 = vpop.f32.mrb[15].mxu0 }
 0x346   : > { %3474 = vmatpush1.bf16.msra.mxu1 %v7946_v20  ;;  %v1424_v19 = vld [vmem:[%s10236_s22 + $0x20] sm:$0xff] }
 0x347   : > { %3475 = vmatprep.subr.bf16.mxu1 %v7954_v24 }
 0x348   : > { %1385 = vbcast.lane.b32.xlu1 %v1379_v14, 264  ;;  %v2744_v14 = vadd.f32 %v2743_v12, %v2038_v39 }
 0x34a   : > { %3476 = vmatpush1.bf16.msra.mxu1 %v7952_v25 }
 0x34b   : > { %3477 = vmatprep.subr.bf16.mxu1 %v7960_v31 }
 0x34c   : > { %1396 = vbcast.lane.b32.xlu1 %v1390_v13, 264  ;;  %v2122_v13 = vpop.f32.mrb[13].mxu1 }
 0x34d   : > { %v2124_v1 = vpop.f32.mrb[14].mxu1 }
 0x34e   : > { %3478 = vmatpush1.bf16.msra.mxu1 %v7958_v32  ;;  %v2125_v18 = vpop.f32.mrb[15].mxu1 }
 0x34f   : > { %3479 = vmatprep.subr.bf16.mxu1 %v7966_v36  ;;  %v2784_v20 = vpop.f32.mrb[16].mxu1 }
 0x350   : > { %1403 = vbcast.lane.b32.xlu1 %v1401_v27, 256  ;;  %v9976_v21 = vadd.f32 %v2784_v20, %v2744_v14  ;;  %v2786_v23 = vpop.f32.mrb[17].mxu1 }
 0x351   : > { %v9978_v24 = vadd.f32 %v2786_v23, %v2746_v16  ;;  %v2788_v25 = vpop.f32.mrb[18].mxu1 }
 0x352   : > { %3480 = vmatpush1.bf16.msra.mxu1 %v7964_v38  ;;  %v2789_v26 = vpop.f32.mrb[19].mxu1 }
 0x353   : > { %3481 = vmatprep.subr.bf16.mxu1 %v7972_v43  ;;  %v1425_v26 = vld [vmem:[%s10236_s22 + $0x28] sm:$0x33] }
 0x354   : > { %1407 = vbcast.lane.b32.xlu1 %v1401_v27, 264  ;;  %v9980_v27 = vpop.f32.mrb[16].mxu0 }
 0x355   : > { %v9982_v31 = vpop.f32.mrb[17].mxu0 }
 0x356   : > { %3482 = vmatpush1.bf16.msra.mxu1 %v7970_v44  ;;  %v2870_v32 = vpop.f32.mrb[18].mxu0 }
 0x357   : > { %3483 = vmatprep.subr.bf16.mxu1 %v7978_v47  ;;  %v2871_v33 = vpop.f32.mrb[19].mxu0  ;;  %v1421_v47 = vld [vmem:[%s10236_s22 + $0x8] sm:$0x33] }
 0x358   : > { %1414 = vbcast.lane.b32.xlu1 %v1412_v41, 256  ;;  %v1430_v59 = vunpack.c.l.bf16 %v1421_v47  ;;  %v1431_v60 = vunpack.c.h.bf16 %v1421_v47 }
 0x35a   : > { %3484 = vmatpush1.bf16.msra.mxu1 %v7976_v48 }
 0x35b   : > { %3485 = vmatprep.subr.bf16.mxu1 %v7984_v51 }
 0x35c   : > { %1418 = vbcast.lane.b32.xlu1 %v1412_v41, 264 }
 0x35e   : > { %3486 = vmatpush1.bf16.msra.mxu1 %v7982_v53 }
 0x35f   : > { %7024 = vmatprep.subr.msk.bf16.mxu1 %vm3444_vm7, %v7019_v57  ;;  %v1429_v57 = vunpack.c.h.bf16 %v1420_v46 }
 0x362   : > { %3488 = vmatpush1.bf16.msra.mxu1 %v3446_v62 }
 0x363   : > { %3545 = vmatprep.subr.bf16.mxu1 %v7994_v0  ;;  %v1433_v0 = vunpack.c.h.bf16 %v1422_v29 }
 0x374   : > { %v2907_v43 = vpop.f32.mrb[20].mxu0 }
 0x375   : > { %v2908_v44 = vadd.f32 %v2907_v43, %v2120_v11  ;;  %v2909_v45 = vpop.f32.mrb[21].mxu0  ;;  %v1432_v11 = vunpack.c.l.bf16 %v1422_v29  ;;  %v1438_v43 = vunpack.c.l.bf16 %v1425_v26 }
 0x376   : > { %v2910_v48 = vadd.f32 %v2909_v45, %v2122_v13  ;;  %v2911_v50 = vpop.f32.mrb[22].mxu0 }
 0x377   : > { %v2912_v54 = vpop.f32.mrb[23].mxu0 }
 0x378   : > { %v1426_v54 = vld [vmem:[%s10236_s22 + $0x30] sm:$0xff] }
 0x393   : > { %v2825_v35 = vpop.f32.mrb[20].mxu1 }
 0x394   : > { %v2826_v36 = vadd.f32 %v2825_v35, %v2079_v4  ;;  %v2827_v38 = vpop.f32.mrb[21].mxu1  ;;  %v1428_v4 = vunpack.c.l.bf16 %v1420_v46 }
 0x395   : > { %v2828_v40 = vadd.f32 %v2827_v38, %v2081_v5  ;;  %v2829_v41 = vpop.f32.mrb[22].mxu1  ;;  %v1434_v5 = vunpack.c.l.bf16 %v1423_v61 }
 0x396   : > { %v2830_v42 = vpop.f32.mrb[23].mxu1  ;;  %v1437_v41 = vunpack.c.h.bf16 %v1424_v19  ;;  %v10013_v45 = vadd.f32 %v9980_v27, %v2826_v36 }
 0x397   : > { %v10016_v46 = vadd.f32 %v9982_v31, %v2828_v40  ;;  %v1427_v31 = vld [vmem:[%s10236_s22 + $0x38] sm:$0x33] }
 0x39f   : > { %v2948_v49 = vpop.f32.mrb[24].mxu1 }
 0x3a0   : > { %v9990_v51 = vadd.f32 %v2948_v49, %v2908_v44  ;;  %v2950_v53 = vpop.f32.mrb[25].mxu1  ;;  %v1439_v44 = vunpack.c.h.bf16 %v1425_v26 }
 0x3a1   : > { %v9995_v56 = vadd.f32 %v2950_v53, %v2910_v48  ;;  %v2952_v62 = vpop.f32.mrb[26].mxu1  ;;  %v1436_v53 = vunpack.c.l.bf16 %v1424_v19 }
 0x3a2   : > { %v2953_v63 = vpop.f32.mrb[27].mxu1  ;;  %v1441_v62 = vunpack.c.h.bf16 %v1426_v54 }
 0x3b6   : > { %v1382_v2 = vpop.permute.xlu1 %1381  ;;  %v1393_v39 = vpop.permute.xlu0 %1392 }
 0x3b7   : > { %v1445_v7 = vmul.f32 %v1429_v57, %v1382_v2  ;;  %v1449_v12 = vmul.f32 %v1433_v0, %v1393_v39  ;;  %v1444_v15 = vmul.f32 %v1428_v4, %v1382_v2  ;;  %v1448_v20 = vmul.f32 %v1432_v11, %v1393_v39 }
 0x3b9   : > { %v1469_v16 = vsel %vm1468_vm9, %v1445_v7, 0.0  ;;  %v1487_v30 = vsel %vm1468_vm9, %v1449_v12, 0.0 }
 0x3ba   : > { %v1386_v37 = vpop.permute.xlu1 %1385 }
 0x3bb   : > { %v1446_v8 = vmul.f32 %v1430_v59, %v1386_v37  ;;  %v1447_v9 = vmul.f32 %v1431_v60, %v1386_v37 }
 0x3bd   : > { %v1460_v13 = vsel %vm920_vm1, %v1446_v8, 0.0  ;;  %v1471_v14 = vsel %vm1470_vm8, %v1447_v9, 0.0  ;;  %v1442_v9 = vunpack.c.l.bf16 %v1427_v31 }
 0x3be   : > { %v1397_v1 = vpop.permute.xlu1 %1396  ;;  %v1461_v23 = vadd.f32 %v1460_v13, %v1444_v15  ;;  %v1472_v25 = vadd.f32 %v1471_v14, %v1469_v16  ;;  %v1440_v13 = vunpack.c.l.bf16 %v1426_v54 }
 0x3bf   : > { %v1450_v17 = vmul.f32 %v1434_v5, %v1397_v1  ;;  %v1451_v18 = vmul.f32 %v1435_v10, %v1397_v1  ;;  %v1443_v10 = vunpack.c.h.bf16 %v1427_v31 }
 0x3c0   : > { %v1462_v47 = vrot.slane %v1461_v23, 4  ;;  %v1473_v48 = vrot.slane %v1472_v25, 4 }
 0x3c1   : > { %v1479_v32 = vsel %vm920_vm1, %v1450_v17, 0.0  ;;  %v1488_v33 = vsel %vm1470_vm8, %v1451_v18, 0.0 }
 0x3c2   : > { %v1480_v35 = vadd.f32 %v1479_v32, %v1448_v20  ;;  %v1489_v38 = vadd.f32 %v1488_v33, %v1487_v30  ;;  %v1404_v42 = vpop.permute.xlu1 %1403  ;;  %v1463_v27 = vadd.f32 %v1462_v47, %v1461_v23  ;;  %v1474_v36 = vadd.f32 %v1473_v48, %v1472_v25 }
 0x3c3   : > { %v1453_v57 = vmul.f32 %v1437_v41, %v1404_v42  ;;  %v1452_v40 = vmul.f32 %v1436_v53, %v1404_v42 }
 0x3c4   : > { %v1481_v49 = vrot.slane %v1480_v35, 4  ;;  %v1490_v50 = vrot.slane %v1489_v38, 4  ;;  %v1464_v11 = vrot.slane %v1463_v27, 2  ;;  %v1475_v12 = vrot.slane %v1474_v36, 2 }
 0x3c5   : > { %v1504_v37 = vsel %vm1468_vm9, %v1453_v57, 0.0 }
 0x3c6   : > { %v1482_v29 = vadd.f32 %v1481_v49, %v1480_v35  ;;  %v1491_v2 = vadd.f32 %v1490_v50, %v1489_v38  ;;  %v1408_v59 = vpop.permute.xlu1 %1407  ;;  %v1465_v26 = vadd.f32 %v1464_v11, %v1463_v27  ;;  %v1476_v30 = vadd.f32 %v1475_v12, %v1474_v36 }
 0x3c7   : > { %v1454_v60 = vmul.f32 %v1438_v43, %v1408_v59  ;;  %v1455_v61 = vmul.f32 %v1439_v44, %v1408_v59 }
 0x3c8   : > { %v1483_v39 = vrot.slane %v1482_v29, 2  ;;  %v1492_v4 = vrot.slane %v1491_v2, 2  ;;  %v1466_v53 = vrot.slane %v1465_v26, 1  ;;  %v1477_v54 = vrot.slane %v1476_v30, 1 }
 0x3c9   : > { %v1496_v63 = vsel %vm920_vm1, %v1454_v60, 0.0  ;;  %v1505_v0 = vsel %vm1470_vm8, %v1455_v61, 0.0 }
 0x3ca   : > { %v1415_v5 = vpop.permute.xlu1 %1414  ;;  %v1497_v7 = vadd.f32 %v1496_v63, %v1452_v40  ;;  %v1506_v8 = vadd.f32 %v1505_v0, %v1504_v37  ;;  %v1484_v16 = vadd.f32 %v1483_v39, %v1482_v29  ;;  %v1493_v17 = vadd.f32 %v1492_v4, %v1491_v2 }
 0x3cb   : > { %v1457_v14 = vmul.f32 %v1441_v62, %v1415_v5  ;;  %v1456_v32 = vmul.f32 %v1440_v13, %v1415_v5  ;;  %v1467_v40 = vadd.f32 %v1466_v53, %v1465_v26  ;;  %v1478_v63 = vadd.f32 %v1477_v54, %v1476_v30  ;;  %v7995_v53 = vld [vmem:[#allocation3 + $0x40] ss:$24 sps:$4 sm:$0xff]   ;;  %v8000_v54 = vld [vmem:[#allocation3 + $0x74] ss:$24 sps:$4 sm:$0xff]  }
 0x3cc   : > { %v1498_v15 = vrot.slane %v1497_v7, 4  ;;  %v1507_v1 = vrot.slane %v1506_v8, 4  ;;  %v1485_v43 = vrot.slane %v1484_v16, 1  ;;  %v1494_v44 = vrot.slane %v1493_v17, 1 }
 0x3cd   : > { %v1521_v33 = vsel %vm1468_vm9, %v1457_v14, 0.0  ;;  %v2956_v11 = vpack.c.bf16 %v1478_v63, %v1478_v63  ;;  %v8009_v63 = vld [vmem:[#allocation3 + $0x104] ss:$24 sps:$4 sm:$0xff]  }
 0x3ce   : > { %v1419_v18 = vpop.permute.xlu1 %1418  ;;  %v1499_v19 = vadd.f32 %v1498_v15, %v1497_v7  ;;  %v1508_v20 = vadd.f32 %v1507_v1, %v1506_v8  ;;  %v1486_v60 = vadd.f32 %v1485_v43, %v1484_v16  ;;  %v1495_v61 = vadd.f32 %v1494_v44, %v1493_v17  ;;  %v7992_v44 = vld [vmem:[#allocation3 + $0x10] ss:$24 sps:$4 sm:$0xff]  }
 0x3cf   : > { %v1458_v23 = vmul.f32 %v1442_v9, %v1419_v18  ;;  %v1459_v25 = vmul.f32 %v1443_v10, %v1419_v18  ;;  %v2955_v10 = vpack.c.bf16 %v1467_v40, %v1467_v40  ;;  %v8004_v40 = vld [vmem:[#allocation3 + $0xd0] ss:$24 sps:$4 sm:$0xff]  }
 0x3d0   : > { %v1500_v35 = vrot.slane %v1499_v19, 2  ;;  %v1509_v38 = vrot.slane %v1508_v20, 2  ;;  %v2957_v4 = vpack.c.bf16 %v1486_v60, %v1486_v60  ;;  %v2958_v37 = vpack.c.bf16 %v1495_v61, %v1495_v61  ;;  %v8042_v60 = vld [vmem:[#allocation8 + $0x60] ss:$24 sps:$4 sm:$0xff]   ;;  %v8050_v61 = vld [vmem:[#allocation8 + $0x94] ss:$24 sps:$4 sm:$0xff]  }
 0x3d1   : > { %v1513_v41 = vsel %vm920_vm1, %v1458_v23, 0.0  ;;  %v1522_v42 = vsel %vm1470_vm8, %v1459_v25, 0.0 }
 0x3d2   : > { %v1514_v47 = vadd.f32 %v1513_v41, %v1456_v32  ;;  %v1523_v48 = vadd.f32 %v1522_v42, %v1521_v33  ;;  %v1501_v49 = vadd.f32 %v1500_v35, %v1499_v19  ;;  %v1510_v50 = vadd.f32 %v1509_v38, %v1508_v20 }
 0x3d3   : > { %v3048_v14 = vunpack.c.l.b16 %v2957_v4  ;;  %v3049_v15 = vunpack.c.l.b16 %v2958_v37  ;;  %v3046_v19 = vunpack.c.l.b16 %v2955_v10  ;;  %v3047_v20 = vunpack.c.l.b16 %v2956_v11  ;;  %v8007_v4 = vld [vmem:[#allocation3 + $0x100] ss:$24 sps:$4 sm:$0xff]   ;;  %v8012_v37 = vld [vmem:[#allocation3 + $0x134] ss:$24 sps:$4 sm:$0xff]  }
 0x3d4   : > { %v1515_v29 = vrot.slane %v1514_v47, 4  ;;  %v1524_v2 = vrot.slane %v1523_v48, 4  ;;  %v1502_v57 = vrot.slane %v1501_v49, 1  ;;  %v1511_v59 = vrot.slane %v1510_v50, 1  ;;  %v8066_v10 = vld [vmem:[#allocation8 + $0x120] ss:$24 sps:$4 sm:$0xff]  }
 0x3d5   : > { %v3060_v32 = vsel %vm3054_vm10, %v3049_v15, %v3047_v20  ;;  %v3055_v33 = vsel %vm3054_vm10, %v3048_v14, %v3046_v19  ;;  %v8074_v11 = vld [vmem:[#allocation8 + $0x154] ss:$24 sps:$4 sm:$0xff]   ;;  %v8072_v14 = vld [vmem:[#allocation8 + $0x150] ss:$24 sps:$4 sm:$0xff]   ;;  %v8080_v15 = vld [vmem:[#allocation8 + $0x184] ss:$24 sps:$4 sm:$0xff]  }
 0x3d6   : > { %v1516_v27 = vadd.f32 %v1515_v29, %v1514_v47  ;;  %v1525_v36 = vadd.f32 %v1524_v2, %v1523_v48  ;;  %v1503_v62 = vadd.f32 %v1502_v57, %v1501_v49  ;;  %v1512_v31 = vadd.f32 %v1511_v59, %v1510_v50  ;;  %v7997_v48 = vld [vmem:[#allocation3 + $0x44] ss:$24 sps:$4 sm:$0xff]   ;;  %v8038_v50 = vld [vmem:[#allocation8 + $0x34] ss:$24 sps:$4 sm:$0xff]   ;;  %v8019_v19 = vld [vmem:[#allocation3 + $0x1c0] ss:$24 sps:$4 sm:$0xff]  }
 0x3d7   : > { %v8030_v49 = vld [vmem:[#allocation8] ss:$24 sps:$4 sm:$0xff]   ;;  %v8036_v29 = vld [vmem:[#allocation8 + $0x30] ss:$24 sps:$4 sm:$0xff]   ;;  %v8044_v2 = vld [vmem:[#allocation8 + $0x64] ss:$24 sps:$4 sm:$0xff]  }
 0x3d8   : > { %v1517_v0 = vrot.slane %v1516_v27, 2  ;;  %v1526_v39 = vrot.slane %v1525_v36, 2  ;;  %v2959_v8 = vpack.c.bf16 %v1503_v62, %v1503_v62  ;;  %v2960_v9 = vpack.c.bf16 %v1512_v31, %v1512_v31  ;;  %v7998_v57 = vld [vmem:[#allocation3 + $0x70] ss:$24 sps:$4 sm:$0xff]   ;;  %v8003_v59 = vld [vmem:[#allocation3 + $0xa4] ss:$24 sps:$4 sm:$0xff]  }
 0x3d9   : > { %v8048_v62 = vld [vmem:[#allocation8 + $0x90] ss:$24 sps:$4 sm:$0xff]   ;;  %v8056_v31 = vld [vmem:[#allocation8 + $0xc4] ss:$24 sps:$4 sm:$0xff]  }
 0x3da   : > { %v1518_v5 = vadd.f32 %v1517_v0, %v1516_v27  ;;  %v1527_v7 = vadd.f32 %v1526_v39, %v1525_v36  ;;  %v3050_v17 = vunpack.c.l.b16 %v2959_v8  ;;  %v3051_v18 = vunpack.c.l.b16 %v2960_v9  ;;  %v8001_v27 = vld [vmem:[#allocation3 + $0xa0] ss:$24 sps:$4 sm:$0xff]   ;;  %v8006_v36 = vld [vmem:[#allocation3 + $0xd4] ss:$24 sps:$4 sm:$0xff]   ;;  %v8010_v8 = vld [vmem:[#allocation3 + $0x130] ss:$24 sps:$4 sm:$0xff]  }
 0x3db   : > { %v8054_v0 = vld [vmem:[#allocation8 + $0xc0] ss:$24 sps:$4 sm:$0xff]   ;;  %v8062_v39 = vld [vmem:[#allocation8 + $0xf4] ss:$24 sps:$4 sm:$0xff]  }
 0x3dc   : > { %v1519_v12 = vrot.slane %v1518_v5, 1  ;;  %v1528_v13 = vrot.slane %v1527_v7, 1  ;;  %v3061_v35 = vsel %vm3056_vm11, %v3051_v18, %v3060_v32  ;;  %v3057_v38 = vsel %vm3056_vm11, %v3050_v17, %v3055_v33  ;;  %v8015_v9 = vld [vmem:[#allocation3 + $0x164] ss:$24 sps:$4 sm:$0xff]   ;;  %v8086_v18 = vld [vmem:[#allocation8 + $0x1b4] ss:$24 sps:$4 sm:$0xff]  }
 0x3dd   : > { %v8078_v17 = vld [vmem:[#allocation8 + $0x180] ss:$24 sps:$4 sm:$0xff]  }
 0x3de   : > { %v1520_v1 = vadd.f32 %v1519_v12, %v1518_v5  ;;  %v1529_v16 = vadd.f32 %v1528_v13, %v1527_v7  ;;  %v8060_v5 = vld [vmem:[#allocation8 + $0xf0] ss:$24 sps:$4 sm:$0xff]   ;;  %v8068_v7 = vld [vmem:[#allocation8 + $0x124] ss:$24 sps:$4 sm:$0xff]   ;;  %v8090_v32 = vld [vmem:[#allocation8 + $0x1e0] ss:$24 sps:$4 sm:$0xff]  }
 0x3df   : > { %v8013_v12 = vld [vmem:[#allocation3 + $0x160] ss:$24 sps:$4 sm:$0xff]   ;;  %v8018_v13 = vld [vmem:[#allocation3 + $0x194] ss:$24 sps:$4 sm:$0xff]  }
 0x3e0   : > { %v2961_v23 = vpack.c.bf16 %v1520_v1, %v1520_v1  ;;  %v2962_v25 = vpack.c.bf16 %v1529_v16, %v1529_v16  ;;  %v8016_v1 = vld [vmem:[#allocation3 + $0x190] ss:$24 sps:$4 sm:$0xff]   ;;  %v8021_v16 = vld [vmem:[#allocation3 + $0x1c4] ss:$24 sps:$4 sm:$0xff]   ;;  %v8024_v20 = vld [vmem:[#allocation3 + $0x1f4] ss:$24 sps:$4 sm:$0xff]  }
 0x3e1   : > { %v3037_v33 = vld [vmem:[#allocation3 + $0x250] sm:$0xff] }
 0x3e2   : > { %v3052_v26 = vunpack.c.l.b16 %v2961_v23  ;;  %v3053_v30 = vunpack.c.l.b16 %v2962_v25  ;;  %v8084_v23 = vld [vmem:[#allocation8 + $0x1b0] ss:$24 sps:$4 sm:$0xff]   ;;  %v8092_v25 = vld [vmem:[#allocation8 + $0x1e4] ss:$24 sps:$4 sm:$0xff]  }
 0x3e4   : > { %v3062_v41 = vsel %vm3058_vm12, %v3053_v30, %v3061_v35  ;;  %v3059_v42 = vsel %vm3058_vm12, %v3052_v26, %v3057_v38  ;;  %v8022_v26 = vld [vmem:[#allocation3 + $0x1f0] ss:$24 sps:$4 sm:$0xff]   ;;  %v8027_v30 = vld [vmem:[#allocation3 + $0x224] ss:$24 sps:$4 sm:$0xff]   ;;  %v8025_v38 = vld [vmem:[#allocation3 + $0x220] ss:$24 sps:$4 sm:$0xff]  }
 0x3e5   : > { %v3064_v43 = vpack.c.b16 %v3062_v41, %v3062_v41  ;;  %v10030_v47 = vpack.c.b16 %v3059_v42, %v3059_v42  ;;  %v8098_v35 = vld [vmem:[#allocation8 + $0x214] ss:$24 sps:$4 sm:$0xff]   ;;  %v7023_v41 = vcombine.high %v3037_v33, %v3037_v33  ;;  %v7022_v42 = vcombine.low %v3037_v33, %v3037_v33 }
 0x3e7   : > { %7025 = vmatprep.mubr.msk.bf16.mxu1 %vm1468_vm9, %v3064_v43  ;;  %7027 = vmatprep.mubr.msk.bf16.mxu0 %vm1468_vm9, %v3064_v43 }
 0x3e8   : > { %3496 = vmatmul.mubr.bf16.vlgmr.msra.gmra.mrb[28].mxu1 %v10030_v47  ;;  %3537 = vmatmul.mubr.bf16.vlgmr.msra.gmra.mrb[24].mxu0 %v10030_v47 }
 0x3e9   : > { %3546 = vmatpush1.bf16.msra.mxu1 %v7992_v44  ;;  %7029 = vmatprep.mubr.msk.bf16.mxu1 %vm1468_vm9, %v3064_v43  ;;  %v8096_v43 = vld [vmem:[#allocation8 + $0x210] ss:$24 sps:$4 sm:$0xff]   ;;  %v8104_v44 = vld [vmem:[#allocation8 + $0x244] ss:$24 sps:$4 sm:$0xff]  }
 0x3ea   : > { %3547 = vmatprep.subr.bf16.mxu1 %v7997_v48  ;;  %5168 = vmatpush1.bf16.msra.mxu0 %v8030_v49  ;;  %v3458_v48 = vsel %vm3444_vm7, %v7022_v42, 0  ;;  %v8035_v49 = vld [vmem:[#allocation8 + $0xc] ss:$24 sps:$4 sm:$0xff]  }
 0x3eb   : > { %5169 = vmatprep.subr.bf16.mxu0 %v8038_v50  ;;  %v8102_v50 = vld [vmem:[#allocation8 + $0x240] ss:$24 sps:$4 sm:$0xff]  }
 0x3ed   : > { %3548 = vmatpush1.bf16.msra.mxu1 %v7995_v53  ;;  %v8110_v53 = vld [vmem:[#allocation8 + $0x274] ss:$24 sps:$4 sm:$0xff]  }
 0x3ee   : > { %3549 = vmatprep.subr.bf16.mxu1 %v8000_v54  ;;  %5170 = vmatpush1.bf16.msra.mxu0 %v8036_v29  ;;  %v8033_v54 = vld [vmem:[#allocation8 + $0x8] ss:$24 sps:$4 sm:$0xff]   ;;  %v8041_v29 = vld [vmem:[#allocation8 + $0x3c] ss:$24 sps:$4 sm:$0xff]  }
 0x3ef   : > { %5171 = vmatprep.subr.bf16.mxu0 %v8044_v2  ;;  %v8108_v2 = vld [vmem:[#allocation8 + $0x270] ss:$24 sps:$4 sm:$0xff]  }
 0x3f1   : > { %3550 = vmatpush1.bf16.msra.mxu1 %v7998_v57  ;;  %v8039_v57 = vld [vmem:[#allocation8 + $0x38] ss:$24 sps:$4 sm:$0xff]  }
 0x3f2   : > { %3551 = vmatprep.subr.bf16.mxu1 %v8003_v59  ;;  %5172 = vmatpush1.bf16.msra.mxu0 %v8042_v60  ;;  %v8047_v59 = vld [vmem:[#allocation8 + $0x6c] ss:$24 sps:$4 sm:$0xff]   ;;  %v8045_v60 = vld [vmem:[#allocation8 + $0x68] ss:$24 sps:$4 sm:$0xff]  }
 0x3f3   : > { %5173 = vmatprep.subr.bf16.mxu0 %v8050_v61  ;;  %v8053_v61 = vld [vmem:[#allocation8 + $0x9c] ss:$24 sps:$4 sm:$0xff]  }
 0x3f5   : > { %3552 = vmatpush1.bf16.msra.mxu1 %v8001_v27  ;;  %v8051_v27 = vld [vmem:[#allocation8 + $0x98] ss:$24 sps:$4 sm:$0xff]  }
 0x3f6   : > { %3553 = vmatprep.subr.bf16.mxu1 %v8006_v36  ;;  %5174 = vmatpush1.bf16.msra.mxu0 %v8048_v62  ;;  %v8059_v36 = vld [vmem:[#allocation8 + $0xcc] ss:$24 sps:$4 sm:$0xff]   ;;  %v8057_v62 = vld [vmem:[#allocation8 + $0xc8] ss:$24 sps:$4 sm:$0xff]  }
 0x3f7   : > { %5175 = vmatprep.subr.bf16.mxu0 %v8056_v31  ;;  %v8065_v31 = vld [vmem:[#allocation8 + $0xfc] ss:$24 sps:$4 sm:$0xff]  }
 0x3f9   : > { %3554 = vmatpush1.bf16.msra.mxu1 %v8004_v40  ;;  %v8063_v40 = vld [vmem:[#allocation8 + $0xf8] ss:$24 sps:$4 sm:$0xff]  }
 0x3fa   : > { %3555 = vmatprep.subr.bf16.mxu1 %v8009_v63  ;;  %5176 = vmatpush1.bf16.msra.mxu0 %v8054_v0  ;;  %v8069_v63 = vld [vmem:[#allocation8 + $0x128] ss:$24 sps:$4 sm:$0xff]   ;;  %v8077_v0 = vld [vmem:[#allocation8 + $0x15c] ss:$24 sps:$4 sm:$0xff]  }
 0x3fb   : > { %5177 = vmatprep.subr.bf16.mxu0 %v8062_v39  ;;  %v8075_v39 = vld [vmem:[#allocation8 + $0x158] ss:$24 sps:$4 sm:$0xff]  }
 0x3fd   : > { %3556 = vmatpush1.bf16.msra.mxu1 %v8007_v4  ;;  %v8083_v4 = vld [vmem:[#allocation8 + $0x18c] ss:$24 sps:$4 sm:$0xff]  }
 0x3fe   : > { %3557 = vmatprep.subr.bf16.mxu1 %v8012_v37  ;;  %5178 = vmatpush1.bf16.msra.mxu0 %v8060_v5  ;;  %v8081_v37 = vld [vmem:[#allocation8 + $0x188] ss:$24 sps:$4 sm:$0xff]   ;;  %v8089_v5 = vld [vmem:[#allocation8 + $0x1bc] ss:$24 sps:$4 sm:$0xff]  }
 0x3ff   : > { %5179 = vmatprep.subr.bf16.mxu0 %v8068_v7  ;;  %v8087_v7 = vld [vmem:[#allocation8 + $0x1b8] ss:$24 sps:$4 sm:$0xff]  }
 0x401   : > { %3558 = vmatpush1.bf16.msra.mxu1 %v8010_v8  ;;  %v8095_v8 = vld [vmem:[#allocation8 + $0x1ec] ss:$24 sps:$4 sm:$0xff]  }
 0x402   : > { %3559 = vmatprep.subr.bf16.mxu1 %v8015_v9  ;;  %5180 = vmatpush1.bf16.msra.mxu0 %v8066_v10  ;;  %v8116_v9 = vld [vmem:[#allocation8 + $0x2a4] ss:$24 sps:$4 sm:$0xff]   ;;  %v8114_v10 = vld [vmem:[#allocation8 + $0x2a0] ss:$24 sps:$4 sm:$0xff]  }
 0x403   : > { %5181 = vmatprep.subr.bf16.mxu0 %v8074_v11  ;;  %v8093_v11 = vld [vmem:[#allocation8 + $0x1e8] ss:$24 sps:$4 sm:$0xff]  }
 0x405   : > { %3560 = vmatpush1.bf16.msra.mxu1 %v8013_v12  ;;  %v8101_v12 = vld [vmem:[#allocation8 + $0x21c] ss:$24 sps:$4 sm:$0xff]  }
 0x406   : > { %3561 = vmatprep.subr.bf16.mxu1 %v8018_v13  ;;  %5182 = vmatpush1.bf16.msra.mxu0 %v8072_v14  ;;  %v8122_v13 = vld [vmem:[#allocation8 + $0x2d4] ss:$24 sps:$4 sm:$0xff]   ;;  %v8120_v14 = vld [vmem:[#allocation8 + $0x2d0] ss:$24 sps:$4 sm:$0xff]  }
 0x407   : > { %5183 = vmatprep.subr.bf16.mxu0 %v8080_v15  ;;  %v8099_v15 = vld [vmem:[#allocation8 + $0x218] ss:$24 sps:$4 sm:$0xff]  }
 0x409   : > { %3562 = vmatpush1.bf16.msra.mxu1 %v8016_v1  ;;  %v8128_v1 = vld [vmem:[#allocation8 + $0x304] ss:$24 sps:$4 sm:$0xff]  }
 0x40a   : > { %3563 = vmatprep.subr.bf16.mxu1 %v8021_v16  ;;  %5184 = vmatpush1.bf16.msra.mxu0 %v8078_v17  ;;  %v8107_v16 = vld [vmem:[#allocation8 + $0x24c] ss:$24 sps:$4 sm:$0xff]   ;;  %v8105_v17 = vld [vmem:[#allocation8 + $0x248] ss:$24 sps:$4 sm:$0xff]  }
 0x40b   : > { %5185 = vmatprep.subr.bf16.mxu0 %v8086_v18  ;;  %v8113_v18 = vld [vmem:[#allocation8 + $0x27c] ss:$24 sps:$4 sm:$0xff]  }
 0x40d   : > { %3564 = vmatpush1.bf16.msra.mxu1 %v8019_v19  ;;  %v8111_v19 = vld [vmem:[#allocation8 + $0x278] ss:$24 sps:$4 sm:$0xff]  }
 0x40e   : > { %3565 = vmatprep.subr.bf16.mxu1 %v8024_v20  ;;  %5186 = vmatpush1.bf16.msra.mxu0 %v8084_v23  ;;  %v8119_v20 = vld [vmem:[#allocation8 + $0x2ac] ss:$24 sps:$4 sm:$0xff]   ;;  %v8117_v23 = vld [vmem:[#allocation8 + $0x2a8] ss:$24 sps:$4 sm:$0xff]  }
 0x40f   : > { %5187 = vmatprep.subr.bf16.mxu0 %v8092_v25  ;;  %v8125_v25 = vld [vmem:[#allocation8 + $0x2dc] ss:$24 sps:$4 sm:$0xff]  }
 0x411   : > { %3566 = vmatpush1.bf16.msra.mxu1 %v8022_v26  ;;  %v8123_v26 = vld [vmem:[#allocation8 + $0x2d8] ss:$24 sps:$4 sm:$0xff]  }
 0x412   : > { %3567 = vmatprep.subr.bf16.mxu1 %v8027_v30  ;;  %5188 = vmatpush1.bf16.msra.mxu0 %v8090_v32  ;;  %v8131_v30 = vld [vmem:[#allocation8 + $0x30c] ss:$24 sps:$4 sm:$0xff]   ;;  %v10040_v32 = vld [vmem:[#allocation6] sm:$0x3f] }
 0x413   : > { %5189 = vmatprep.subr.bf16.mxu0 %v8098_v35  ;;  %v3597_v33 = vrot.slane %v10040_v32, %v9953_v52  ;;  %v3605_v35 = vrot.slane %v10040_v32, %v9965_v22  ;;  %v3601_v42 = vrot.slane %v10040_v32, %v9950_v6 }
 0x415   : > { %3568 = vmatpush1.bf16.msra.mxu1 %v8025_v38 }
 0x416   : > { %7028 = vmatprep.subr.msk.bf16.mxu1 %vm3444_vm7, %v7023_v41  ;;  %5190 = vmatpush1.bf16.msra.mxu0 %v8096_v43  ;;  %v3609_v43 = vrot.slane %v10040_v32, %v9969_v34 }
 0x417   : > { %5191 = vmatprep.subr.bf16.mxu0 %v8104_v44 }
 0x419   : > { %3570 = vmatpush1.bf16.msra.mxu1 %v3458_v48 }
 0x41a   : > { %5290 = vmatprep.subr.bf16.mxu1 %v8035_v49  ;;  %5192 = vmatpush1.bf16.msra.mxu0 %v8102_v50 }
 0x41b   : > { %5193 = vmatprep.subr.bf16.mxu0 %v8110_v53 }
 0x41c   : > { %3578 = vmatmul.mubr.bf16.vlgmr.msra.gmra.mrb[32].mxu1 %v10030_v47  ;;  %v8071_v47 = vld [vmem:[#allocation8 + $0x12c] ss:$24 sps:$4 sm:$0xff]  }
 0x41d   : > { %5291 = vmatpush1.bf16.msra.mxu1 %v8033_v54 }
 0x41e   : > { %5292 = vmatprep.subr.bf16.mxu1 %v8041_v29  ;;  %5194 = vmatpush1.bf16.msra.mxu0 %v8108_v2 }
 0x41f   : > { %5195 = vmatprep.subr.bf16.mxu0 %v8116_v9  ;;  %v8146_v9 = vld [vmem:[#allocation8 + $0x394] ss:$24 sps:$4 sm:$0xff]  }
 0x421   : > { %5293 = vmatpush1.bf16.msra.mxu1 %v8039_v57 }
 0x422   : > { %5294 = vmatprep.subr.bf16.mxu1 %v8047_v59  ;;  %5196 = vmatpush1.bf16.msra.mxu0 %v8114_v10  ;;  %v8149_v10 = vld [vmem:[#allocation8 + $0x39c] ss:$24 sps:$4 sm:$0xff]  }
 0x423   : > { %5197 = vmatprep.subr.bf16.mxu0 %v8122_v13  ;;  %v8152_v13 = vld [vmem:[#allocation8 + $0x3c4] ss:$24 sps:$4 sm:$0xff]  }
 0x425   : > { %5295 = vmatpush1.bf16.msra.mxu1 %v8045_v60 }
 0x426   : > { %5296 = vmatprep.subr.bf16.mxu1 %v8053_v61  ;;  %5198 = vmatpush1.bf16.msra.mxu0 %v8120_v14  ;;  %v8155_v14 = vld [vmem:[#allocation8 + $0x3cc] ss:$24 sps:$4 sm:$0xff]  }
 0x427   : > { %5208 = vmatprep.subr.bf16.mxu0 %v8128_v1  ;;  %v8153_v1 = vld [vmem:[#allocation8 + $0x3c8] ss:$24 sps:$4 sm:$0xff]  }
 0x429   : > { %5297 = vmatpush1.bf16.msra.mxu1 %v8051_v27 }
 0x42a   : > { %5298 = vmatprep.subr.bf16.mxu1 %v8059_v36 }
 0x42d   : > { %5299 = vmatpush1.bf16.msra.mxu1 %v8057_v62 }
 0x42e   : > { %5300 = vmatprep.subr.bf16.mxu1 %v8065_v31 }
 0x431   : > { %5301 = vmatpush1.bf16.msra.mxu1 %v8063_v40 }
 0x432   : > { %5302 = vmatprep.subr.bf16.mxu1 %v8071_v47  ;;  %v8129_v47 = vld [vmem:[#allocation8 + $0x308] ss:$24 sps:$4 sm:$0xff]  }
 0x435   : > { %5303 = vmatpush1.bf16.msra.mxu1 %v8069_v63 }
 0x436   : > { %5304 = vmatprep.subr.bf16.mxu1 %v8077_v0 }
 0x439   : > { %5305 = vmatpush1.bf16.msra.mxu1 %v8075_v39  ;;  %v8132_v39 = vld [vmem:[#allocation8 + $0x330] ss:$24 sps:$4 sm:$0xff]  }
 0x43a   : > { %5306 = vmatprep.subr.bf16.mxu1 %v8083_v4  ;;  %v8135_v4 = vld [vmem:[#allocation8 + $0x338] ss:$24 sps:$4 sm:$0xff]  }
 0x43d   : > { %5307 = vmatpush1.bf16.msra.mxu1 %v8081_v37  ;;  %v8140_v37 = vld [vmem:[#allocation8 + $0x364] ss:$24 sps:$4 sm:$0xff]  }
 0x43e   : > { %5308 = vmatprep.subr.bf16.mxu1 %v8089_v5  ;;  %v8143_v5 = vld [vmem:[#allocation8 + $0x36c] ss:$24 sps:$4 sm:$0xff]  }
 0x441   : > { %5309 = vmatpush1.bf16.msra.mxu1 %v8087_v7  ;;  %v8138_v7 = vld [vmem:[#allocation8 + $0x360] ss:$24 sps:$4 sm:$0xff]  }
 0x442   : > { %5310 = vmatprep.subr.bf16.mxu1 %v8095_v8  ;;  %v8141_v8 = vld [vmem:[#allocation8 + $0x368] ss:$24 sps:$4 sm:$0xff]  }
 0x445   : > { %5311 = vmatpush1.bf16.msra.mxu1 %v8093_v11  ;;  %v8144_v11 = vld [vmem:[#allocation8 + $0x390] ss:$24 sps:$4 sm:$0xff]  }
 0x446   : > { %5312 = vmatprep.subr.bf16.mxu1 %v8101_v12  ;;  %v8147_v12 = vld [vmem:[#allocation8 + $0x398] ss:$24 sps:$4 sm:$0xff]  }
 0x449   : > { %5313 = vmatpush1.bf16.msra.mxu1 %v8099_v15  ;;  %v8150_v15 = vld [vmem:[#allocation8 + $0x3c0] ss:$24 sps:$4 sm:$0xff]  }
 0x44a   : > { %5314 = vmatprep.subr.bf16.mxu1 %v8107_v16  ;;  %v8158_v16 = vld [vmem:[#allocation8 + $0x3f4] ss:$24 sps:$4 sm:$0xff]  }
 0x44d   : > { %5315 = vmatpush1.bf16.msra.mxu1 %v8105_v17  ;;  %v8161_v17 = vld [vmem:[#allocation8 + $0x3fc] ss:$24 sps:$4 sm:$0xff]  }
 0x44e   : > { %5316 = vmatprep.subr.bf16.mxu1 %v8113_v18  ;;  %v8156_v18 = vld [vmem:[#allocation8 + $0x3f0] ss:$24 sps:$4 sm:$0xff]  }
 0x451   : > { %5317 = vmatpush1.bf16.msra.mxu1 %v8111_v19  ;;  %v8159_v19 = vld [vmem:[#allocation8 + $0x3f8] ss:$24 sps:$4 sm:$0xff]  }
 0x452   : > { %5318 = vmatprep.subr.bf16.mxu1 %v8119_v20  ;;  %v8164_v20 = vld [vmem:[#allocation8 + $0x424] ss:$24 sps:$4 sm:$0xff]  }
 0x455   : > { %5319 = vmatpush1.bf16.msra.mxu1 %v8117_v23  ;;  %v8167_v23 = vld [vmem:[#allocation8 + $0x42c] ss:$24 sps:$4 sm:$0xff]  }
 0x456   : > { %5320 = vmatprep.subr.bf16.mxu1 %v8125_v25  ;;  %v8162_v25 = vld [vmem:[#allocation8 + $0x420] ss:$24 sps:$4 sm:$0xff]  }
 0x459   : > { %5321 = vmatpush1.bf16.msra.mxu1 %v8123_v26  ;;  %v8165_v26 = vld [vmem:[#allocation8 + $0x428] ss:$24 sps:$4 sm:$0xff]  }
 0x45a   : > { %5331 = vmatprep.subr.bf16.mxu1 %v8131_v30  ;;  %v8170_v30 = vld [vmem:[#allocation8 + $0x454] ss:$24 sps:$4 sm:$0xff]  }
 0x4bb   : > { %v3497_v38 = vpop.f32.mrb[28].mxu1  ;;  %v3538_v41 = vpop.f32.mrb[24].mxu0 }
 0x4bc   : > { %v3586_v44 = vadd.f32 %v3497_v38, %v9976_v21  ;;  %v3588_v48 = vadd.f32 %v3538_v41, %v10013_v45  ;;  %v3499_v49 = vpop.f32.mrb[29].mxu1  ;;  %v3540_v50 = vpop.f32.mrb[25].mxu0  ;;  %v8126_v45 = vld [vmem:[#allocation8 + $0x300] ss:$24 sps:$4 sm:$0xff]   ;;  %v8176_v41 = vld [vmem:[#allocation8 + $0x484] ss:$24 sps:$4 sm:$0xff]  }
 0x4bd   : > { %v3587_v53 = vadd.f32 %v3499_v49, %v9978_v24  ;;  %v3589_v54 = vadd.f32 %v3540_v50, %v10016_v46  ;;  %v3501_v29 = vpop.f32.mrb[30].mxu1  ;;  %v3542_v2 = vpop.f32.mrb[26].mxu0  ;;  %v8134_v24 = vld [vmem:[#allocation8 + $0x334] ss:$24 sps:$4 sm:$0xff]   ;;  %v8171_v38 = vld [vmem:[#allocation8 + $0x458] ss:$24 sps:$4 sm:$0xff]  }
 0x4be   : > { %v3624_v57 = vadd.f32 %v3597_v33, %v3586_v44  ;;  %v10054_v59 = vadd.f32 %v3605_v35, %v3588_v48  ;;  %v3502_v60 = vpop.f32.mrb[31].mxu1  ;;  %v3543_v61 = vpop.f32.mrb[27].mxu0  ;;  %v8137_v46 = vld [vmem:[#allocation8 + $0x33c] ss:$24 sps:$4 sm:$0xff]   ;;  %v8168_v35 = vld [vmem:[#allocation8 + $0x450] ss:$24 sps:$4 sm:$0xff]  }
 0x4bf   : > { %v3625_v27 = vadd.f32 %v3601_v42, %v3587_v53  ;;  %v3627_v36 = vadd.f32 %v3609_v43, %v3589_v54  ;;  %v8173_v33 = vld [vmem:[#allocation8 + $0x45c] ss:$24 sps:$4 sm:$0xff]   ;;  %v8179_v42 = vld [vmem:[#allocation8 + $0x48c] ss:$24 sps:$4 sm:$0xff]   ;;  %v8174_v43 = vld [vmem:[#allocation8 + $0x480] ss:$24 sps:$4 sm:$0xff]  }
 0x4c0   : > { %v3630_v62 = vmax.f32 %v3624_v57, 0.0  ;;  %v8177_v44 = vld [vmem:[#allocation8 + $0x488] ss:$24 sps:$4 sm:$0xff]   ;;  %v8182_v48 = vld [vmem:[#allocation8 + $0x4b4] ss:$24 sps:$4 sm:$0xff]   ;;  %v10069_v2 = vsub.s32 4, %v9274_v28 }
 0x4c1   : > { %v3631_v31 = vmax.f32 %v3625_v27, 0.0  ;;  %v3633_v21 = vmax.f32 %v3627_v36, 0.0  ;;  %v8185_v49 = vld [vmem:[#allocation8 + $0x4bc] ss:$24 sps:$4 sm:$0xff]   ;;  %v8180_v50 = vld [vmem:[#allocation8 + $0x4b0] ss:$24 sps:$4 sm:$0xff]  }
 0x4c2   : > { %v10058_v63 = vpack.c.bf16 %v3630_v62, %v3630_v62  ;;  %v8183_v53 = vld [vmem:[#allocation8 + $0x4b8] ss:$24 sps:$4 sm:$0xff]   ;;  %v8188_v54 = vld [vmem:[#allocation8 + $0x4e4] ss:$24 sps:$4 sm:$0xff]   ;;  %v8189_v60 = vld [vmem:[#allocation8 + $0x4e8] ss:$24 sps:$4 sm:$0xff]   ;;  %v3613_v62 = vrot.slane %v10040_v32, %v10069_v2 }
 0x4c3   : > { %v10056_v40 = vpack.c.bf16 %v3631_v31, %v3631_v31  ;;  %v10062_v0 = vpack.c.bf16 %v3633_v21, %v3633_v21  ;;  %v8191_v29 = vld [vmem:[#allocation8 + $0x4ec] ss:$24 sps:$4 sm:$0xff]   ;;  %v8186_v57 = vld [vmem:[#allocation8 + $0x4e0] ss:$24 sps:$4 sm:$0xff]   ;;  %v10072_v61 = vsub.s32 5, %v9274_v28 }
 0x4c4   : > { %v8194_v27 = vld [vmem:[#allocation8 + $0x514] ss:$24 sps:$4 sm:$0xff]   ;;  %v8200_v28 = vld [vmem:[#allocation8 + $0x544] ss:$24 sps:$4 sm:$0xff]  }
 0x4c5   : > { %5199 = vmatprep.mubr.bf16.mxu0 %v10056_v40  ;;  %5322 = vmatprep.mubr.bf16.mxu1 %v10056_v40  ;;  %v8197_v36 = vld [vmem:[#allocation8 + $0x51c] ss:$24 sps:$4 sm:$0xff]   ;;  %v3617_v21 = vrot.slane %v10040_v32, %v10072_v61  ;;  %v8201_v32 = vld [vmem:[#allocation8 + $0x548] ss:$24 sps:$4 sm:$0xff]  }
 0x4c6   : > { %5200 = vmatmul.mubr.bf16.vlgmr.msra.gmra.mrb[28].mxu0 %v10058_v63  ;;  %5323 = vmatmul.mubr.bf16.vlgmr.msra.gmra.mrb[36].mxu1 %v10058_v63 }
 0x4c7   : > { %5209 = vmatpush1.bf16.msra.mxu0 %v8126_v45  ;;  %5332 = vmatpush1.bf16.msra.mxu1 %v8129_v47  ;;  %v8192_v45 = vld [vmem:[#allocation8 + $0x510] ss:$24 sps:$4 sm:$0xff]  }
 0x4c8   : > { %5240 = vmatprep.mubr.bf16.mxu0 %v10062_v0  ;;  %5363 = vmatprep.mubr.bf16.mxu1 %v10062_v0  ;;  %v8195_v47 = vld [vmem:[#allocation8 + $0x518] ss:$24 sps:$4 sm:$0xff]  }
 0x4c9   : > { %5210 = vmatprep.subr.bf16.mxu0 %v8134_v24  ;;  %5333 = vmatprep.subr.bf16.mxu1 %v8137_v46 }
 0x4cb   : > { %5211 = vmatpush1.bf16.msra.mxu0 %v8132_v39  ;;  %5334 = vmatpush1.bf16.msra.mxu1 %v8135_v4  ;;  %v8203_v39 = vld [vmem:[#allocation8 + $0x54c] ss:$24 sps:$4 sm:$0xff]  }
 0x4cc   : > { %5212 = vmatprep.subr.bf16.mxu0 %v8140_v37  ;;  %5335 = vmatprep.subr.bf16.mxu1 %v8143_v5 }
 0x4cf   : > { %5213 = vmatpush1.bf16.msra.mxu0 %v8138_v7  ;;  %5336 = vmatpush1.bf16.msra.mxu1 %v8141_v8 }
 0x4d0   : > { %5214 = vmatprep.subr.bf16.mxu0 %v8146_v9  ;;  %5337 = vmatprep.subr.bf16.mxu1 %v8149_v10  ;;  %v8198_v9 = vld [vmem:[#allocation8 + $0x540] ss:$24 sps:$4 sm:$0xff]   ;;  %v8206_v10 = vld [vmem:[#allocation8 + $0x574] ss:$24 sps:$4 sm:$0xff]  }
 0x4d3   : > { %5215 = vmatpush1.bf16.msra.mxu0 %v8144_v11  ;;  %5338 = vmatpush1.bf16.msra.mxu1 %v8147_v12  ;;  %v8204_v11 = vld [vmem:[#allocation8 + $0x570] ss:$24 sps:$4 sm:$0xff]  }
 0x4d4   : > { %5216 = vmatprep.subr.bf16.mxu0 %v8152_v13  ;;  %5339 = vmatprep.subr.bf16.mxu1 %v8155_v14  ;;  %v8207_v12 = vld [vmem:[#allocation8 + $0x578] ss:$24 sps:$4 sm:$0xff]   ;;  %v8215_v13 = vld [vmem:[#allocation8 + $0x5ac] ss:$24 sps:$4 sm:$0xff]  }
 0x4d5   : > { %v8210_v14 = vld [vmem:[#allocation8 + $0x5a0] ss:$24 sps:$4 sm:$0xff]  }
 0x4d7   : > { %5217 = vmatpush1.bf16.msra.mxu0 %v8150_v15  ;;  %5340 = vmatpush1.bf16.msra.mxu1 %v8153_v1  ;;  %v8213_v15 = vld [vmem:[#allocation8 + $0x5a8] ss:$24 sps:$4 sm:$0xff]   ;;  %v8218_v1 = vld [vmem:[#allocation8 + $0x5d4] ss:$24 sps:$4 sm:$0xff]  }
 0x4d8   : > { %5218 = vmatprep.subr.bf16.mxu0 %v8158_v16  ;;  %5341 = vmatprep.subr.bf16.mxu1 %v8161_v17  ;;  %v8221_v16 = vld [vmem:[#allocation8 + $0x5dc] ss:$24 sps:$4 sm:$0xff]   ;;  %v8216_v17 = vld [vmem:[#allocation8 + $0x5d0] ss:$24 sps:$4 sm:$0xff]  }
 0x4db   : > { %5219 = vmatpush1.bf16.msra.mxu0 %v8156_v18  ;;  %5342 = vmatpush1.bf16.msra.mxu1 %v8159_v19  ;;  %v8219_v18 = vld [vmem:[#allocation8 + $0x5d8] ss:$24 sps:$4 sm:$0xff]   ;;  %v3632_v19 = vmax.f32 %v10054_v59, 0.0 }
 0x4dc   : > { %5220 = vmatprep.subr.bf16.mxu0 %v8164_v20  ;;  %5343 = vmatprep.subr.bf16.mxu1 %v8167_v23  ;;  %v8224_v20 = vld [vmem:[#allocation8 + $0x604] ss:$24 sps:$4 sm:$0xff]   ;;  %v8228_v59 = vld [vmem:[#allocation8 + $0x630] ss:$24 sps:$4 sm:$0xff]  }
 0x4dd   : > { %v8227_v23 = vld [vmem:[#allocation8 + $0x60c] ss:$24 sps:$4 sm:$0xff]  }
 0x4df   : > { %5221 = vmatpush1.bf16.msra.mxu0 %v8162_v25  ;;  %5344 = vmatpush1.bf16.msra.mxu1 %v8165_v26  ;;  %v8222_v26 = vld [vmem:[#allocation8 + $0x600] ss:$24 sps:$4 sm:$0xff]  }
 0x4e0   : > { %5222 = vmatprep.subr.bf16.mxu0 %v8170_v30  ;;  %5345 = vmatprep.subr.bf16.mxu1 %v8173_v33  ;;  %v10083_v30 = vpack.c.bf16 %v3632_v19, %v3632_v19  ;;  %v8225_v33 = vld [vmem:[#allocation8 + $0x608] ss:$24 sps:$4 sm:$0xff]   ;;  %v8290_v19 = vld [vmem:[#allocation8 + $0x74] ss:$24 sps:$4 sm:$0xff]  }
 0x4e3   : > { %5223 = vmatpush1.bf16.msra.mxu0 %v8168_v35  ;;  %5346 = vmatpush1.bf16.msra.mxu1 %v8171_v38  ;;  %v8230_v38 = vld [vmem:[#allocation8 + $0x634] ss:$24 sps:$4 sm:$0xff]  }
 0x4e4   : > { %5224 = vmatprep.subr.bf16.mxu0 %v8176_v41  ;;  %5347 = vmatprep.subr.bf16.mxu1 %v8179_v42  ;;  %v8233_v41 = vld [vmem:[#allocation8 + $0x63c] ss:$24 sps:$4 sm:$0xff]   ;;  %v8231_v42 = vld [vmem:[#allocation8 + $0x638] ss:$24 sps:$4 sm:$0xff]  }
 0x4e7   : > { %5225 = vmatpush1.bf16.msra.mxu0 %v8174_v43  ;;  %5348 = vmatpush1.bf16.msra.mxu1 %v8177_v44  ;;  %v8236_v43 = vld [vmem:[#allocation8 + $0x664] ss:$24 sps:$4 sm:$0xff]  }
 0x4e8   : > { %5226 = vmatprep.subr.bf16.mxu0 %v8182_v48  ;;  %5349 = vmatprep.subr.bf16.mxu1 %v8185_v49  ;;  %v8239_v44 = vld [vmem:[#allocation8 + $0x66c] ss:$24 sps:$4 sm:$0xff]   ;;  %v8234_v48 = vld [vmem:[#allocation8 + $0x660] ss:$24 sps:$4 sm:$0xff]  }
 0x4e9   : > { %v8237_v49 = vld [vmem:[#allocation8 + $0x668] ss:$24 sps:$4 sm:$0xff]  }
 0x4eb   : > { %5227 = vmatpush1.bf16.msra.mxu0 %v8180_v50  ;;  %5350 = vmatpush1.bf16.msra.mxu1 %v8183_v53  ;;  %v8242_v50 = vld [vmem:[#allocation8 + $0x694] ss:$24 sps:$4 sm:$0xff]  }
 0x4ec   : > { %5228 = vmatprep.subr.bf16.mxu0 %v8188_v54  ;;  %5351 = vmatprep.subr.bf16.mxu1 %v8191_v29  ;;  %v8245_v53 = vld [vmem:[#allocation8 + $0x69c] ss:$24 sps:$4 sm:$0xff]   ;;  %v8240_v54 = vld [vmem:[#allocation8 + $0x690] ss:$24 sps:$4 sm:$0xff]  }
 0x4ed   : > { %v8243_v29 = vld [vmem:[#allocation8 + $0x698] ss:$24 sps:$4 sm:$0xff]  }
 0x4ef   : > { %v3579_v31 = vpop.f32.mrb[32].mxu1  ;;  %5229 = vmatpush1.bf16.msra.mxu0 %v8186_v57  ;;  %5352 = vmatpush1.bf16.msra.mxu1 %v8189_v60  ;;  %v8248_v57 = vld [vmem:[#allocation8 + $0x6c4] ss:$24 sps:$4 sm:$0xff]  }
 0x4f0   : > { %v3590_v24 = vadd.f32 %v3579_v31, %v9990_v51  ;;  %v3581_v46 = vpop.f32.mrb[33].mxu1  ;;  %5230 = vmatprep.subr.bf16.mxu0 %v8194_v27  ;;  %5353 = vmatprep.subr.bf16.mxu1 %v8197_v36  ;;  %v8209_v51 = vld [vmem:[#allocation8 + $0x57c] ss:$24 sps:$4 sm:$0xff]   ;;  %v8251_v60 = vld [vmem:[#allocation8 + $0x6cc] ss:$24 sps:$4 sm:$0xff]  }
 0x4f1   : > { %v3591_v4 = vadd.f32 %v3581_v46, %v9995_v56  ;;  %v3583_v37 = vpop.f32.mrb[34].mxu1  ;;  %v8212_v56 = vld [vmem:[#allocation8 + $0x5a4] ss:$24 sps:$4 sm:$0xff]   ;;  %v8246_v27 = vld [vmem:[#allocation8 + $0x6c0] ss:$24 sps:$4 sm:$0xff]  }
 0x4f2   : > { %v10080_v5 = vadd.f32 %v3613_v62, %v3590_v24  ;;  %v3584_v7 = vpop.f32.mrb[35].mxu1  ;;  %v8249_v36 = vld [vmem:[#allocation8 + $0x6c8] ss:$24 sps:$4 sm:$0xff]   ;;  %v8254_v62 = vld [vmem:[#allocation8 + $0x6f4] ss:$24 sps:$4 sm:$0xff]  }
 0x4f3   : > { %v3629_v8 = vadd.f32 %v3617_v21, %v3591_v4  ;;  %5231 = vmatpush1.bf16.msra.mxu0 %v8192_v45  ;;  %5354 = vmatpush1.bf16.msra.mxu1 %v8195_v47  ;;  %v8257_v31 = vld [vmem:[#allocation8 + $0x6fc] ss:$24 sps:$4 sm:$0xff]   ;;  %v8252_v21 = vld [vmem:[#allocation8 + $0x6f0] ss:$24 sps:$4 sm:$0xff]   ;;  %v8263_v24 = vld [vmem:[#allocation8 + $0x72c] ss:$24 sps:$4 sm:$0xff]  }
 0x4f4   : > { %5232 = vmatprep.subr.bf16.mxu0 %v8200_v28  ;;  %5355 = vmatprep.subr.bf16.mxu1 %v8203_v39  ;;  %v8255_v45 = vld [vmem:[#allocation8 + $0x6f8] ss:$24 sps:$4 sm:$0xff]   ;;  %v8260_v47 = vld [vmem:[#allocation8 + $0x724] ss:$24 sps:$4 sm:$0xff]   ;;  %v8261_v28 = vld [vmem:[#allocation8 + $0x728] ss:$24 sps:$4 sm:$0xff]  }
 0x4f5   : > { %v3635_v25 = vmax.f32 %v3629_v8, 0.0  ;;  %v8258_v46 = vld [vmem:[#allocation8 + $0x720] ss:$24 sps:$4 sm:$0xff]   ;;  %v8266_v39 = vld [vmem:[#allocation8 + $0x754] ss:$24 sps:$4 sm:$0xff]  }
 0x4f6   : > { %v8269_v4 = vld [vmem:[#allocation8 + $0x75c] ss:$24 sps:$4 sm:$0xff]   ;;  %v8264_v37 = vld [vmem:[#allocation8 + $0x750] ss:$24 sps:$4 sm:$0xff]  }
 0x4f7   : > { %5233 = vmatpush1.bf16.msra.mxu0 %v8198_v9  ;;  %5356 = vmatpush1.bf16.msra.mxu1 %v8201_v32  ;;  %v10085_v35 = vpack.c.bf16 %v3635_v25, %v3635_v25  ;;  %v8270_v7 = vld [vmem:[#allocation8 + $0x784] ss:$24 sps:$4 sm:$0x1f]   ;;  %v8267_v8 = vld [vmem:[#allocation8 + $0x758] ss:$24 sps:$4 sm:$0xff]  }
 0x4f8   : > { %5234 = vmatprep.subr.bf16.mxu0 %v8206_v10  ;;  %5357 = vmatprep.subr.bf16.mxu1 %v8209_v51  ;;  %v8274_v9 = vld [vmem:[#allocation8 + $0x780] ss:$24 sps:$4 sm:$0x1f]   ;;  %v8272_v32 = vld [vmem:[#allocation8 + $0x78c] ss:$24 sps:$4 sm:$0x1f]  }
 0x4f9   : > { %v8275_v10 = vld [vmem:[#allocation8 + $0x788] ss:$24 sps:$4 sm:$0x1f]   ;;  %v3634_v51 = vmax.f32 %v10080_v5, 0.0  ;;  %v8284_v5 = vld [vmem:[#allocation8 + $0x44] ss:$24 sps:$4 sm:$0xff]  }
 0x4fa   : > { %v8291_v25 = vld [vmem:[#allocation8 + $0x370] ss:$24 sps:$4 sm:$0xff]  }
 0x4fb   : > { %5235 = vmatpush1.bf16.msra.mxu0 %v8204_v11  ;;  %5358 = vmatpush1.bf16.msra.mxu1 %v8207_v12  ;;  %v5150_v11 = vsel %vm5148_vm14, %v8274_v9, 0  ;;  %v8278_v12 = vld [vmem:[#allocation8 + $0x14] ss:$24 sps:$4 sm:$0xff]   ;;  %v8347_v9 = vld [vmem:[#allocation8 + $0x524] ss:$24 sps:$4 sm:$0xff]  }
 0x4fc   : > { %5236 = vmatprep.subr.bf16.mxu0 %v8212_v56  ;;  %5359 = vmatprep.subr.bf16.mxu1 %v8215_v13  ;;  %v5156_v56 = vsel %vm5148_vm14, %v8275_v10, 0  ;;  %v8281_v13 = vld [vmem:[#allocation8 + $0x314] ss:$24 sps:$4 sm:$0xff]   ;;  %v8345_v10 = vld [vmem:[#allocation8 + $0x520] ss:$24 sps:$4 sm:$0xff]  }
 0x4ff   : > { %5237 = vmatpush1.bf16.msra.mxu0 %v8210_v14  ;;  %5360 = vmatpush1.bf16.msra.mxu1 %v8213_v15  ;;  %v8276_v14 = vld [vmem:[#allocation8 + $0x10] ss:$24 sps:$4 sm:$0xff]   ;;  %v10098_v15 = vpack.c.bf16 %v3634_v51, %v3634_v51  ;;  %v8350_v51 = vld [vmem:[#allocation8 + $0x254] ss:$24 sps:$4 sm:$0xff]  }
 0x500   : > { %5238 = vmatprep.subr.bf16.mxu0 %v8218_v1  ;;  %5361 = vmatprep.subr.bf16.mxu1 %v8221_v16  ;;  %v8279_v1 = vld [vmem:[#allocation8 + $0x310] ss:$24 sps:$4 sm:$0xff]   ;;  %v8287_v16 = vld [vmem:[#allocation8 + $0x344] ss:$24 sps:$4 sm:$0xff]  }
 0x503   : > { %5239 = vmatpush1.bf16.msra.mxu0 %v8216_v17  ;;  %5362 = vmatpush1.bf16.msra.mxu1 %v8219_v18  ;;  %v8282_v17 = vld [vmem:[#allocation8 + $0x40] ss:$24 sps:$4 sm:$0xff]  }
 0x504   : > { %5249 = vmatprep.subr.bf16.mxu0 %v8224_v20  ;;  %5372 = vmatprep.subr.bf16.mxu1 %v8227_v23  ;;  %v8285_v18 = vld [vmem:[#allocation8 + $0x340] ss:$24 sps:$4 sm:$0xff]   ;;  %v8293_v20 = vld [vmem:[#allocation8 + $0x374] ss:$24 sps:$4 sm:$0xff]   ;;  %v8288_v23 = vld [vmem:[#allocation8 + $0x70] ss:$24 sps:$4 sm:$0xff]  }
 0x506   : > { %5241 = vmatmul.mubr.bf16.vlgmr.msra.gmra.mrb[28].mxu0 %v10083_v30  ;;  %5364 = vmatmul.mubr.bf16.vlgmr.msra.gmra.mrb[36].mxu1 %v10083_v30 }
 0x507   : > { %5250 = vmatpush1.bf16.msra.mxu0 %v8222_v26  ;;  %7277 = vmatprep.mubr.msk.bf16.mxu0 %vm5144_vm13, %v10085_v35  ;;  %v8296_v26 = vld [vmem:[#allocation8 + $0xa4] ss:$24 sps:$4 sm:$0xff]  }
 0x508   : > { %5373 = vmatpush1.bf16.msra.mxu1 %v8225_v33  ;;  %7279 = vmatprep.mubr.msk.bf16.mxu1 %vm5144_vm13, %v10085_v35  ;;  %v8299_v33 = vld [vmem:[#allocation8 + $0x3a4] ss:$24 sps:$4 sm:$0xff]  }
 0x509   : > { %5251 = vmatprep.subr.bf16.mxu0 %v8230_v38  ;;  %5374 = vmatprep.subr.bf16.mxu1 %v8233_v41  ;;  %v8294_v38 = vld [vmem:[#allocation8 + $0xa0] ss:$24 sps:$4 sm:$0xff]   ;;  %v8302_v41 = vld [vmem:[#allocation8 + $0xd4] ss:$24 sps:$4 sm:$0xff]  }
 0x50b   : > { %5252 = vmatpush1.bf16.msra.mxu0 %v8228_v59  ;;  %v8305_v59 = vld [vmem:[#allocation8 + $0x3d4] ss:$24 sps:$4 sm:$0xff]  }
 0x50c   : > { %5375 = vmatpush1.bf16.msra.mxu1 %v8231_v42  ;;  %5253 = vmatprep.subr.bf16.mxu0 %v8236_v43  ;;  %v8303_v42 = vld [vmem:[#allocation8 + $0x3d0] ss:$24 sps:$4 sm:$0xff]   ;;  %v8308_v43 = vld [vmem:[#allocation8 + $0x104] ss:$24 sps:$4 sm:$0xff]  }
 0x50d   : > { %5376 = vmatprep.subr.bf16.mxu1 %v8239_v44  ;;  %v8311_v44 = vld [vmem:[#allocation8 + $0x404] ss:$24 sps:$4 sm:$0xff]  }
 0x50f   : > { %5254 = vmatpush1.bf16.msra.mxu0 %v8234_v48  ;;  %v8306_v48 = vld [vmem:[#allocation8 + $0x100] ss:$24 sps:$4 sm:$0xff]  }
 0x510   : > { %5377 = vmatpush1.bf16.msra.mxu1 %v8237_v49  ;;  %5255 = vmatprep.subr.bf16.mxu0 %v8242_v50  ;;  %v8309_v49 = vld [vmem:[#allocation8 + $0x400] ss:$24 sps:$4 sm:$0xff]   ;;  %v8314_v50 = vld [vmem:[#allocation8 + $0x134] ss:$24 sps:$4 sm:$0xff]  }
 0x511   : > { %5378 = vmatprep.subr.bf16.mxu1 %v8245_v53  ;;  %v8317_v53 = vld [vmem:[#allocation8 + $0x434] ss:$24 sps:$4 sm:$0xff]  }
 0x513   : > { %5256 = vmatpush1.bf16.msra.mxu0 %v8240_v54  ;;  %v8312_v54 = vld [vmem:[#allocation8 + $0x130] ss:$24 sps:$4 sm:$0xff]  }
 0x514   : > { %5379 = vmatpush1.bf16.msra.mxu1 %v8243_v29  ;;  %5257 = vmatprep.subr.bf16.mxu0 %v8248_v57  ;;  %v8315_v29 = vld [vmem:[#allocation8 + $0x430] ss:$24 sps:$4 sm:$0xff]   ;;  %v8320_v57 = vld [vmem:[#allocation8 + $0x164] ss:$24 sps:$4 sm:$0xff]  }
 0x515   : > { %5380 = vmatprep.subr.bf16.mxu1 %v8251_v60  ;;  %v8323_v60 = vld [vmem:[#allocation8 + $0x464] ss:$24 sps:$4 sm:$0xff]  }
 0x517   : > { %5258 = vmatpush1.bf16.msra.mxu0 %v8246_v27  ;;  %v8318_v27 = vld [vmem:[#allocation8 + $0x160] ss:$24 sps:$4 sm:$0xff]  }
 0x518   : > { %5381 = vmatpush1.bf16.msra.mxu1 %v8249_v36  ;;  %5259 = vmatprep.subr.bf16.mxu0 %v8254_v62  ;;  %v8321_v36 = vld [vmem:[#allocation8 + $0x460] ss:$24 sps:$4 sm:$0xff]   ;;  %v8326_v62 = vld [vmem:[#allocation8 + $0x194] ss:$24 sps:$4 sm:$0xff]  }
 0x519   : > { %5382 = vmatprep.subr.bf16.mxu1 %v8257_v31  ;;  %v8329_v31 = vld [vmem:[#allocation8 + $0x494] ss:$24 sps:$4 sm:$0xff]  }
 0x51b   : > { %5260 = vmatpush1.bf16.msra.mxu0 %v8252_v21  ;;  %v8324_v21 = vld [vmem:[#allocation8 + $0x190] ss:$24 sps:$4 sm:$0xff]  }
 0x51c   : > { %5383 = vmatpush1.bf16.msra.mxu1 %v8255_v45  ;;  %5261 = vmatprep.subr.bf16.mxu0 %v8260_v47  ;;  %v8327_v45 = vld [vmem:[#allocation8 + $0x490] ss:$24 sps:$4 sm:$0xff]   ;;  %v8332_v47 = vld [vmem:[#allocation8 + $0x1c4] ss:$24 sps:$4 sm:$0xff]  }
 0x51d   : > { %5384 = vmatprep.subr.bf16.mxu1 %v8263_v24  ;;  %v8335_v24 = vld [vmem:[#allocation8 + $0x4c4] ss:$24 sps:$4 sm:$0xff]  }
 0x51f   : > { %5262 = vmatpush1.bf16.msra.mxu0 %v8258_v46  ;;  %v8330_v46 = vld [vmem:[#allocation8 + $0x1c0] ss:$24 sps:$4 sm:$0xff]  }
 0x520   : > { %5385 = vmatpush1.bf16.msra.mxu1 %v8261_v28  ;;  %5263 = vmatprep.subr.bf16.mxu0 %v8266_v39  ;;  %v8333_v28 = vld [vmem:[#allocation8 + $0x4c0] ss:$24 sps:$4 sm:$0xff]   ;;  %v8338_v39 = vld [vmem:[#allocation8 + $0x1f4] ss:$24 sps:$4 sm:$0xff]  }
 0x521   : > { %5386 = vmatprep.subr.bf16.mxu1 %v8269_v4  ;;  %v8341_v4 = vld [vmem:[#allocation8 + $0x4f4] ss:$24 sps:$4 sm:$0xff]  }
 0x523   : > { %5264 = vmatpush1.bf16.msra.mxu0 %v8264_v37  ;;  %v8336_v37 = vld [vmem:[#allocation8 + $0x1f0] ss:$24 sps:$4 sm:$0xff]  }
 0x524   : > { %5387 = vmatpush1.bf16.msra.mxu1 %v8267_v8  ;;  %7276 = vmatprep.subr.msk.bf16.mxu0 %vm5148_vm14, %v8270_v7  ;;  %v8339_v7 = vld [vmem:[#allocation8 + $0x4f0] ss:$24 sps:$4 sm:$0xff]   ;;  %v8344_v8 = vld [vmem:[#allocation8 + $0x224] ss:$24 sps:$4 sm:$0xff]  }
 0x525   : > { %7278 = vmatprep.subr.msk.bf16.mxu1 %vm5148_vm14, %v8272_v32  ;;  %v8342_v32 = vld [vmem:[#allocation8 + $0x220] ss:$24 sps:$4 sm:$0xff]  }
 0x527   : > { %5266 = vmatpush1.bf16.msra.mxu0 %v5150_v11  ;;  %v8353_v11 = vld [vmem:[#allocation8 + $0x554] ss:$24 sps:$4 sm:$0xff]  }
 0x528   : > { %5389 = vmatpush1.bf16.msra.mxu1 %v5156_v56  ;;  %5413 = vmatprep.subr.bf16.mxu0 %v8278_v12  ;;  %v8348_v12 = vld [vmem:[#allocation8 + $0x250] ss:$24 sps:$4 sm:$0xff]  }
 0x529   : > { %5454 = vmatprep.subr.bf16.mxu1 %v8281_v13  ;;  %v8351_v56 = vld [vmem:[#allocation8 + $0x550] ss:$24 sps:$4 sm:$0xff]   ;;  %v8356_v13 = vld [vmem:[#allocation8 + $0x284] ss:$24 sps:$4 sm:$0xff]  }
 0x52a   : > { %5282 = vmatmul.mubr.bf16.vlgmr.msra.gmra.mrb[28].mxu0 %v10098_v15 }
 0x52b   : > { %5405 = vmatmul.mubr.bf16.vlgmr.msra.gmra.mrb[36].mxu1 %v10098_v15  ;;  %5414 = vmatpush1.bf16.msra.mxu0 %v8276_v14  ;;  %v8359_v14 = vld [vmem:[#allocation8 + $0x584] ss:$24 sps:$4 sm:$0xff]  }
 0x52c   : > { %5445 = vmatprep.mubr.bf16.mxu0 %v10056_v40  ;;  %5455 = vmatpush1.bf16.msra.mxu1 %v8279_v1  ;;  %v8297_v40 = vld [vmem:[#allocation8 + $0x3a0] ss:$24 sps:$4 sm:$0xff]  }
 0x52d   : > { %5486 = vmatprep.mubr.bf16.mxu1 %v10062_v0  ;;  %5415 = vmatprep.subr.bf16.mxu0 %v8284_v5  ;;  %v8300_v0 = vld [vmem:[#allocation8 + $0xd0] ss:$24 sps:$4 sm:$0xff]   ;;  %v8354_v1 = vld [vmem:[#allocation8 + $0x280] ss:$24 sps:$4 sm:$0xff]  }
 0x52e   : > { %5456 = vmatprep.subr.bf16.mxu1 %v8287_v16  ;;  %v8357_v5 = vld [vmem:[#allocation8 + $0x580] ss:$24 sps:$4 sm:$0xff]   ;;  %v8362_v16 = vld [vmem:[#allocation8 + $0x2b4] ss:$24 sps:$4 sm:$0xff]  }
 0x52f   : > { %5416 = vmatpush1.bf16.msra.mxu0 %v8282_v17  ;;  %v8365_v17 = vld [vmem:[#allocation8 + $0x5b4] ss:$24 sps:$4 sm:$0xff]  }
 0x530   : > { %5457 = vmatpush1.bf16.msra.mxu1 %v8285_v18  ;;  %5417 = vmatprep.subr.bf16.mxu0 %v8290_v19  ;;  %v8360_v18 = vld [vmem:[#allocation8 + $0x2b0] ss:$24 sps:$4 sm:$0xff]  }
 0x531   : > { %5458 = vmatprep.subr.bf16.mxu1 %v8293_v20  ;;  %v8363_v19 = vld [vmem:[#allocation8 + $0x5b0] ss:$24 sps:$4 sm:$0xff]   ;;  %v8368_v20 = vld [vmem:[#allocation8 + $0x2e4] ss:$24 sps:$4 sm:$0xff]  }
 0x533   : > { %5418 = vmatpush1.bf16.msra.mxu0 %v8288_v23  ;;  %v8371_v23 = vld [vmem:[#allocation8 + $0x5e4] ss:$24 sps:$4 sm:$0xff]  }
 0x534   : > { %5459 = vmatpush1.bf16.msra.mxu1 %v8291_v25  ;;  %5419 = vmatprep.subr.bf16.mxu0 %v8296_v26  ;;  %v8366_v25 = vld [vmem:[#allocation8 + $0x2e0] ss:$24 sps:$4 sm:$0xff]  }
 0x535   : > { %5460 = vmatprep.subr.bf16.mxu1 %v8299_v33  ;;  %v8369_v26 = vld [vmem:[#allocation8 + $0x5e0] ss:$24 sps:$4 sm:$0xff]   ;;  %v8374_v33 = vld [vmem:[#allocation8 + $0x614] ss:$24 sps:$4 sm:$0xff]  }
 0x537   : > { %5420 = vmatpush1.bf16.msra.mxu0 %v8294_v38  ;;  %v8377_v38 = vld [vmem:[#allocation11 + $0xc] ss:$24 sps:$4 sm:$0xff]  }
 0x538   : > { %5461 = vmatpush1.bf16.msra.mxu1 %v8297_v40  ;;  %5421 = vmatprep.subr.bf16.mxu0 %v8302_v41  ;;  %v8372_v40 = vld [vmem:[#allocation8 + $0x610] ss:$24 sps:$4 sm:$0xff]   ;;  %v8375_v41 = vld [vmem:[#allocation11 + $0x8] ss:$24 sps:$4 sm:$0xff]  }
 0x539   : > { %5462 = vmatprep.subr.bf16.mxu1 %v8305_v59  ;;  %v8380_v59 = vld [vmem:[#allocation8 + $0x644] ss:$24 sps:$4 sm:$0xff]  }
 0x53b   : > { %5422 = vmatpush1.bf16.msra.mxu0 %v8300_v0  ;;  %v8383_v0 = vld [vmem:[#allocation11 + $0x3c] ss:$24 sps:$4 sm:$0xff]  }
 0x53c   : > { %5463 = vmatpush1.bf16.msra.mxu1 %v8303_v42  ;;  %5423 = vmatprep.subr.bf16.mxu0 %v8308_v43  ;;  %v8378_v42 = vld [vmem:[#allocation8 + $0x640] ss:$24 sps:$4 sm:$0xff]   ;;  %v8381_v43 = vld [vmem:[#allocation11 + $0x38] ss:$24 sps:$4 sm:$0xff]  }
 0x53d   : > { %5464 = vmatprep.subr.bf16.mxu1 %v8311_v44  ;;  %v8386_v44 = vld [vmem:[#allocation8 + $0x674] ss:$24 sps:$4 sm:$0xff]  }
 0x53f   : > { %5424 = vmatpush1.bf16.msra.mxu0 %v8306_v48  ;;  %v8389_v48 = vld [vmem:[#allocation11 + $0x6c] ss:$24 sps:$4 sm:$0xff]  }
 0x540   : > { %5465 = vmatpush1.bf16.msra.mxu1 %v8309_v49  ;;  %5425 = vmatprep.subr.bf16.mxu0 %v8314_v50  ;;  %v8384_v49 = vld [vmem:[#allocation8 + $0x670] ss:$24 sps:$4 sm:$0xff]   ;;  %v8392_v50 = vld [vmem:[#allocation8 + $0x6a4] ss:$24 sps:$4 sm:$0xff]  }
 0x541   : > { %5466 = vmatprep.subr.bf16.mxu1 %v8317_v53  ;;  %v8390_v53 = vld [vmem:[#allocation8 + $0x6a0] ss:$24 sps:$4 sm:$0xff]  }
 0x543   : > { %5426 = vmatpush1.bf16.msra.mxu0 %v8312_v54  ;;  %v8398_v54 = vld [vmem:[#allocation8 + $0x6d4] ss:$24 sps:$4 sm:$0xff]  }
 0x544   : > { %5467 = vmatpush1.bf16.msra.mxu1 %v8315_v29  ;;  %5427 = vmatprep.subr.bf16.mxu0 %v8320_v57  ;;  %v8401_v29 = vld [vmem:[#allocation11 + $0xcc] ss:$24 sps:$4 sm:$0xff]   ;;  %v8396_v57 = vld [vmem:[#allocation8 + $0x6d0] ss:$24 sps:$4 sm:$0xff]  }
 0x545   : > { %5468 = vmatprep.subr.bf16.mxu1 %v8323_v60  ;;  %v8399_v60 = vld [vmem:[#allocation11 + $0xc8] ss:$24 sps:$4 sm:$0xff]  }
 0x547   : > { %5428 = vmatpush1.bf16.msra.mxu0 %v8318_v27  ;;  %v8404_v27 = vld [vmem:[#allocation8 + $0x704] ss:$24 sps:$4 sm:$0xff]  }
 0x548   : > { %5469 = vmatpush1.bf16.msra.mxu1 %v8321_v36  ;;  %5429 = vmatprep.subr.bf16.mxu0 %v8326_v62  ;;  %v8407_v36 = vld [vmem:[#allocation11 + $0xfc] ss:$24 sps:$4 sm:$0xff]   ;;  %v8402_v62 = vld [vmem:[#allocation8 + $0x700] ss:$24 sps:$4 sm:$0xff]  }
 0x549   : > { %5470 = vmatprep.subr.bf16.mxu1 %v8329_v31  ;;  %v8405_v31 = vld [vmem:[#allocation11 + $0xf8] ss:$24 sps:$4 sm:$0xff]  }
 0x54b   : > { %5430 = vmatpush1.bf16.msra.mxu0 %v8324_v21  ;;  %v8410_v21 = vld [vmem:[#allocation8 + $0x734] ss:$24 sps:$4 sm:$0xff]  }
 0x54c   : > { %5471 = vmatpush1.bf16.msra.mxu1 %v8327_v45  ;;  %5431 = vmatprep.subr.bf16.mxu0 %v8332_v47  ;;  %v8413_v45 = vld [vmem:[#allocation11 + $0x12c] ss:$24 sps:$4 sm:$0xff]   ;;  %v8408_v47 = vld [vmem:[#allocation8 + $0x730] ss:$24 sps:$4 sm:$0xff]  }
 0x54d   : > { %5472 = vmatprep.subr.bf16.mxu1 %v8335_v24  ;;  %v8411_v24 = vld [vmem:[#allocation11 + $0x128] ss:$24 sps:$4 sm:$0xff]  }
 0x54f   : > { %5432 = vmatpush1.bf16.msra.mxu0 %v8330_v46  ;;  %v8416_v46 = vld [vmem:[#allocation8 + $0x764] ss:$24 sps:$4 sm:$0xff]  }
 0x550   : > { %5473 = vmatpush1.bf16.msra.mxu1 %v8333_v28  ;;  %5433 = vmatprep.subr.bf16.mxu0 %v8338_v39  ;;  %v8419_v28 = vld [vmem:[#allocation11 + $0x15c] ss:$24 sps:$4 sm:$0xff]   ;;  %v8414_v39 = vld [vmem:[#allocation8 + $0x760] ss:$24 sps:$4 sm:$0xff]  }
 0x551   : > { %5474 = vmatprep.subr.bf16.mxu1 %v8341_v4  ;;  %v8417_v4 = vld [vmem:[#allocation11 + $0x158] ss:$24 sps:$4 sm:$0xff]  }
 0x553   : > { %5434 = vmatpush1.bf16.msra.mxu0 %v8336_v37  ;;  %v8420_v37 = vld [vmem:[#allocation8 + $0x794] ss:$24 sps:$4 sm:$0x1f]  }
 0x554   : > { %5475 = vmatpush1.bf16.msra.mxu1 %v8339_v7  ;;  %5435 = vmatprep.subr.bf16.mxu0 %v8344_v8  ;;  %v8425_v7 = vld [vmem:[#allocation8 + $0x790] ss:$24 sps:$4 sm:$0x1f]   ;;  %v8424_v8 = vld [vmem:[#allocation11 + $0x18c] ss:$24 sps:$4 sm:$0xff]  }
 0x555   : > { %5476 = vmatprep.subr.bf16.mxu1 %v8347_v9  ;;  %v8422_v9 = vld [vmem:[#allocation11 + $0x188] ss:$24 sps:$4 sm:$0xff]  }
 0x557   : > { %5436 = vmatpush1.bf16.msra.mxu0 %v8342_v32  ;;  %v5162_v32 = vsel %vm5148_vm14, %v8425_v7, 0  ;;  %v8506_v7 = vld [vmem:[#allocation11 + $0x274] ss:$24 sps:$4 sm:$0xff]  }
 0x558   : > { %5477 = vmatpush1.bf16.msra.mxu1 %v8345_v10  ;;  %5437 = vmatprep.subr.bf16.mxu0 %v8350_v51  ;;  %v8428_v10 = vld [vmem:[#allocation11 + $0x4] ss:$24 sps:$4 sm:$0xff]  }
 0x559   : > { %5478 = vmatprep.subr.bf16.mxu1 %v8353_v11  ;;  %v8431_v51 = vld [vmem:[#allocation11 + $0x1bc] ss:$24 sps:$4 sm:$0xff]   ;;  %v8426_v11 = vld [vmem:[#allocation11] ss:$24 sps:$4 sm:$0xff]  }
 0x55b   : > { %5438 = vmatpush1.bf16.msra.mxu0 %v8348_v12  ;;  %v8429_v12 = vld [vmem:[#allocation11 + $0x1b8] ss:$24 sps:$4 sm:$0xff]  }
 0x55c   : > { %5479 = vmatpush1.bf16.msra.mxu1 %v8351_v56  ;;  %5439 = vmatprep.subr.bf16.mxu0 %v8356_v13  ;;  %v8434_v56 = vld [vmem:[#allocation11 + $0x34] ss:$24 sps:$4 sm:$0xff]  }
 0x55d   : > { %5480 = vmatprep.subr.bf16.mxu1 %v8359_v14  ;;  %v8437_v13 = vld [vmem:[#allocation11 + $0x1ec] ss:$24 sps:$4 sm:$0xff]   ;;  %v8432_v14 = vld [vmem:[#allocation11 + $0x30] ss:$24 sps:$4 sm:$0xff]  }
 0x55f   : > { %5440 = vmatpush1.bf16.msra.mxu0 %v8354_v1  ;;  %v8435_v1 = vld [vmem:[#allocation11 + $0x1e8] ss:$24 sps:$4 sm:$0xff]  }
 0x560   : > { %5481 = vmatpush1.bf16.msra.mxu1 %v8357_v5  ;;  %5441 = vmatprep.subr.bf16.mxu0 %v8362_v16  ;;  %v8440_v5 = vld [vmem:[#allocation11 + $0x64] ss:$24 sps:$4 sm:$0xff]  }
 0x561   : > { %5482 = vmatprep.subr.bf16.mxu1 %v8365_v17  ;;  %v8443_v16 = vld [vmem:[#allocation11 + $0x21c] ss:$24 sps:$4 sm:$0xff]   ;;  %v8438_v17 = vld [vmem:[#allocation11 + $0x60] ss:$24 sps:$4 sm:$0xff]  }
 0x563   : > { %5442 = vmatpush1.bf16.msra.mxu0 %v8360_v18  ;;  %v8441_v18 = vld [vmem:[#allocation11 + $0x218] ss:$24 sps:$4 sm:$0xff]  }
 0x564   : > { %5483 = vmatpush1.bf16.msra.mxu1 %v8363_v19  ;;  %5443 = vmatprep.subr.bf16.mxu0 %v8368_v20  ;;  %v8446_v19 = vld [vmem:[#allocation11 + $0x94] ss:$24 sps:$4 sm:$0xff]  }
 0x565   : > { %5484 = vmatprep.subr.bf16.mxu1 %v8371_v23  ;;  %v8449_v20 = vld [vmem:[#allocation11 + $0x24c] ss:$24 sps:$4 sm:$0xff]   ;;  %v8447_v23 = vld [vmem:[#allocation11 + $0x248] ss:$24 sps:$4 sm:$0xff]  }
 0x567   : > { %5444 = vmatpush1.bf16.msra.mxu0 %v8366_v25  ;;  %v8452_v25 = vld [vmem:[#allocation11 + $0xc4] ss:$24 sps:$4 sm:$0xff]  }
 0x568   : > { %5485 = vmatpush1.bf16.msra.mxu1 %v8369_v26  ;;  %5495 = vmatprep.subr.bf16.mxu0 %v8374_v33  ;;  %v8455_v26 = vld [vmem:[#allocation11 + $0x27c] ss:$24 sps:$4 sm:$0xff]   ;;  %v8450_v33 = vld [vmem:[#allocation11 + $0xc0] ss:$24 sps:$4 sm:$0xff]  }
 0x569   : > { %6185 = vmatprep.subr.bf16.mxu1 %v8377_v38  ;;  %v8453_v38 = vld [vmem:[#allocation11 + $0x278] ss:$24 sps:$4 sm:$0xff]  }
 0x56a   : > { %5446 = vmatmul.mubr.bf16.vlgmr.msra.gmra.mrb[32].mxu0 %v10058_v63  ;;  %v8387_v63 = vld [vmem:[#allocation11 + $0x68] ss:$24 sps:$4 sm:$0xff]  }
 0x56b   : > { %5487 = vmatmul.mubr.bf16.vlgmr.msra.gmra.mrb[40].mxu1 %v10083_v30  ;;  %5496 = vmatpush1.bf16.msra.mxu0 %v8372_v40  ;;  %v8395_v30 = vld [vmem:[#allocation11 + $0x9c] ss:$24 sps:$4 sm:$0xff]  }
 0x56c   : > { %7281 = vmatprep.mubr.msk.bf16.mxu0 %vm5144_vm13, %v10085_v35  ;;  %6186 = vmatpush1.bf16.msra.mxu1 %v8375_v41  ;;  %v8393_v35 = vld [vmem:[#allocation11 + $0x98] ss:$24 sps:$4 sm:$0xff]   ;;  %v8458_v40 = vld [vmem:[#allocation11 + $0xf4] ss:$24 sps:$4 sm:$0xff]  }
 0x56d   : > { %5497 = vmatprep.subr.bf16.mxu0 %v8380_v59  ;;  %6187 = vmatprep.subr.bf16.mxu1 %v8383_v0  ;;  %v8461_v41 = vld [vmem:[#allocation11 + $0x2ac] ss:$24 sps:$4 sm:$0xff]   ;;  %v8456_v59 = vld [vmem:[#allocation11 + $0xf0] ss:$24 sps:$4 sm:$0xff]  }
 0x56e   : > { %6217 = vmatprep.mubr.bf16.mxu1 %v9351_v58  ;;  %v8459_v0 = vld [vmem:[#allocation11 + $0x2a8] ss:$24 sps:$4 sm:$0xff]  }
 0x56f   : > { %5498 = vmatpush1.bf16.msra.mxu0 %v8378_v42  ;;  %v8464_v42 = vld [vmem:[#allocation11 + $0x124] ss:$24 sps:$4 sm:$0xff]  }
 0x570   : > { %6188 = vmatpush1.bf16.msra.mxu1 %v8381_v43  ;;  %5499 = vmatprep.subr.bf16.mxu0 %v8386_v44  ;;  %v8467_v43 = vld [vmem:[#allocation11 + $0x2dc] ss:$24 sps:$4 sm:$0xff]   ;;  %v8462_v44 = vld [vmem:[#allocation11 + $0x120] ss:$24 sps:$4 sm:$0xff]  }
 0x571   : > { %6189 = vmatprep.subr.bf16.mxu1 %v8389_v48  ;;  %v8465_v48 = vld [vmem:[#allocation11 + $0x2d8] ss:$24 sps:$4 sm:$0xff]  }
 0x573   : > { %5500 = vmatpush1.bf16.msra.mxu0 %v8384_v49  ;;  %v8470_v49 = vld [vmem:[#allocation11 + $0x154] ss:$24 sps:$4 sm:$0xff]  }
 0x574   : > { %6190 = vmatpush1.bf16.msra.mxu1 %v8387_v63  ;;  %5501 = vmatprep.subr.bf16.mxu0 %v8392_v50  ;;  %v8473_v63 = vld [vmem:[#allocation11 + $0x14] ss:$24 sps:$4 sm:$0xff]   ;;  %v8468_v50 = vld [vmem:[#allocation11 + $0x150] ss:$24 sps:$4 sm:$0xff]  }
 0x575   : > { %6191 = vmatprep.subr.bf16.mxu1 %v8395_v30  ;;  %v8471_v30 = vld [vmem:[#allocation11 + $0x10] ss:$24 sps:$4 sm:$0xff]  }
 0x577   : > { %5502 = vmatpush1.bf16.msra.mxu0 %v8390_v53  ;;  %v8476_v53 = vld [vmem:[#allocation11 + $0x184] ss:$24 sps:$4 sm:$0xff]  }
 0x578   : > { %6192 = vmatpush1.bf16.msra.mxu1 %v8393_v35  ;;  %5503 = vmatprep.subr.bf16.mxu0 %v8398_v54  ;;  %v8479_v35 = vld [vmem:[#allocation11 + $0x44] ss:$24 sps:$4 sm:$0xff]   ;;  %v8474_v54 = vld [vmem:[#allocation11 + $0x180] ss:$24 sps:$4 sm:$0xff]  }
 0x579   : > { %6193 = vmatprep.subr.bf16.mxu1 %v8401_v29  ;;  %v8477_v29 = vld [vmem:[#allocation11 + $0x40] ss:$24 sps:$4 sm:$0xff]  }
 0x57b   : > { %5504 = vmatpush1.bf16.msra.mxu0 %v8396_v57  ;;  %v8482_v57 = vld [vmem:[#allocation11 + $0x1b4] ss:$24 sps:$4 sm:$0xff]  }
 0x57c   : > { %6194 = vmatpush1.bf16.msra.mxu1 %v8399_v60  ;;  %5505 = vmatprep.subr.bf16.mxu0 %v8404_v27  ;;  %v8485_v60 = vld [vmem:[#allocation11 + $0x74] ss:$24 sps:$4 sm:$0xff]   ;;  %v8480_v27 = vld [vmem:[#allocation11 + $0x1b0] ss:$24 sps:$4 sm:$0xff]  }
 0x57d   : > { %6195 = vmatprep.subr.bf16.mxu1 %v8407_v36  ;;  %v8483_v36 = vld [vmem:[#allocation11 + $0x70] ss:$24 sps:$4 sm:$0xff]  }
 0x57f   : > { %5506 = vmatpush1.bf16.msra.mxu0 %v8402_v62  ;;  %v8488_v62 = vld [vmem:[#allocation11 + $0x1e4] ss:$24 sps:$4 sm:$0xff]  }
 0x580   : > { %6196 = vmatpush1.bf16.msra.mxu1 %v8405_v31  ;;  %5507 = vmatprep.subr.bf16.mxu0 %v8410_v21  ;;  %v8491_v31 = vld [vmem:[#allocation11 + $0xa4] ss:$24 sps:$4 sm:$0xff]   ;;  %v8486_v21 = vld [vmem:[#allocation11 + $0x1e0] ss:$24 sps:$4 sm:$0xff]  }
 0x581   : > { %6197 = vmatprep.subr.bf16.mxu1 %v8413_v45  ;;  %v8489_v45 = vld [vmem:[#allocation11 + $0xa0] ss:$24 sps:$4 sm:$0xff]  }
 0x583   : > { %5508 = vmatpush1.bf16.msra.mxu0 %v8408_v47  ;;  %v8494_v47 = vld [vmem:[#allocation11 + $0x214] ss:$24 sps:$4 sm:$0xff]  }
 0x584   : > { %6198 = vmatpush1.bf16.msra.mxu1 %v8411_v24  ;;  %5509 = vmatprep.subr.bf16.mxu0 %v8416_v46  ;;  %v8497_v24 = vld [vmem:[#allocation11 + $0xd4] ss:$24 sps:$4 sm:$0xff]   ;;  %v8492_v46 = vld [vmem:[#allocation11 + $0x210] ss:$24 sps:$4 sm:$0xff]  }
 0x585   : > { %6199 = vmatprep.subr.bf16.mxu1 %v8419_v28  ;;  %v8500_v28 = vld [vmem:[#allocation11 + $0x244] ss:$24 sps:$4 sm:$0xff]  }
 0x587   : > { %5510 = vmatpush1.bf16.msra.mxu0 %v8414_v39  ;;  %v8503_v39 = vld [vmem:[#allocation11 + $0x104] ss:$24 sps:$4 sm:$0xff]  }
 0x588   : > { %6200 = vmatpush1.bf16.msra.mxu1 %v8417_v4  ;;  %7280 = vmatprep.subr.msk.bf16.mxu0 %vm5148_vm14, %v8420_v37  ;;  %v8498_v4 = vld [vmem:[#allocation11 + $0x240] ss:$24 sps:$4 sm:$0xff]  }
 0x589   : > { %6201 = vmatprep.subr.bf16.mxu1 %v8424_v8  ;;  %v8501_v37 = vld [vmem:[#allocation11 + $0x100] ss:$24 sps:$4 sm:$0xff]   ;;  %v8509_v8 = vld [vmem:[#allocation11 + $0x134] ss:$24 sps:$4 sm:$0xff]  }
 0x58b   : > { %5512 = vmatpush1.bf16.msra.mxu0 %v5162_v32  ;;  %v8507_v32 = vld [vmem:[#allocation11 + $0x130] ss:$24 sps:$4 sm:$0xff]  }
 0x58c   : > { %6202 = vmatpush1.bf16.msra.mxu1 %v8422_v9  ;;  %6144 = vmatprep.subr.bf16.mxu0 %v8428_v10  ;;  %v8504_v9 = vld [vmem:[#allocation11 + $0x270] ss:$24 sps:$4 sm:$0xff]   ;;  %v8512_v10 = vld [vmem:[#allocation11 + $0x2a4] ss:$24 sps:$4 sm:$0xff]  }
 0x58d   : > { %6203 = vmatprep.subr.bf16.mxu1 %v8431_v51  ;;  %v8515_v51 = vld [vmem:[#allocation11 + $0x164] ss:$24 sps:$4 sm:$0xff]  }
 0x58e   : > { %5528 = vmatmul.mubr.bf16.vlgmr.msra.gmra.mrb[36].mxu0 %v10098_v15  ;;  %v8444_v15 = vld [vmem:[#allocation11 + $0x90] ss:$24 sps:$4 sm:$0xff]  }
 0x58f   : > { %6145 = vmatpush1.bf16.msra.mxu0 %v8426_v11  ;;  %6176 = vmatprep.mubr.bf16.mxu0 %v9351_v58  ;;  %v8510_v11 = vld [vmem:[#allocation11 + $0x2a0] ss:$24 sps:$4 sm:$0xff]  }
 0x590   : > { %6204 = vmatpush1.bf16.msra.mxu1 %v8429_v12  ;;  %6146 = vmatprep.subr.bf16.mxu0 %v8434_v56  ;;  %v8513_v12 = vld [vmem:[#allocation11 + $0x160] ss:$24 sps:$4 sm:$0xff]   ;;  %v8518_v56 = vld [vmem:[#allocation11 + $0x2d4] ss:$24 sps:$4 sm:$0xff]  }
 0x591   : > { %6205 = vmatprep.subr.bf16.mxu1 %v8437_v13  ;;  %v8521_v13 = vld [vmem:[#allocation11 + $0x194] ss:$24 sps:$4 sm:$0xff]  }
 0x593   : > { %6147 = vmatpush1.bf16.msra.mxu0 %v8432_v14  ;;  %v8516_v14 = vld [vmem:[#allocation11 + $0x2d0] ss:$24 sps:$4 sm:$0xff]  }
 0x594   : > { %6206 = vmatpush1.bf16.msra.mxu1 %v8435_v1  ;;  %6148 = vmatprep.subr.bf16.mxu0 %v8440_v5  ;;  %v8519_v1 = vld [vmem:[#allocation11 + $0x190] ss:$24 sps:$4 sm:$0xff]   ;;  %v8524_v5 = vld [vmem:[#allocation11 + $0x1c4] ss:$24 sps:$4 sm:$0xff]  }
 0x595   : > { %6207 = vmatprep.subr.bf16.mxu1 %v8443_v16  ;;  %v8522_v16 = vld [vmem:[#allocation11 + $0x1c0] ss:$24 sps:$4 sm:$0xff]  }
 0x597   : > { %6149 = vmatpush1.bf16.msra.mxu0 %v8438_v17  ;;  %v8527_v17 = vld [vmem:[#allocation11 + $0x1f4] ss:$24 sps:$4 sm:$0xff]  }
 0x598   : > { %6208 = vmatpush1.bf16.msra.mxu1 %v8441_v18  ;;  %6150 = vmatprep.subr.bf16.mxu0 %v8446_v19  ;;  %v8525_v18 = vld [vmem:[#allocation11 + $0x1f0] ss:$24 sps:$4 sm:$0xff]   ;;  %v8530_v19 = vld [vmem:[#allocation11 + $0x224] ss:$24 sps:$4 sm:$0xff]  }
 0x599   : > { %6209 = vmatprep.subr.bf16.mxu1 %v8449_v20  ;;  %v8528_v20 = vld [vmem:[#allocation11 + $0x220] ss:$24 sps:$4 sm:$0xff]  }
 0x59b   : > { %6151 = vmatpush1.bf16.msra.mxu0 %v8444_v15  ;;  %v8533_v15 = vld [vmem:[#allocation11 + $0x254] ss:$24 sps:$4 sm:$0xff]  }
 0x59c   : > { %6210 = vmatpush1.bf16.msra.mxu1 %v8447_v23  ;;  %6152 = vmatprep.subr.bf16.mxu0 %v8452_v25  ;;  %v8531_v23 = vld [vmem:[#allocation11 + $0x250] ss:$24 sps:$4 sm:$0xff]   ;;  %v8536_v25 = vld [vmem:[#allocation11 + $0x284] ss:$24 sps:$4 sm:$0xff]  }
 0x59d   : > { %6211 = vmatprep.subr.bf16.mxu1 %v8455_v26  ;;  %v8534_v26 = vld [vmem:[#allocation11 + $0x280] ss:$24 sps:$4 sm:$0xff]  }
 0x59f   : > { %6153 = vmatpush1.bf16.msra.mxu0 %v8450_v33  ;;  %v8539_v33 = vld [vmem:[#allocation11 + $0x2b4] ss:$24 sps:$4 sm:$0xff]  }
 0x5a0   : > { %6212 = vmatpush1.bf16.msra.mxu1 %v8453_v38  ;;  %6154 = vmatprep.subr.bf16.mxu0 %v8458_v40  ;;  %v8537_v38 = vld [vmem:[#allocation11 + $0x2b0] ss:$24 sps:$4 sm:$0xff]   ;;  %v8542_v40 = vld [vmem:[#allocation11 + $0x2e4] ss:$24 sps:$4 sm:$0xff]  }
 0x5a1   : > { %6213 = vmatprep.subr.bf16.mxu1 %v8461_v41  ;;  %v8540_v41 = vld [vmem:[#allocation11 + $0x2e0] ss:$24 sps:$4 sm:$0xff]  }
 0x5a3   : > { %6155 = vmatpush1.bf16.msra.mxu0 %v8456_v59  ;;  %v8543_v59 = vld [vmem:[#allocation14 + $0x40] sm:$0xff]  }
 0x5a4   : > { %6214 = vmatpush1.bf16.msra.mxu1 %v8459_v0  ;;  %6156 = vmatprep.subr.bf16.mxu0 %v8464_v42  ;;  %v8544_v0 = vld [vmem:[#allocation14] sm:$0xff]   ;;  %v8545_v42 = vld [vmem:[#allocation14 + $0x48] sm:$0xff]  }
 0x5a5   : > { %6215 = vmatprep.subr.bf16.mxu1 %v8467_v43  ;;  %v10117_v43 = vld [vmem:[#allocation9] sm:$0x3f] }
 0x5a7   : > { %6157 = vmatpush1.bf16.msra.mxu0 %v8462_v44  ;;  %v8546_v44 = vld [vmem:[#allocation14 + $0x8] sm:$0xff]  }
 0x5a8   : > { %6216 = vmatpush1.bf16.msra.mxu1 %v8465_v48  ;;  %6158 = vmatprep.subr.bf16.mxu0 %v8470_v49  ;;  %v3909_v48 = vrot.slane %v10117_v43, %v10069_v2  ;;  %v3913_v49 = vrot.slane %v10117_v43, %v10072_v61 }
 0x5a9   : > { %6226 = vmatprep.subr.bf16.mxu1 %v8473_v63 }
 0x5ab   : > { %6218 = vmatmul.mubr.bf16.vlgmr.msra.gmra.mrb[36].mxu1 %v9377_v3  ;;  %6159 = vmatpush1.bf16.msra.mxu0 %v8468_v50 }
 0x5ac   : > { %6227 = vmatpush1.bf16.msra.mxu1 %v8471_v30  ;;  %6160 = vmatprep.subr.bf16.mxu0 %v8476_v53 }
 0x5ad   : > { %6228 = vmatprep.subr.bf16.mxu1 %v8479_v35  ;;  %6258 = vmatprep.mubr.bf16.mxu1 %v9351_v58  ;;  %v8495_v58 = vld [vmem:[#allocation11 + $0xd0] ss:$24 sps:$4 sm:$0xff]  }
 0x5af   : > { %6161 = vmatpush1.bf16.msra.mxu0 %v8474_v54 }
 0x5b0   : > { %6229 = vmatpush1.bf16.msra.mxu1 %v8477_v29  ;;  %6162 = vmatprep.subr.bf16.mxu0 %v8482_v57  ;;  %v8547_v29 = vld [vmem:[#allocation14 + $0x50] sm:$0xff]  }
 0x5b1   : > { %6230 = vmatprep.subr.bf16.mxu1 %v8485_v60 }
 0x5b3   : > { %6163 = vmatpush1.bf16.msra.mxu0 %v8480_v27 }
 0x5b4   : > { %6231 = vmatpush1.bf16.msra.mxu1 %v8483_v36  ;;  %6164 = vmatprep.subr.bf16.mxu0 %v8488_v62  ;;  %v8548_v36 = vld [vmem:[#allocation14 + $0x10] sm:$0xff]  }
 0x5b5   : > { %6232 = vmatprep.subr.bf16.mxu1 %v8491_v31 }
 0x5b7   : > { %6165 = vmatpush1.bf16.msra.mxu0 %v8486_v21  ;;  %v8549_v21 = vld [vmem:[#allocation14 + $0x58] sm:$0xff]  }
 0x5b8   : > { %6233 = vmatpush1.bf16.msra.mxu1 %v8489_v45  ;;  %6166 = vmatprep.subr.bf16.mxu0 %v8494_v47  ;;  %v8550_v45 = vld [vmem:[#allocation14 + $0x18] sm:$0xff]   ;;  %v8551_v47 = vld [vmem:[#allocation14 + $0x60] sm:$0xff]  }
 0x5b9   : > { %6234 = vmatprep.subr.bf16.mxu1 %v8497_v24  ;;  %v8552_v24 = vld [vmem:[#allocation14 + $0x20] sm:$0xff]  }
 0x5bb   : > { %6167 = vmatpush1.bf16.msra.mxu0 %v8492_v46  ;;  %v8553_v46 = vld [vmem:[#allocation14 + $0x68] sm:$0xff]  }
 0x5bc   : > { %6235 = vmatpush1.bf16.msra.mxu1 %v8495_v58  ;;  %6168 = vmatprep.subr.bf16.mxu0 %v8500_v28  ;;  %v8554_v58 = vld [vmem:[#allocation14 + $0x28] sm:$0xff]   ;;  %v8555_v28 = vld [vmem:[#allocation14 + $0x70] sm:$0xff]  }
 0x5bd   : > { %6236 = vmatprep.subr.bf16.mxu1 %v8503_v39  ;;  %v8556_v39 = vld [vmem:[#allocation14 + $0x30] sm:$0xff]  }
 0x5bf   : > { %6169 = vmatpush1.bf16.msra.mxu0 %v8498_v4  ;;  %v8557_v4 = vld [vmem:[#allocation14 + $0x78] sm:$0xff]  }
 0x5c0   : > { %6237 = vmatpush1.bf16.msra.mxu1 %v8501_v37  ;;  %6170 = vmatprep.subr.bf16.mxu0 %v8506_v7  ;;  %v8558_v37 = vld [vmem:[#allocation14 + $0x38] sm:$0xff]  }
 0x5c1   : > { %6238 = vmatprep.subr.bf16.mxu1 %v8509_v8 }
 0x5c3   : > { %6171 = vmatpush1.bf16.msra.mxu0 %v8504_v9 }
 0x5c4   : > { %6239 = vmatpush1.bf16.msra.mxu1 %v8507_v32  ;;  %6172 = vmatprep.subr.bf16.mxu0 %v8512_v10 }
 0x5c5   : > { %6240 = vmatprep.subr.bf16.mxu1 %v8515_v51 }
 0x5c7   : > { %6173 = vmatpush1.bf16.msra.mxu0 %v8510_v11 }
 0x5c8   : > { %6241 = vmatpush1.bf16.msra.mxu1 %v8513_v12  ;;  %6174 = vmatprep.subr.bf16.mxu0 %v8518_v56 }
 0x5c9   : > { %6242 = vmatprep.subr.bf16.mxu1 %v8521_v13 }
 0x5cb   : > { %6175 = vmatpush1.bf16.msra.mxu0 %v8516_v14  ;;  %v5632_v14 = vld [vmem:[#allocation12] sm:$0x3f] }
 0x5cc   : > { %6243 = vmatpush1.bf16.msra.mxu1 %v8519_v1  ;;  %7452 = vmatprep.subr.bf16.mxu0 %v8543_v59  ;;  %v3893_v1 = vrot.slane %v10117_v43, %v9953_v52 }
 0x5cd   : > { %6244 = vmatprep.subr.bf16.mxu1 %v8524_v5  ;;  %v5637_v5 = vrot.slane %v5632_v14, %v9953_v52 }
 0x5ce   : > { %6177 = vmatmul.mubr.bf16.vlgmr.msra.gmra.mrb[28].mxu0 %v9377_v3 }
 0x5cf   : > { %7453 = vmatpush3.bf16.msra.mxu0 %v8544_v0 }
 0x5d0   : > { %6245 = vmatpush1.bf16.msra.mxu1 %v8522_v16  ;;  %7454 = vmatprep.subr.bf16.mxu0 %v8545_v42  ;;  %v3897_v16 = vrot.slane %v10117_v43, %v9950_v6 }
 0x5d1   : > { %6246 = vmatprep.subr.bf16.mxu1 %v8527_v17  ;;  %v5641_v17 = vrot.slane %v5632_v14, %v9950_v6 }
 0x5d3   : > { %7455 = vmatpush3.bf16.msra.mxu0 %v8546_v44 }
 0x5d4   : > { %6247 = vmatpush1.bf16.msra.mxu1 %v8525_v18  ;;  %7456 = vmatprep.subr.bf16.mxu0 %v8547_v29  ;;  %v7484_v18 = vadd.f32 %v5637_v5, %v3893_v1  ;;  %v7382_v1 = vld [vmem:[%s10237_s20] ss:$0 sm:$0xff] }
 0x5d5   : > { %6248 = vmatprep.subr.bf16.mxu1 %v8530_v19  ;;  %v7486_v19 = vadd.f32 %v5641_v17, %v3897_v16 }
 0x5d7   : > { %7457 = vmatpush3.bf16.msra.mxu0 %v8548_v36 }
 0x5d8   : > { %6249 = vmatpush1.bf16.msra.mxu1 %v8528_v20  ;;  %7458 = vmatprep.subr.bf16.mxu0 %v8549_v21  ;;  %v3901_v20 = vrot.slane %v10117_v43, %v9965_v22 }
 0x5d9   : > { %6250 = vmatprep.subr.bf16.mxu1 %v8533_v15  ;;  %v5645_v15 = vrot.slane %v5632_v14, %v9965_v22 }
 0x5db   : > { %7459 = vmatpush3.bf16.msra.mxu0 %v8550_v45 }
 0x5dc   : > { %6251 = vmatpush1.bf16.msra.mxu1 %v8531_v23  ;;  %7460 = vmatprep.subr.bf16.mxu0 %v8551_v47  ;;  %v3905_v23 = vrot.slane %v10117_v43, %v9969_v34 }
 0x5dd   : > { %6252 = vmatprep.subr.bf16.mxu1 %v8536_v25  ;;  %v5649_v25 = vrot.slane %v5632_v14, %v9969_v34 }
 0x5df   : > { %7461 = vmatpush3.bf16.msra.mxu0 %v8552_v24  ;;  %v7490_v0 = vadd.f32 %v5649_v25, %v3905_v23 }
 0x5e0   : > { %6253 = vmatpush1.bf16.msra.mxu1 %v8534_v26  ;;  %7462 = vmatprep.subr.bf16.mxu0 %v8553_v46 }
 0x5e1   : > { %6254 = vmatprep.subr.bf16.mxu1 %v8539_v33 }
 0x5e3   : > { %7463 = vmatpush3.bf16.msra.mxu0 %v8554_v58 }
 0x5e4   : > { %6255 = vmatpush1.bf16.msra.mxu1 %v8537_v38  ;;  %7464 = vmatprep.subr.bf16.mxu0 %v8555_v28 }
 0x5e5   : > { %6256 = vmatprep.subr.bf16.mxu1 %v8542_v40 }
 0x5e7   : > { %7465 = vmatpush3.bf16.msra.mxu0 %v8556_v39 }
 0x5e8   : > { %6257 = vmatpush1.bf16.msra.mxu1 %v8540_v41  ;;  %7466 = vmatprep.subr.bf16.mxu0 %v8557_v4  ;;  %v7488_v41 = vadd.f32 %v5645_v15, %v3901_v20 }
 0x5eb   : > { %6259 = vmatmul.mubr.bf16.vlgmr.msra.gmra.mrb[44].mxu1 %v9377_v3  ;;  %7467 = vmatpush3.bf16.msra.mxu0 %v8558_v37 }
 0x63d   : > { %v5447_v63 = vpop.f32.mrb[32].mxu0 }
 0x63e   : > { %v5448_v50 = vadd.f32 %v5447_v63, %v3909_v48  ;;  %v5488_v30 = vpop.f32.mrb[40].mxu1  ;;  %v5449_v3 = vpop.f32.mrb[33].mxu0 }
 0x63f   : > { %v5450_v53 = vadd.f32 %v5449_v3, %v3913_v49  ;;  %v5490_v35 = vpop.f32.mrb[41].mxu1  ;;  %v5451_v54 = vpop.f32.mrb[34].mxu0 }
 0x640   : > { %v5489_v57 = vadd.f32 %v5488_v30, %v5448_v50  ;;  %v5492_v60 = vpop.f32.mrb[42].mxu1  ;;  %v5452_v27 = vpop.f32.mrb[35].mxu0 }
 0x641   : > { %v5491_v62 = vadd.f32 %v5490_v35, %v5450_v53  ;;  %v5493_v31 = vpop.f32.mrb[43].mxu1  ;;  %v5653_v53 = vrot.slane %v5632_v14, %v10069_v2  ;;  %v5657_v35 = vrot.slane %v5632_v14, %v10072_v61 }
 0x661   : > { %v5529_v7 = vpop.f32.mrb[36].mxu0 }
 0x662   : > { %v5530_v8 = vadd.f32 %v5529_v7, %v5489_v57  ;;  %v5531_v9 = vpop.f32.mrb[37].mxu0 }
 0x663   : > { %v5532_v32 = vadd.f32 %v5531_v9, %v5491_v62  ;;  %v5533_v10 = vpop.f32.mrb[38].mxu0  ;;  %v8584_v9 = vld [vmem:[#allocation2] sm:$0xff] }
 0x664   : > { %v5534_v51 = vpop.f32.mrb[39].mxu0 }
 0x67e   : > { %v6219_v11 = vpop.f32.mrb[36].mxu1 }
 0x67f   : > { %v6221_v12 = vpop.f32.mrb[37].mxu1  ;;  %v7489_v44 = vadd.f32 %v7488_v41, %v6219_v11 }
 0x680   : > { %v6223_v56 = vpop.f32.mrb[38].mxu1  ;;  %v7491_v48 = vadd.f32 %v7490_v0, %v6221_v12 }
 0x681   : > { %v6224_v13 = vpop.f32.mrb[39].mxu1  ;;  %v7380_v22 = vmul.f32 -1.442695, %v7489_v44 }
 0x682   : > { %v7381_v49 = vmul.f32 -1.442695, %v7491_v48 }
 0x6a1   : > { %v6178_v26 = vpop.f32.mrb[28].mxu0 }
 0x6a2   : > { %v7485_v33 = vadd.f32 %v7484_v18, %v6178_v26  ;;  %v6180_v52 = vpop.f32.mrb[29].mxu0 }
 0x6a3   : > { %v7487_v38 = vadd.f32 %v7486_v19, %v6180_v52  ;;  %v6182_v40 = vpop.f32.mrb[30].mxu0 }
 0x6a4   : > { %v7378_v59 = vmul.f32 -1.442695, %v7485_v33  ;;  %v6183_v6 = vpop.f32.mrb[31].mxu0 }
 0x6a5   : > { %v7379_v42 = vmul.f32 -1.442695, %v7487_v38 }
 0x6a6   : > { %8563 = vpow2.f32 %v7378_v59 }
 0x6a7   : > { %8565 = vpow2.f32 %v7379_v42 }
 0x6a8   : > { %8567 = vpow2.f32 %v7380_v22 }
 0x6a9   : > { %8569 = vpow2.f32 %v7381_v49 }
 0x6b0   : > { %v8564_v63 = vpop.eup %8563 }
 0x6b1   : > { %v8566_v43 = vpop.eup %8565  ;;  %v6275_v34 = vadd.f32 1.0, %v8564_v63 }
 0x6b2   : > { %v6276_v50 = vadd.f32 1.0, %v8566_v43  ;;  %v8568_v30 = vpop.eup %8567 }
 0x6b3   : > { %8571 = vrcp.f32 %v6275_v34  ;;  %v8570_v3 = vpop.eup %8569  ;;  %v6289_v54 = vadd.f32 1.0, %v8568_v30 }
 0x6b4   : > { %8573 = vrcp.f32 %v6276_v50  ;;  %v6290_v29 = vadd.f32 1.0, %v8570_v3 }
 0x6b5   : > { %8575 = vrcp.f32 %v6289_v54 }
 0x6b6   : > { %8577 = vrcp.f32 %v6290_v29 }
 0x6bd   : > { %v8572_v36 = vpop.eup %8571 }
 0x6be   : > { %v6260_v57 = vpop.f32.mrb[44].mxu1  ;;  %v8574_v21 = vpop.eup %8573 }
 0x6bf   : > { %v6261_v60 = vadd.f32 %v6260_v57, %v5653_v53  ;;  %v6262_v27 = vpop.f32.mrb[45].mxu1  ;;  %v8576_v2 = vpop.eup %8575 }
 0x6c0   : > { %v6263_v62 = vadd.f32 %v6262_v27, %v5657_v35  ;;  %v6264_v31 = vpop.f32.mrb[46].mxu1  ;;  %v8578_v61 = vpop.eup %8577  ;;  %v6301_v28 = vsub.f32 1.0, %v8576_v2  ;;  %v6305_v10 = vmul.f32 %v8584_v9, %v8576_v2 }
 0x6c1   : > { %v6295_v45 = vmul.f32 %v8572_v36, %v6261_v60  ;;  %v6265_v47 = vpop.f32.mrb[47].mxu1  ;;  %v6302_v4 = vsub.f32 1.0, %v8578_v61  ;;  %v6306_v11 = vmul.f32 %v8578_v61, %v9339_v55 }
 0x6c2   : > { %v6296_v24 = vmul.f32 %v8574_v21, %v6263_v62 }
 0x6c3   : > { %v6297_v46 = vadd.f32 %v6295_v45, %v5530_v8 }
 0x6c4   : > { %v6298_v58 = vadd.f32 %v6296_v24, %v5532_v32 }
 0x6c5   : > { %8579 = vtanh.f32 %v6297_v46 }
 0x6c6   : > { %8581 = vtanh.f32 %v6298_v58 }
 0x6cf   : > { %v8580_v39 = vpop.eup %8579 }
 0x6d0   : > { %v8582_v37 = vpop.eup %8581  ;;  %v6303_v7 = vmul.f32 %v8580_v39, %v6301_v28 }
 0x6d1   : > { %v6304_v51 = vmul.f32 %v8582_v37, %v6302_v4 }
 0x6d2   : > { %v6307_v12 = vadd.f32 %v6305_v10, %v6303_v7 }
 0x6d3   : > { %v6308_v56 = vadd.f32 %v6306_v11, %v6304_v51 }
 0x6d4   : > { %v6309_v32 = vpack.c.bf16 %v6307_v12, %v6307_v12 }
 0x6d5   : > { %v6310_v13 = vpack.c.bf16 %v6308_v56, %v6308_v56  ;;  %v6490_v8 = vcombine.low %v6307_v12, %v6308_v56 }
 0x6d7   : > { %6478 = vmatprep.mubr.bf16.mxu0 %v6310_v13  ;;  %6492 = vst [vmem:[#allocation2] sm:$0xff] %v6490_v8  ;;  %6497 = vst [vmem:[#allocation15] sm:$0xff] (!%p7399_p12), %v6490_v8 }
 0x6d8   : > { %6479 = vmatmul.mubr.bf16.vlgmr.msra.gmra.mrb[40].mxu0 %v6309_v32 }
 0x7ab   : > { %v7468_v14 = vpop.f32.mrb[40].mxu0  ;;  %6496 = sbr.rel (%p7399_p12) target bundleno = 1970 (0x7b2), region = 132 }
 0x7ac   : > { %v7469_v5 = vpop.f32.mrb[41].mxu0 }
 0x7ad   : > { %v7470_v16 = vadd.f32 %v7469_v5, %v7468_v14  ;;  %v7471_v17 = vpop.f32.mrb[42].mxu0 }
 0x7ae   : > { %v7472_v18 = vpop.f32.mrb[43].mxu0 }
 0x7af   : > { %v6481_v19 = vadd.f32 %v7470_v16, %v7382_v1 }
 0x7b1   : > { %6486 = vst [vmem:[%s772_s26] sm:$0xf] %v6481_v19 }
 0x7b2 PF: > { %p7585_p13 = scmp.eq.s32.totalorder %s8967_s27, 7  ;;  %s8850_s23 = smov [#allocation15]  }
 0x7b3   : > { %s6516_s29 = sshll.u32 %s8850_s23, 4  ;;  %s6517_s29 = int_to_ptr.vmem [resolvable:$true] %s6516_s29 }
 0x7b4   : > { %s8781_s28 = scalar_lea.vmem %s6517_s29, 128  ;;  %p8788_p8 = scmp.lt.s32.totalorder %s6517_s29, %s6517_s29 }
 0x7b5   : > { %p8782_p0 = scmp.ne.s32.totalorder %s6517_s29, %s8781_s28  ;;  %p8789_p1 = scmp.lt.s32.totalorder %s8781_s28, %s8781_s28 }
 0x7b7   : > { %p8783_p3 = pnand %p8782_p0, %p7585_p13  ;;  %p8790_p5 = por %p8789_p1, %p8788_p8 }
 0x7b9   : > { %p8784_p4 = pneg %p8783_p3 }
 0x7bb   : > { %p8791_p7 = pnand %p8790_p5, %p8784_p4 }
 0x7bd   : > { %8794 = shalt.err (!%p8791_p7)
}
 0x7be   : > { %s10238_s3 = sld [smem:[#allocation32_spill]] }
 0x7c4   : > { %s8795_s2 = scalar_lea.hbm %s10238_s3, 128 }
 0x7c5   : > { %p8796_p6 = scmp.ne.s32.totalorder %s10238_s3, %s8795_s2  ;;  %p8801_p2 = scmp.lt.u32.totalorder %s8795_s2, %s10238_s3 }
 0x7c7   : > { %p8797_p9 = pnand %p8796_p6, %p7585_p13 }
 0x7c9   : > { %p8798_p10 = pneg %p8797_p9 }
 0x7cb   : > { %p8803_p11 = pnand %p8801_p2, %p8798_p10 }
 0x7cd   : > { %8806 = shalt.err (!%p8803_p11)
}
 0x7ce   : > { %7546 = dma.vmem_to_hbm [thread:$0]  (%p7585_p13), %s6517_s29, 128, %s10238_s3, [#allocation5]  }
 0x7cf   : > { %8828 = dma.done.wait (%p7585_p13), [#allocation5], 128  }
 0x7d0   : > { %8830 = vsyncadd (%p7585_p13), [#allocation5], 4294967168 }
 0x7d1 PF: > { %s10239_s20 = sld [smem:[#allocation21_spill]] }
 0x7d7   : > { %s37_s2 = sadd.s32 1, %s10239_s20  }
 0x7d8   : > { %p34_p12 = scmp.ge.s32.totalorder %s37_s2, 10  }
 0x7da   :  { %36 = sbr.rel (!%p34_p12) target bundleno = 17 (0x11), region = 187 }
 0x7e1   :  { %6546 = vsyncpa [#allocation4], 1 }
 0x7e2   :  { %6548 = vsyncpa [#allocation4 + $0x1], 1 }
 0x7e3   :  { %6549 = vsyncpa [#allocation7], 1 }
 0x7e4   :  { %6550 = vsyncpa [#allocation10], 1 }
 0x7e5   :  { %6551 = vsyncpa [#allocation13], 1 }
 0x7e6   :  { %6552 = vsyncpa [#allocation5], 1 }
 0x7e7   :  { %6554 = vsyncpa [#allocation5 + $0x1], 1 }

</bundles_post_ra>
